<compile_context>
chip_gen: v6e
topology: v6e:2x2x1
jax: 0.10.0
libtpu: 0.0.40
codegen_flags: <defaults>
</compile_context>

<pallas_src>
import functools

import jax
import jax.numpy as jnp
from jax.experimental import pallas as pl
from jax.experimental.pallas import tpu as pltpu


# ----------------------------------------------------------------------------
# Static geometry (the PyTorch module hard-codes fc1 = Linear(16*7*7, .), so
# the spatial size must be 28x28).
# ----------------------------------------------------------------------------
C1, C2 = 8, 16                 # conv channel counts
H1 = W1 = 28                   # input spatial size
HP1 = WP1 = 30                 # zero-padded conv1 input (28 + 2)
S1 = HP1 * WP1                 # 900: flat padded image length (per image)
H2 = W2 = 14                   # spatial size after pool1
HP2 = 16                       # zero-padded conv2 input (14 + 2) == row stride
S2 = HP2 * HP2                 # 256: flat padded conv2-input length (per image)
HO = WO = 7                    # spatial size after pool2
_C2_SHIFT = C2.bit_length() - 1    # 4 (C2 == 16, fixed by the module)

# Flat tap offsets for a 3x3 conv in the row-major flat layouts above.
_OFFS1 = tuple(WP1 * dh + dw for dh in range(3) for dw in range(3))   # 0..62
_OFFS2 = tuple(HP2 * dh + dw for dh in range(3) for dw in range(3))   # 0..34


def _pool_select_even(cand_sm, tb, rows, cols, out_rc, ch):
    """Select 2x2-maxpool outputs from flat pool candidates.

    cand_sm: (tb*rows*cols, ch) spatial-major candidates, row-major per image;
             cand_sm[b*rows*cols + r*cols + w, c] = max of the 2x2 window whose
             top-left corner is (r, w).
    Returns (tb, out_rc, out_rc, ch): candidates at even rows / even cols.
    Only leading-dim reshapes and basic slices are used (minor dim untouched).
    """
    half_r, half_c = rows // 2, cols // 2
    x = cand_sm.reshape(tb * half_r, 2 * cols, ch)[:, :cols, :]    # even rows
    x = x.reshape(tb, half_r, cols, ch)[:, :out_rc]                # drop garbage rows
    x = x.reshape(tb * out_rc, half_c, 2, ch)[:, :, 0, :]          # even cols
    x = x.reshape(tb, out_rc, half_c, ch)[:, :, :out_rc]           # drop garbage cols
    return x


# ----------------------------------------------------------------------------
# The fused Pallas kernel.  One grid step processes `tb` images; every
# activation stays in VMEM in a lane-dense (channel, flat_spatial) layout.
# ----------------------------------------------------------------------------
def _cnn_fused_kernel(x_ref, w1_ref, b1_ref, w2_ref, b2_ref, wfc_ref, bfc_ref,
                      o_ref, *, tb, cin, ncls):
    f32 = jnp.float32
    ls1 = tb * S1                     # flat conv1 domain for the batch block
    ls2 = tb * S2                     # flat conv2 domain for the batch block

    x = x_ref[0]                                            # (cin, ls1 + 96)

    # ---- conv1 (3x3, pad 1) + ReLU: ONE matmul, 9 taps stacked on K --------
    l1e = ls1 + 32                                          # headroom for pool reads
    taps1 = jnp.concatenate([x[:, o:o + l1e] for o in _OFFS1], axis=0)   # (9*cin, l1e)
    y1 = jnp.maximum(
        jnp.dot(w1_ref[...], taps1, preferred_element_type=f32) + b1_ref[...],
        0.0)                                                # (C1, l1e), lane-dense

    # ---- maxpool 2x2 (stride 2): pairwise maxes on lane shifts -------------
    a = jnp.maximum(y1[:, :-1], y1[:, 1:])
    a = jnp.maximum(a[:, :-WP1], a[:, WP1:])[:, :ls1]       # (C1, ls1) candidates
    pooled1 = _pool_select_even(jnp.transpose(a), tb, HP1, WP1, H2, C1)
    # pooled1: (tb, 14, 14, C1)

    # ---- zero-pad pooled1 into the 16x16 flat layout conv2 consumes --------
    zc = jnp.zeros((tb * H2, 1, C1), f32)
    p = jnp.concatenate([zc, pooled1.reshape(tb * H2, W2, C1), zc], axis=1)
    p = p.reshape(tb, H2, HP2, C1)
    zr = jnp.zeros((tb, 1, HP2, C1), f32)
    p = jnp.concatenate([zr, p, zr], axis=1)                # (tb, 16, 16, C1)
    p2 = jnp.transpose(p.reshape(ls2, C1))                  # (C1, ls2) lane-dense
    p2 = jnp.concatenate([p2, jnp.zeros((C1, 64), f32)], axis=1)   # tap over-read pad

    # ---- conv2 (3x3, pad 1) + ReLU: ONE K=72 matmul -------------------------
    l2e = ls2 + 20
    taps2 = jnp.concatenate([p2[:, o:o + l2e] for o in _OFFS2], axis=0)  # (72, l2e)
    y2 = jnp.maximum(
        jnp.dot(w2_ref[...], taps2, preferred_element_type=f32) + b2_ref[...],
        0.0)                                                # (C2, l2e)

    # ---- maxpool 2x2 -> (tb, 7, 7, C2) --------------------------------------
    a2 = jnp.maximum(y2[:, :-1], y2[:, 1:])
    a2 = jnp.maximum(a2[:, :-HP2], a2[:, HP2:])[:, :ls2]    # (C2, ls2)
    pooled2 = _pool_select_even(jnp.transpose(a2), tb, HP2, HP2, HO, C2)
    pooled2 = pooled2.reshape(tb, HO * WO, C2)              # (tb, 49, C2)

    # ---- fc: one main matmul (contract the 49 spatial positions) + diagonal
    #      mask over channels + tiny iota-built block-sum matmul -------------
    pcm = jnp.concatenate([jnp.transpose(pooled2[b]) for b in range(tb)],
                          axis=0)                           # (tb*C2, 49)
    t = jnp.dot(pcm, wfc_ref[...], preferred_element_type=f32)   # (tb*C2, ncls*C2)
    ri = jax.lax.broadcasted_iota(jnp.int32, t.shape, 0)
    ci = jax.lax.broadcasted_iota(jnp.int32, t.shape, 1)
    keep = jnp.bitwise_and(ri, C2 - 1) == jnp.bitwise_and(ci, C2 - 1)
    t = jnp.where(keep, t, 0.0)
    s = jnp.sum(t.reshape(tb, C2, ncls * C2), axis=1)       # (tb, ncls*C2)
    jj = jax.lax.broadcasted_iota(jnp.int32, (ncls * C2, ncls), 0)
    nn = jax.lax.broadcasted_iota(jnp.int32, (ncls * C2, ncls), 1)
    bsum = (jnp.right_shift(jj, _C2_SHIFT) == nn).astype(f32)
    logits = jnp.dot(s, bsum, preferred_element_type=f32) + bfc_ref[...]
    o_ref[...] = logits.astype(o_ref.dtype)                 # (tb, ncls)


# ----------------------------------------------------------------------------
# Forward pass (matches CNN.forward semantics; external interface is NCHW).
# ----------------------------------------------------------------------------
def _forward_impl(x_nchw, params, block_batch):
    B, cin, hh, ww = x_nchw.shape
    assert (hh, ww) == (H1, W1), "fc1 hard-codes 16*7*7 -> input must be 28x28"
    ncls = params["bfc"].shape[-1]
    tb = max(1, min(block_batch, B))
    g = -(-B // tb)
    bp = g * tb

    # Tiny one-time layout prep: zero-pad spatially, flatten row-major, fold
    # `tb` images per grid step along the flat (lane) axis, add tap over-read.
    x = x_nchw.astype(jnp.float32)
    if bp != B:
        x = jnp.concatenate([x, jnp.zeros((bp - B, cin, H1, W1), jnp.float32)], 0)
    xp = jnp.pad(x, ((0, 0), (0, 0), (1, 1), (1, 1)))       # (bp, cin, 30, 30)
    xf = xp.reshape(bp, cin, S1)
    xf = xf.reshape(g, tb, cin, S1).transpose(0, 2, 1, 3).reshape(g, cin, tb * S1)
    xf = jnp.pad(xf, ((0, 0), (0, 0), (0, 96)))             # (g, cin, tb*900+96)

    kernel = functools.partial(_cnn_fused_kernel, tb=tb, cin=cin, ncls=ncls)
    out = pl.pallas_call(
        kernel,
        out_shape=jax.ShapeDtypeStruct((bp, ncls), jnp.float32),
        grid=(g,),
        in_specs=[
            pl.BlockSpec((1, cin, tb * S1 + 96), lambda i: (i, 0, 0)),  # images
            pl.BlockSpec((C1, 9 * cin), lambda i: (0, 0)),              # conv1 w
            pl.BlockSpec((C1, 1), lambda i: (0, 0)),                    # conv1 b
            pl.BlockSpec((C2, 9 * C1), lambda i: (0, 0)),               # conv2 w
            pl.BlockSpec((C2, 1), lambda i: (0, 0)),                    # conv2 b
            pl.BlockSpec((HO * WO, ncls * C2), lambda i: (0, 0)),       # fc w
            pl.BlockSpec((1, ncls), lambda i: (0, 0)),                  # fc b
        ],
        out_specs=pl.BlockSpec((tb, ncls), lambda i: (i, 0)),
        compiler_params=pltpu.CompilerParams(
            dimension_semantics=("parallel",)),
    )(xf, params["w1"], params["b1"], params["w2"], params["b2"],
      params["wfc"], params["bfc"])
    return out[:B]


@functools.partial(jax.jit, static_argnames=("block_batch",))
def _forward_jit(x_nchw, params, *, block_batch):
    return _forward_impl(x_nchw, params, block_batch)


def cnn_forward(x_nchw, params, block_batch=8):
    return _forward_jit(x_nchw, params, block_batch=block_batch)


# ----------------------------------------------------------------------------
# Parameter construction (deterministic, PyTorch-style uniform init), stored
# both in the kernel layouts and in PyTorch layouts (for the reference check).
# ----------------------------------------------------------------------------
def init_params(key, in_channels=1, num_classes=10):
    ks = jax.random.split(key, 6)

    def uniform(k, shape, fan_in):
        bound = 1.0 / (fan_in ** 0.5)
        return jax.random.uniform(k, shape, jnp.float32, -bound, bound)

    w1_pt = uniform(ks[0], (C1, in_channels, 3, 3), 9 * in_channels)
    b1_pt = uniform(ks[1], (C1,), 9 * in_channels)
    w2_pt = uniform(ks[2], (C2, C1, 3, 3), 9 * C1)
    b2_pt = uniform(ks[3], (C2,), 9 * C1)
    wfc_pt = uniform(ks[4], (num_classes, C2 * HO * WO), C2 * HO * WO)
    bfc_pt = uniform(ks[5], (num_classes,), C2 * HO * WO)

    # Kernel layouts:
    #   conv weights: (Cout, 9*Cin), columns ordered (dh*3+dw)*Cin + ci.
    #   fc weight:    (49, ncls*C2), column = n*C2 + c, row p = ho*7 + wo.
    w1 = jnp.transpose(w1_pt, (0, 2, 3, 1)).reshape(C1, 9 * in_channels)
    w2 = jnp.transpose(w2_pt, (0, 2, 3, 1)).reshape(C2, 9 * C1)
    wfc = jnp.transpose(wfc_pt.reshape(num_classes, C2, HO * WO),
                        (2, 0, 1)).reshape(HO * WO, num_classes * C2)
    return dict(
        w1=w1, b1=b1_pt.reshape(C1, 1),
        w2=w2, b2=b2_pt.reshape(C2, 1),
        wfc=wfc, bfc=bfc_pt.reshape(1, num_classes),
        # PyTorch-layout copies for the XLA reference.
        w1_pt=w1_pt, b1_pt=b1_pt, w2_pt=w2_pt, b2_pt=b2_pt,
        wfc_pt=wfc_pt, bfc_pt=bfc_pt)


# ----------------------------------------------------------------------------
# Pure-JAX (XLA) reference with identical semantics, for a self-check.
# ----------------------------------------------------------------------------
def cnn_forward_reference(x_nchw, params):
    x = jnp.transpose(x_nchw, (0, 2, 3, 1)).astype(jnp.float32)

    def conv_relu(x, w_pt, b_pt):
        w = jnp.transpose(w_pt, (2, 3, 1, 0))               # OIHW -> HWIO
        y = jax.lax.conv_general_dilated(
            x, w, (1, 1), ((1, 1), (1, 1)),
            dimension_numbers=("NHWC", "HWIO", "NHWC"))
        return jnp.maximum(y + b_pt.reshape(1, 1, 1, -1), 0.0)

    def pool(x):
        return jax.lax.reduce_window(x, -jnp.inf, jax.lax.max,
                                     (1, 2, 2, 1), (1, 2, 2, 1), "VALID")

    y = pool(conv_relu(x, params["w1_pt"], params["b1_pt"]))
    y = pool(conv_relu(y, params["w2_pt"], params["b2_pt"]))
    B = x.shape[0]
    flat = jnp.transpose(y, (0, 3, 1, 2)).reshape(B, -1)     # (C,H,W) flatten
    return flat @ params["wfc_pt"].T + params["bfc_pt"]


# ----------------------------------------------------------------------------
if __name__ == "__main__":
    key = jax.random.PRNGKey(0)
    k_x, k_p = jax.random.split(key)

    # fc1 hard-codes 16*7*7, so spatial must be 28x28; batch kept small.
    B, C, H, W = 2, 1, 28, 28
    x = jax.random.normal(k_x, (B, C, H, W), jnp.float32)
    params = init_params(k_p, in_channels=C, num_classes=10)

    out = cnn_forward(x, params)
    jax.block_until_ready(out)
    assert out.shape == (B, 10) and out.dtype == jnp.float32

    ref = cnn_forward_reference(x, params)
    max_err = float(jnp.max(jnp.abs(out - ref)))
    if max_err > 2e-3:
        raise AssertionError(f"Pallas CNN mismatch vs XLA reference: {max_err}")

    print("KERNEL_OK")
</pallas_src>

<mosaic_0001>
module attributes {stable_mosaic.version = 11 : i64} {
  func.func @_cnn_fused_kernel(%arg0: i32, %arg1: memref<1x1x1896xf32, #tpu.memory_space<vmem>>, %arg2: memref<8x9xf32, #tpu.memory_space<vmem>>, %arg3: memref<8x1xf32, #tpu.memory_space<vmem>>, %arg4: memref<16x72xf32, #tpu.memory_space<vmem>>, %arg5: memref<16x1xf32, #tpu.memory_space<vmem>>, %arg6: memref<49x160xf32, #tpu.memory_space<vmem>>, %arg7: memref<1x10xf32, #tpu.memory_space<vmem>>, %arg8: memref<2x10xf32, #tpu.memory_space<vmem>>) attributes {dimension_semantics = [#tpu.dimension_semantics<parallel>], iteration_bounds = array<i64: 1>, scalar_prefetch = 0 : i64, scratch_operands = 0 : i64, tpu.core_type = #tpu.core_type<tc>, window_params = [{transform_indices = @transform_0, window_bounds = array<i64: 1, 1, 1896>}, {pipeline_mode = #tpu.pipeline_mode<synchronous>, transform_indices = @transform_1, window_bounds = array<i64: 8, 9>}, {pipeline_mode = #tpu.pipeline_mode<synchronous>, transform_indices = @transform_2, window_bounds = array<i64: 8, 1>}, {pipeline_mode = #tpu.pipeline_mode<synchronous>, transform_indices = @transform_3, window_bounds = array<i64: 16, 72>}, {pipeline_mode = #tpu.pipeline_mode<synchronous>, transform_indices = @transform_4, window_bounds = array<i64: 16, 1>}, {pipeline_mode = #tpu.pipeline_mode<synchronous>, transform_indices = @transform_5, window_bounds = array<i64: 49, 160>}, {pipeline_mode = #tpu.pipeline_mode<synchronous>, transform_indices = @transform_6, window_bounds = array<i64: 1, 10>}, {transform_indices = @transform_7, window_bounds = array<i64: 2, 10>}]} {
    %c0 = arith.constant 0 : index
    %c0_0 = arith.constant 0 : index
    %c0_1 = arith.constant 0 : index
    %0 = vector.load %arg1[%c0, %c0_0, %c0_1] : memref<1x1x1896xf32, #tpu.memory_space<vmem>>, vector<1x1x1896xf32>
    %1 = vector.shape_cast %0 : vector<1x1x1896xf32> to vector<1x1896xf32>
    %2 = vector.extract_strided_slice %1 {offsets = [0, 0], sizes = [1, 1832], strides = [1, 1]} : vector<1x1896xf32> to vector<1x1832xf32>
    %3 = vector.extract_strided_slice %1 {offsets = [0, 1], sizes = [1, 1832], strides = [1, 1]} : vector<1x1896xf32> to vector<1x1832xf32>
    %4 = vector.extract_strided_slice %1 {offsets = [0, 2], sizes = [1, 1832], strides = [1, 1]} : vector<1x1896xf32> to vector<1x1832xf32>
    %5 = vector.extract_strided_slice %1 {offsets = [0, 30], sizes = [1, 1832], strides = [1, 1]} : vector<1x1896xf32> to vector<1x1832xf32>
    %6 = vector.extract_strided_slice %1 {offsets = [0, 31], sizes = [1, 1832], strides = [1, 1]} : vector<1x1896xf32> to vector<1x1832xf32>
    %7 = vector.extract_strided_slice %1 {offsets = [0, 32], sizes = [1, 1832], strides = [1, 1]} : vector<1x1896xf32> to vector<1x1832xf32>
    %8 = vector.extract_strided_slice %1 {offsets = [0, 60], sizes = [1, 1832], strides = [1, 1]} : vector<1x1896xf32> to vector<1x1832xf32>
    %9 = vector.extract_strided_slice %1 {offsets = [0, 61], sizes = [1, 1832], strides = [1, 1]} : vector<1x1896xf32> to vector<1x1832xf32>
    %10 = vector.extract_strided_slice %1 {offsets = [0, 62], sizes = [1, 1832], strides = [1, 1]} : vector<1x1896xf32> to vector<1x1832xf32>
    %11 = tpu.concatenate %2, %3, %4, %5, %6, %7, %8, %9, %10 in 0 : vector<1x1832xf32>, vector<1x1832xf32>, vector<1x1832xf32>, vector<1x1832xf32>, vector<1x1832xf32>, vector<1x1832xf32>, vector<1x1832xf32>, vector<1x1832xf32>, vector<1x1832xf32> -> vector<9x1832xf32>
    %c0_2 = arith.constant 0 : index
    %c0_3 = arith.constant 0 : index
    %12 = vector.load %arg2[%c0_2, %c0_3] : memref<8x9xf32, #tpu.memory_space<vmem>>, vector<8x9xf32>
    %cst = arith.constant dense<0.000000e+00> : vector<8x1832xf32>
    %13 = tpu.matmul %12, %11, %cst {dimension_numbers = #tpu.dot_dimension_numbers<[1], [0], [0], [1], [0, 0, 1, 1], [], []>} : vector<8x9xf32>, vector<9x1832xf32>, vector<8x1832xf32> -> vector<8x1832xf32>
    %c0_4 = arith.constant 0 : index
    %c0_5 = arith.constant 0 : index
    %14 = vector.load %arg3[%c0_4, %c0_5] : memref<8x1xf32, #tpu.memory_space<vmem>>, vector<8x1xf32>
    %15 = vector.broadcast %14 : vector<8x1xf32> to vector<8x1832xf32>
    %16 = arith.addf %13, %15 : vector<8x1832xf32>
    %cst_6 = arith.constant 0.000000e+00 : f32
    %17 = vector.broadcast %cst_6 : f32 to vector<8x1832xf32>
    %18 = arith.maximumf %16, %17 : vector<8x1832xf32>
    %19 = vector.extract_strided_slice %18 {offsets = [0, 0], sizes = [8, 1831], strides = [1, 1]} : vector<8x1832xf32> to vector<8x1831xf32>
    %20 = vector.extract_strided_slice %18 {offsets = [0, 1], sizes = [8, 1831], strides = [1, 1]} : vector<8x1832xf32> to vector<8x1831xf32>
    %21 = arith.maximumf %19, %20 : vector<8x1831xf32>
    %22 = vector.extract_strided_slice %21 {offsets = [0, 0], sizes = [8, 1801], strides = [1, 1]} : vector<8x1831xf32> to vector<8x1801xf32>
    %23 = vector.extract_strided_slice %21 {offsets = [0, 30], sizes = [8, 1801], strides = [1, 1]} : vector<8x1831xf32> to vector<8x1801xf32>
    %24 = arith.maximumf %22, %23 : vector<8x1801xf32>
    %25 = vector.extract_strided_slice %24 {offsets = [0, 0], sizes = [8, 1800], strides = [1, 1]} : vector<8x1801xf32> to vector<8x1800xf32>
    %26 = tpu.transpose %25, [1, 0] : vector<8x1800xf32> -> vector<1800x8xf32>
    %27 = vector.shape_cast %26 : vector<1800x8xf32> to vector<30x60x8xf32>
    %28 = vector.extract_strided_slice %27 {offsets = [0, 0, 0], sizes = [30, 30, 8], strides = [1, 1, 1]} : vector<30x60x8xf32> to vector<30x30x8xf32>
    %29 = vector.shape_cast %28 : vector<30x30x8xf32> to vector<2x15x30x8xf32>
    %30 = vector.extract_strided_slice %29 {offsets = [0, 0, 0, 0], sizes = [2, 14, 30, 8], strides = [1, 1, 1, 1]} : vector<2x15x30x8xf32> to vector<2x14x30x8xf32>
    %31 = vector.shape_cast %30 : vector<2x14x30x8xf32> to vector<28x15x2x8xf32>
    %32 = vector.extract_strided_slice %31 {offsets = [0, 0, 0, 0], sizes = [28, 15, 1, 8], strides = [1, 1, 1, 1]} : vector<28x15x2x8xf32> to vector<28x15x1x8xf32>
    %33 = vector.shape_cast %32 : vector<28x15x1x8xf32> to vector<28x15x8xf32>
    %34 = vector.shape_cast %33 : vector<28x15x8xf32> to vector<2x14x15x8xf32>
    %35 = vector.extract_strided_slice %34 {offsets = [0, 0, 0, 0], sizes = [2, 14, 14, 8], strides = [1, 1, 1, 1]} : vector<2x14x15x8xf32> to vector<2x14x14x8xf32>
    %cst_7 = arith.constant 0.000000e+00 : f32
    %36 = vector.broadcast %cst_7 : f32 to vector<28x1x8xf32>
    %37 = vector.shape_cast %35 : vector<2x14x14x8xf32> to vector<28x14x8xf32>
    %38 = tpu.concatenate %36, %37, %36 in 1 : vector<28x1x8xf32>, vector<28x14x8xf32>, vector<28x1x8xf32> -> vector<28x16x8xf32>
    %39 = vector.shape_cast %38 : vector<28x16x8xf32> to vector<2x14x16x8xf32>
    %cst_8 = arith.constant 0.000000e+00 : f32
    %40 = vector.broadcast %cst_8 : f32 to vector<2x1x16x8xf32>
    %41 = tpu.concatenate %40, %39, %40 in 1 : vector<2x1x16x8xf32>, vector<2x14x16x8xf32>, vector<2x1x16x8xf32> -> vector<2x16x16x8xf32>
    %42 = vector.shape_cast %41 : vector<2x16x16x8xf32> to vector<512x8xf32>
    %43 = tpu.transpose %42, [1, 0] : vector<512x8xf32> -> vector<8x512xf32>
    %cst_9 = arith.constant 0.000000e+00 : f32
    %44 = vector.broadcast %cst_9 : f32 to vector<8x64xf32>
    %45 = tpu.concatenate %43, %44 in 1 : vector<8x512xf32>, vector<8x64xf32> -> vector<8x576xf32>
    %46 = vector.extract_strided_slice %45 {offsets = [0, 0], sizes = [8, 532], strides = [1, 1]} : vector<8x576xf32> to vector<8x532xf32>
    %47 = vector.extract_strided_slice %45 {offsets = [0, 1], sizes = [8, 532], strides = [1, 1]} : vector<8x576xf32> to vector<8x532xf32>
    %48 = vector.extract_strided_slice %45 {offsets = [0, 2], sizes = [8, 532], strides = [1, 1]} : vector<8x576xf32> to vector<8x532xf32>
    %49 = vector.extract_strided_slice %45 {offsets = [0, 16], sizes = [8, 532], strides = [1, 1]} : vector<8x576xf32> to vector<8x532xf32>
    %50 = vector.extract_strided_slice %45 {offsets = [0, 17], sizes = [8, 532], strides = [1, 1]} : vector<8x576xf32> to vector<8x532xf32>
    %51 = vector.extract_strided_slice %45 {offsets = [0, 18], sizes = [8, 532], strides = [1, 1]} : vector<8x576xf32> to vector<8x532xf32>
    %52 = vector.extract_strided_slice %45 {offsets = [0, 32], sizes = [8, 532], strides = [1, 1]} : vector<8x576xf32> to vector<8x532xf32>
    %53 = vector.extract_strided_slice %45 {offsets = [0, 33], sizes = [8, 532], strides = [1, 1]} : vector<8x576xf32> to vector<8x532xf32>
    %54 = vector.extract_strided_slice %45 {offsets = [0, 34], sizes = [8, 532], strides = [1, 1]} : vector<8x576xf32> to vector<8x532xf32>
    %55 = tpu.concatenate %46, %47, %48, %49, %50, %51, %52, %53, %54 in 0 : vector<8x532xf32>, vector<8x532xf32>, vector<8x532xf32>, vector<8x532xf32>, vector<8x532xf32>, vector<8x532xf32>, vector<8x532xf32>, vector<8x532xf32>, vector<8x532xf32> -> vector<72x532xf32>
    %c0_10 = arith.constant 0 : index
    %c0_11 = arith.constant 0 : index
    %56 = vector.load %arg4[%c0_10, %c0_11] : memref<16x72xf32, #tpu.memory_space<vmem>>, vector<16x72xf32>
    %cst_12 = arith.constant dense<0.000000e+00> : vector<16x532xf32>
    %57 = tpu.matmul %56, %55, %cst_12 {dimension_numbers = #tpu.dot_dimension_numbers<[1], [0], [0], [1], [0, 0, 1, 1], [], []>} : vector<16x72xf32>, vector<72x532xf32>, vector<16x532xf32> -> vector<16x532xf32>
    %c0_13 = arith.constant 0 : index
    %c0_14 = arith.constant 0 : index
    %58 = vector.load %arg5[%c0_13, %c0_14] : memref<16x1xf32, #tpu.memory_space<vmem>>, vector<16x1xf32>
    %59 = vector.broadcast %58 : vector<16x1xf32> to vector<16x532xf32>
    %60 = arith.addf %57, %59 : vector<16x532xf32>
    %cst_15 = arith.constant 0.000000e+00 : f32
    %61 = vector.broadcast %cst_15 : f32 to vector<16x532xf32>
    %62 = arith.maximumf %60, %61 : vector<16x532xf32>
    %63 = vector.extract_strided_slice %62 {offsets = [0, 0], sizes = [16, 531], strides = [1, 1]} : vector<16x532xf32> to vector<16x531xf32>
    %64 = vector.extract_strided_slice %62 {offsets = [0, 1], sizes = [16, 531], strides = [1, 1]} : vector<16x532xf32> to vector<16x531xf32>
    %65 = arith.maximumf %63, %64 : vector<16x531xf32>
    %66 = vector.extract_strided_slice %65 {offsets = [0, 0], sizes = [16, 515], strides = [1, 1]} : vector<16x531xf32> to vector<16x515xf32>
    %67 = vector.extract_strided_slice %65 {offsets = [0, 16], sizes = [16, 515], strides = [1, 1]} : vector<16x531xf32> to vector<16x515xf32>
    %68 = arith.maximumf %66, %67 : vector<16x515xf32>
    %69 = vector.extract_strided_slice %68 {offsets = [0, 0], sizes = [16, 512], strides = [1, 1]} : vector<16x515xf32> to vector<16x512xf32>
    %70 = tpu.transpose %69, [1, 0] : vector<16x512xf32> -> vector<512x16xf32>
    %71 = vector.shape_cast %70 : vector<512x16xf32> to vector<16x32x16xf32>
    %72 = vector.extract_strided_slice %71 {offsets = [0, 0, 0], sizes = [16, 16, 16], strides = [1, 1, 1]} : vector<16x32x16xf32> to vector<16x16x16xf32>
    %73 = vector.shape_cast %72 : vector<16x16x16xf32> to vector<2x8x16x16xf32>
    %74 = vector.extract_strided_slice %73 {offsets = [0, 0, 0, 0], sizes = [2, 7, 16, 16], strides = [1, 1, 1, 1]} : vector<2x8x16x16xf32> to vector<2x7x16x16xf32>
    %75 = vector.shape_cast %74 : vector<2x7x16x16xf32> to vector<14x8x2x16xf32>
    %76 = vector.extract_strided_slice %75 {offsets = [0, 0, 0, 0], sizes = [14, 8, 1, 16], strides = [1, 1, 1, 1]} : vector<14x8x2x16xf32> to vector<14x8x1x16xf32>
    %77 = vector.shape_cast %76 : vector<14x8x1x16xf32> to vector<14x8x16xf32>
    %78 = vector.shape_cast %77 : vector<14x8x16xf32> to vector<2x7x8x16xf32>
    %79 = vector.extract_strided_slice %78 {offsets = [0, 0, 0, 0], sizes = [2, 7, 7, 16], strides = [1, 1, 1, 1]} : vector<2x7x8x16xf32> to vector<2x7x7x16xf32>
    %80 = vector.shape_cast %79 : vector<2x7x7x16xf32> to vector<2x49x16xf32>
    %81 = vector.extract_strided_slice %80 {offsets = [0, 0, 0], sizes = [1, 49, 16], strides = [1, 1, 1]} : vector<2x49x16xf32> to vector<1x49x16xf32>
    %82 = vector.shape_cast %81 : vector<1x49x16xf32> to vector<49x16xf32>
    %83 = tpu.transpose %82, [1, 0] : vector<49x16xf32> -> vector<16x49xf32>
    %84 = vector.extract_strided_slice %80 {offsets = [1, 0, 0], sizes = [1, 49, 16], strides = [1, 1, 1]} : vector<2x49x16xf32> to vector<1x49x16xf32>
    %85 = vector.shape_cast %84 : vector<1x49x16xf32> to vector<49x16xf32>
    %86 = tpu.transpose %85, [1, 0] : vector<49x16xf32> -> vector<16x49xf32>
    %87 = tpu.concatenate %83, %86 in 0 : vector<16x49xf32>, vector<16x49xf32> -> vector<32x49xf32>
    %c0_16 = arith.constant 0 : index
    %c0_17 = arith.constant 0 : index
    %88 = vector.load %arg6[%c0_16, %c0_17] : memref<49x160xf32, #tpu.memory_space<vmem>>, vector<49x160xf32>
    %cst_18 = arith.constant dense<0.000000e+00> : vector<32x160xf32>
    %89 = tpu.matmul %87, %88, %cst_18 {dimension_numbers = #tpu.dot_dimension_numbers<[1], [0], [0], [1], [0, 0, 1, 1], [], []>} : vector<32x49xf32>, vector<49x160xf32>, vector<32x160xf32> -> vector<32x160xf32>
    %90 = tpu.iota {dimensions = array<i32: 0>} : vector<32x160xi32>
    %91 = tpu.iota {dimensions = array<i32: 1>} : vector<32x160xi32>
    %c15_i32 = arith.constant 15 : i32
    %92 = vector.broadcast %c15_i32 : i32 to vector<32x160xi32>
    %93 = arith.andi %90, %92 : vector<32x160xi32>
    %c15_i32_19 = arith.constant 15 : i32
    %94 = vector.broadcast %c15_i32_19 : i32 to vector<32x160xi32>
    %95 = arith.andi %91, %94 : vector<32x160xi32>
    %96 = arith.cmpi eq, %93, %95 : vector<32x160xi32>
    %cst_20 = arith.constant 0.000000e+00 : f32
    %97 = vector.broadcast %cst_20 : f32 to vector<32x160xf32>
    %98 = arith.select %96, %89, %97 : vector<32x160xi1>, vector<32x160xf32>
    %99 = vector.shape_cast %98 : vector<32x160xf32> to vector<2x16x160xf32>
    %cst_21 = arith.constant dense<0.000000e+00> : vector<2x160xf32>
    %100 = vector.multi_reduction <add>, %99, %cst_21 [1] : vector<2x16x160xf32> to vector<2x160xf32>
    %101 = tpu.iota {dimensions = array<i32: 0>} : vector<160x10xi32>
    %102 = tpu.iota {dimensions = array<i32: 1>} : vector<160x10xi32>
    %c4_i32 = arith.constant 4 : i32
    %103 = vector.broadcast %c4_i32 : i32 to vector<160x10xi32>
    %104 = arith.shrsi %101, %103 : vector<160x10xi32>
    %105 = arith.cmpi eq, %104, %102 : vector<160x10xi32>
    %106 = arith.extui %105 : vector<160x10xi1> to vector<160x10xi32>
    %107 = arith.sitofp %106 : vector<160x10xi32> to vector<160x10xf32>
    %cst_22 = arith.constant dense<0.000000e+00> : vector<2x10xf32>
    %108 = tpu.matmul %100, %107, %cst_22 {dimension_numbers = #tpu.dot_dimension_numbers<[1], [0], [0], [1], [0, 0, 1, 1], [], []>} : vector<2x160xf32>, vector<160x10xf32>, vector<2x10xf32> -> vector<2x10xf32>
    %c0_23 = arith.constant 0 : index
    %c0_24 = arith.constant 0 : index
    %109 = vector.load %arg7[%c0_23, %c0_24] : memref<1x10xf32, #tpu.memory_space<vmem>>, vector<1x10xf32>
    %110 = vector.broadcast %109 : vector<1x10xf32> to vector<2x10xf32>
    %111 = arith.addf %108, %110 : vector<2x10xf32>
    %c0_25 = arith.constant 0 : index
    %c0_26 = arith.constant 0 : index
    %112 = vector.load %arg8[%c0_25, %c0_26] : memref<2x10xf32, #tpu.memory_space<vmem>>, vector<2x10xf32>
    tpu.vector_store %arg8[%c0_25, %c0_26], %111 {strides = array<i32>} : memref<2x10xf32, #tpu.memory_space<vmem>>, vector<2x10xf32>,
    return
  }
  func.func @transform_0(%arg0: i32) -> (i32, i32, i32) {
    %c0_i32 = arith.constant 0 : i32
    %c0_i32_0 = arith.constant 0 : i32
    %c0_i32_1 = arith.constant 0 : i32
    return %arg0, %c0_i32, %c0_i32_0 : i32, i32, i32
  }
  func.func @transform_1(%arg0: i32) -> (i32, i32) {
    %c0_i32 = arith.constant 0 : i32
    %c0_i32_0 = arith.constant 0 : i32
    %c0_i32_1 = arith.constant 0 : i32
    return %c0_i32, %c0_i32_0 : i32, i32
  }
  func.func @transform_2(%arg0: i32) -> (i32, i32) {
    %c0_i32 = arith.constant 0 : i32
    %c0_i32_0 = arith.constant 0 : i32
    %c0_i32_1 = arith.constant 0 : i32
    return %c0_i32, %c0_i32_0 : i32, i32
  }
  func.func @transform_3(%arg0: i32) -> (i32, i32) {
    %c0_i32 = arith.constant 0 : i32
    %c0_i32_0 = arith.constant 0 : i32
    %c0_i32_1 = arith.constant 0 : i32
    return %c0_i32, %c0_i32_0 : i32, i32
  }
  func.func @transform_4(%arg0: i32) -> (i32, i32) {
    %c0_i32 = arith.constant 0 : i32
    %c0_i32_0 = arith.constant 0 : i32
    %c0_i32_1 = arith.constant 0 : i32
    return %c0_i32, %c0_i32_0 : i32, i32
  }
  func.func @transform_5(%arg0: i32) -> (i32, i32) {
    %c0_i32 = arith.constant 0 : i32
    %c0_i32_0 = arith.constant 0 : i32
    %c0_i32_1 = arith.constant 0 : i32
    return %c0_i32, %c0_i32_0 : i32, i32
  }
  func.func @transform_6(%arg0: i32) -> (i32, i32) {
    %c0_i32 = arith.constant 0 : i32
    %c0_i32_0 = arith.constant 0 : i32
    %c0_i32_1 = arith.constant 0 : i32
    return %c0_i32, %c0_i32_0 : i32, i32
  }
  func.func @transform_7(%arg0: i32) -> (i32, i32) {
    %c0_i32 = arith.constant 0 : i32
    %c0_i32_0 = arith.constant 0 : i32
    return %arg0, %c0_i32 : i32, i32
  }
}

</mosaic_0001>

<bundles_post_ra>
// kernel: _forward_jit.1
= control target key start
LH: loop header
LB: loop body
LE: loop exit
PB: predicated region body
PF: predicated region fallthrough
CT: control target
= control target key end

     0   :  { %v11440_v0 = vlaneseq  ;;  %s11432_s0 = inlined_call_operand.vmem [shape: f32[1,1,1896], index: 0, kind: input, shape index: {}]   ;;  %s11433_s1 = inlined_call_operand.vmem [shape: f32[8,9], index: 1, kind: input, shape index: {}]   ;;  %s11434_s2 = inlined_call_operand.vmem [shape: f32[8,1], index: 2, kind: input, shape index: {}]   ;;  %s11435_s3 = inlined_call_operand.vmem [shape: f32[16,72], index: 3, kind: input, shape index: {}]   ;;  %s11436_s4 = inlined_call_operand.vmem [shape: f32[16,1], index: 4, kind: input, shape index: {}]   ;;  %s11437_s5 = inlined_call_operand.vmem [shape: f32[49,160], index: 5, kind: input, shape index: {}]   ;;  %s11438_s6 = inlined_call_operand.vmem [shape: f32[1,10], index: 6, kind: input, shape index: {}]   ;;  %s11439_s7 = inlined_call_operand.hbm [shape: f32[2,10], index: 7, kind: output, shape index: {}]  }
   0x2   :  { %v8204_v1 = vshrl.u32 %v11440_v0, 7 }
   0x4   :  { %11448 = vst [vmem:[#allocation5_spill] sm:$0xff] %v8204_v1 }
   0x5   :  { %12 = vsyncpa [#allocation3], 0  ;;  %v8209_v2 = vld [vmem:[%s11432_s0] sm:$0xff]  ;;  %v37_v3 = vsub.s32 1, %v8204_v1  ;;  %v8213_v4 = vsub.s32 0, %v8204_v1  ;;  %v41_v5 = vsub.s32 2, %v8204_v1 }
   0x6   :  { %s8144_s26 = smov 127   ;;  %s8145_s27 = smov 126   ;;  %v45_v9 = vsub.s32 3, %v8204_v1  ;;  %v49_v11 = vsub.s32 4, %v8204_v1  ;;  %v53_v12 = vsub.s32 5, %v8204_v1  ;;  %v57_v15 = vsub.s32 6, %v8204_v1 }
   0x7   :  { %v8219_v6 = vrot.slane %v8209_v2, %v37_v3  ;;  %v8223_v7 = vrot.slane %v8209_v2, %v8213_v4  ;;  %v8232_v8 = vrot.slane %v8209_v2, %v41_v5  ;;  %s8146_s28 = smov 98   ;;  %s8147_s29 = smov 97   ;;  %v61_v17 = vsub.s32 7, %v8204_v1  ;;  %v8334_v18 = vld [vmem:[%s11432_s0 + $0x8] sm:$0x7f] }
   0x8   :  { %v8254_v10 = vrot.slane %v8209_v2, %v45_v9  ;;  %v8265_v13 = vrot.slane %v8209_v2, %v49_v11  ;;  %v8270_v14 = vrot.slane %v8209_v2, %v53_v12  ;;  %v8280_v16 = vrot.slane %v8209_v2, %v57_v15  ;;  %s8148_s30 = smov 96   ;;  %s8149_s8 = smov 68  }
   0x9   :  { %108 = vrot.lane.b32.xlu0 %v8219_v6, %s8144_s26  ;;  %106 = vrot.lane.b32.xlu1 %v8223_v7, %s8144_s26  ;;  %s8150_s9 = smov 66   ;;  %s8151_s10 = smov 67   ;;  %v8341_v19 = vrot.slane %v8209_v2, %v61_v17  ;;  %v8345_v20 = vrot.slane %v8334_v18, %v8213_v4  ;;  %v8354_v21 = vrot.slane %v8334_v18, %v37_v3  ;;  %v11442_v23 = vmov 0.0  }
   0xa   :  { %v8359_v22 = vrot.slane %v8334_v18, %v41_v5  ;;  %788 = vmatprep.mubr.f32.mxu0 %v11442_v23  ;;  %859 = vmatprep.mubr.f32.mxu1 %v11442_v23  ;;  %vm556_vm0 = vcmask 539648   ;;  %vm571_vm1 = vcmask 1040384   ;;  %v8519_v55 = vrot.slane %v8334_v18, %v45_v9  ;;  %s8157_s15 = smov 110   ;;  %s8158_s16 = smov 111  }
   0xb   :  { %v8524_v56 = vrot.slane %v8334_v18, %v49_v11  ;;  %vm196_vm2 = vcmask 1031168   ;;  %vm136_vm3 = vcmask 1039360   ;;  %vm256_vm4 = vcmask 801792   ;;  %s8159_s17 = smov 95   ;;  %s8160_s18 = smov 112  }
   0xc   :  { %vm316_vm5 = vcmask 793600   ;;  %vm587_vm6 = vcmask 1041408   ;;  %vm376_vm7 = vcmask 785408   ;;  %vm603_vm8 = vcmask 1042432  }
   0xd   :  { %110 = vrot.lane.b32.xlu0 %v8232_v8, %s8144_s26  ;;  %168 = vrot.lane.b32.xlu1 %v8219_v6, %s8145_s27  ;;  %vm436_vm9 = vcmask 556032   ;;  %vm619_vm10 = vcmask 1043456   ;;  %vm496_vm11 = vcmask 547840   ;;  %vm11444_vm12 = vcmask 1044480  }
   0xe   :  { %vm651_vm13 = vcmask 1045504   ;;  %vm667_vm14 = vcmask 1046528   ;;  %vm690_vm15 = vcmask 72704  }
  0x11   :  { %170 = vrot.lane.b32.xlu0 %v8232_v8, %s8145_s27  ;;  %166 = vrot.lane.b32.xlu1 %v8223_v7, %s8145_s27 }
  0x15   :  { %228 = vrot.lane.b32.xlu0 %v8219_v6, %s8146_s28  ;;  %230 = vrot.lane.b32.xlu1 %v8232_v8, %s8146_s28 }
  0x19   :  { %226 = vrot.lane.b32.xlu0 %v8223_v7, %s8146_s28  ;;  %288 = vrot.lane.b32.xlu1 %v8219_v6, %s8147_s29 }
  0x1d   :  { %290 = vrot.lane.b32.xlu0 %v8232_v8, %s8147_s29  ;;  %112 = vrot.lane.b32.xlu1 %v8254_v10, %s8144_s26 }
  0x21   :  { %114 = vrot.lane.b32.xlu0 %v8265_v13, %s8144_s26  ;;  %116 = vrot.lane.b32.xlu1 %v8270_v14, %s8144_s26 }
  0x25   :  { %118 = vrot.lane.b32.xlu0 %v8280_v16, %s8144_s26  ;;  %286 = vrot.lane.b32.xlu1 %v8223_v7, %s8147_s29 }
  0x29   :  { %348 = vrot.lane.b32.xlu0 %v8219_v6, %s8148_s30  ;;  %350 = vrot.lane.b32.xlu1 %v8232_v8, %s8148_s30 }
  0x2d   :  { %172 = vrot.lane.b32.xlu0 %v8254_v10, %s8145_s27  ;;  %174 = vrot.lane.b32.xlu1 %v8265_v13, %s8145_s27 }
  0x31   :  { %176 = vrot.lane.b32.xlu0 %v8270_v14, %s8145_s27  ;;  %178 = vrot.lane.b32.xlu1 %v8280_v16, %s8145_s27 }
  0x35   :  { %346 = vrot.lane.b32.xlu0 %v8223_v7, %s8148_s30  ;;  %408 = vrot.lane.b32.xlu1 %v8219_v6, %s8149_s8 }
  0x39   :  { %410 = vrot.lane.b32.xlu0 %v8232_v8, %s8149_s8  ;;  %528 = vrot.lane.b32.xlu1 %v8219_v6, %s8150_s9 }
  0x3d   :  { %530 = vrot.lane.b32.xlu0 %v8232_v8, %s8150_s9  ;;  %232 = vrot.lane.b32.xlu1 %v8254_v10, %s8146_s28 }
  0x41   :  { %234 = vrot.lane.b32.xlu0 %v8265_v13, %s8146_s28  ;;  %236 = vrot.lane.b32.xlu1 %v8270_v14, %s8146_s28 }
  0x45   :  { %238 = vrot.lane.b32.xlu0 %v8280_v16, %s8146_s28  ;;  %406 = vrot.lane.b32.xlu1 %v8223_v7, %s8149_s8 }
  0x49   :  { %468 = vrot.lane.b32.xlu0 %v8219_v6, %s8151_s10  ;;  %470 = vrot.lane.b32.xlu1 %v8232_v8, %s8151_s10 }
  0x4d   :  { %526 = vrot.lane.b32.xlu0 %v8223_v7, %s8150_s9  ;;  %292 = vrot.lane.b32.xlu1 %v8254_v10, %s8147_s29 }
  0x51   :  { %294 = vrot.lane.b32.xlu0 %v8265_v13, %s8147_s29  ;;  %296 = vrot.lane.b32.xlu1 %v8270_v14, %s8147_s29 }
  0x55   :  { %298 = vrot.lane.b32.xlu0 %v8280_v16, %s8147_s29  ;;  %466 = vrot.lane.b32.xlu1 %v8223_v7, %s8151_s10 }
  0x59   :  { %120 = vrot.lane.b32.xlu0 %v8341_v19, %s8144_s26  ;;  %122 = vrot.lane.b32.xlu1 %v8345_v20, %s8144_s26 }
  0x5d   :  { %124 = vrot.lane.b32.xlu0 %v8354_v21, %s8144_s26  ;;  %126 = vrot.lane.b32.xlu1 %v8359_v22, %s8144_s26 }
  0x61   :  { %352 = vrot.lane.b32.xlu0 %v8254_v10, %s8148_s30  ;;  %354 = vrot.lane.b32.xlu1 %v8265_v13, %s8148_s30 }
  0x65   :  { %356 = vrot.lane.b32.xlu0 %v8270_v14, %s8148_s30  ;;  %358 = vrot.lane.b32.xlu1 %v8280_v16, %s8148_s30 }
  0x69   :  { %180 = vrot.lane.b32.xlu0 %v8341_v19, %s8145_s27  ;;  %182 = vrot.lane.b32.xlu1 %v8345_v20, %s8145_s27 }
  0x6d   :  { %184 = vrot.lane.b32.xlu0 %v8354_v21, %s8145_s27  ;;  %186 = vrot.lane.b32.xlu1 %v8359_v22, %s8145_s27 }
  0x71   :  { %412 = vrot.lane.b32.xlu0 %v8254_v10, %s8149_s8  ;;  %414 = vrot.lane.b32.xlu1 %v8265_v13, %s8149_s8 }
  0x75   :  { %416 = vrot.lane.b32.xlu0 %v8270_v14, %s8149_s8  ;;  %418 = vrot.lane.b32.xlu1 %v8280_v16, %s8149_s8 }
  0x79   :  { %532 = vrot.lane.b32.xlu0 %v8254_v10, %s8150_s9  ;;  %534 = vrot.lane.b32.xlu1 %v8265_v13, %s8150_s9 }
  0x7b   :  { %v8395_v24 = vpop.permute.xlu0 %108  ;;  %v8397_v25 = vpop.permute.xlu1 %106 }
  0x7d   :  { %536 = vrot.lane.b32.xlu0 %v8270_v14, %s8150_s9  ;;  %538 = vrot.lane.b32.xlu1 %v8280_v16, %s8150_s9 }
  0x7f   :  { %v8403_v26 = vpop.permute.xlu0 %110  ;;  %v8405_v27 = vpop.permute.xlu1 %168 }
  0x80   :  { %v138_v59 = vsel %vm136_vm3, %v8395_v24, %v8403_v26 }
  0x81   :  { %240 = vrot.lane.b32.xlu0 %v8341_v19, %s8146_s28  ;;  %242 = vrot.lane.b32.xlu1 %v8345_v20, %s8146_s28  ;;  %v573_v2 = vsel %vm571_vm1, %v8219_v6, %v138_v59 }
  0x83   :  { %v8411_v28 = vpop.permute.xlu0 %170  ;;  %v8413_v29 = vpop.permute.xlu1 %166 }
  0x84   :  { %v198_v60 = vsel %vm196_vm2, %v8405_v27, %v8411_v28  ;;  %v197_v0 = vsel %vm196_vm2, %v8413_v29, %v8405_v27 }
  0x85   :  { %244 = vrot.lane.b32.xlu0 %v8354_v21, %s8146_s28  ;;  %246 = vrot.lane.b32.xlu1 %v8359_v22, %s8146_s28  ;;  %v589_v5 = vsel %vm587_vm6, %v573_v2, %v198_v60  ;;  %v137_v2 = vsel %vm136_vm3, %v8397_v25, %v8395_v24 }
  0x86   :  { %v572_v27 = vsel %vm571_vm1, %v8223_v7, %v137_v2 }
  0x87   :  { %v8419_v30 = vpop.permute.xlu0 %228  ;;  %v8421_v31 = vpop.permute.xlu1 %230 }
  0x88   :  { %v258_v61 = vsel %vm256_vm4, %v8419_v30, %v8421_v31 }
  0x89   :  { %472 = vrot.lane.b32.xlu0 %v8254_v10, %s8151_s10  ;;  %474 = vrot.lane.b32.xlu1 %v8265_v13, %s8151_s10  ;;  %v605_v6 = vsel %vm603_vm8, %v589_v5, %v258_v61 }
  0x8b   :  { %v8427_v32 = vpop.permute.xlu0 %226  ;;  %v8429_v33 = vpop.permute.xlu1 %288 }
  0x8c   :  { %v257_v24 = vsel %vm256_vm4, %v8427_v32, %v8419_v30  ;;  %v588_v30 = vsel %vm587_vm6, %v572_v27, %v197_v0 }
  0x8d   :  { %476 = vrot.lane.b32.xlu0 %v8270_v14, %s8151_s10  ;;  %478 = vrot.lane.b32.xlu1 %v8280_v16, %s8151_s10 }
  0x8f   :  { %v8435_v34 = vpop.permute.xlu0 %290  ;;  %v8437_v35 = vpop.permute.xlu1 %112 }
  0x90   :  { %v318_v3 = vsel %vm316_vm5, %v8429_v33, %v8435_v34 }
  0x91   :  { %300 = vrot.lane.b32.xlu0 %v8341_v19, %s8147_s29  ;;  %302 = vrot.lane.b32.xlu1 %v8345_v20, %s8147_s29  ;;  %v621_v17 = vsel %vm619_vm10, %v605_v6, %v318_v3 }
  0x93   :  { %v8443_v36 = vpop.permute.xlu0 %114  ;;  %v8445_v37 = vpop.permute.xlu1 %116 }
  0x95   :  { %304 = vrot.lane.b32.xlu0 %v8354_v21, %s8147_s29  ;;  %306 = vrot.lane.b32.xlu1 %v8359_v22, %s8147_s29 }
  0x97   :  { %v8451_v38 = vpop.permute.xlu0 %118  ;;  %v8453_v39 = vpop.permute.xlu1 %286 }
  0x98   :  { %v317_v29 = vsel %vm316_vm5, %v8453_v39, %v8429_v33 }
  0x99   :  { %360 = vrot.lane.b32.xlu0 %v8341_v19, %s8148_s30  ;;  %362 = vrot.lane.b32.xlu1 %v8345_v20, %s8148_s30 }
  0x9b   :  { %v8459_v40 = vpop.permute.xlu0 %348  ;;  %v8461_v41 = vpop.permute.xlu1 %350 }
  0x9c   :  { %v378_v9 = vsel %vm376_vm7, %v8459_v40, %v8461_v41 }
  0x9d   :  { %364 = vrot.lane.b32.xlu0 %v8354_v21, %s8148_s30  ;;  %366 = vrot.lane.b32.xlu1 %v8359_v22, %s8148_s30  ;;  %v637_v61 = vsel %vm11444_vm12, %v621_v17, %v378_v9 }
  0x9f   :  { %v8467_v42 = vpop.permute.xlu0 %172  ;;  %v8469_v43 = vpop.permute.xlu1 %174 }
  0xa1   :  { %420 = vrot.lane.b32.xlu0 %v8341_v19, %s8149_s8  ;;  %422 = vrot.lane.b32.xlu1 %v8345_v20, %s8149_s8 }
  0xa3   :  { %v8475_v44 = vpop.permute.xlu0 %176  ;;  %v8477_v45 = vpop.permute.xlu1 %178 }
  0xa5   :  { %424 = vrot.lane.b32.xlu0 %v8354_v21, %s8149_s8  ;;  %426 = vrot.lane.b32.xlu1 %v8359_v22, %s8149_s8 }
  0xa7   :  { %v8483_v46 = vpop.permute.xlu0 %346  ;;  %v8485_v47 = vpop.permute.xlu1 %408 }
  0xa8   :  { %v377_v32 = vsel %vm376_vm7, %v8483_v46, %v8459_v40 }
  0xa9   :  { %540 = vrot.lane.b32.xlu0 %v8341_v19, %s8150_s9  ;;  %542 = vrot.lane.b32.xlu1 %v8345_v20, %s8150_s9 }
  0xab   :  { %v8491_v48 = vpop.permute.xlu0 %410  ;;  %v529_v49 = vpop.permute.xlu1 %528 }
  0xac   :  { %v438_v11 = vsel %vm436_vm9, %v8485_v47, %v8491_v48 }
  0xad   :  { %544 = vrot.lane.b32.xlu0 %v8354_v21, %s8150_s9  ;;  %546 = vrot.lane.b32.xlu1 %v8359_v22, %s8150_s9  ;;  %v653_v3 = vsel %vm651_vm13, %v637_v61, %v438_v11  ;;  %v604_v11 = vsel %vm603_vm8, %v588_v30, %v257_v24  ;;  %v8655_v24 = vrot.slane %v8334_v18, %v57_v15 }
  0xae   :  { %v620_v33 = vsel %vm619_vm10, %v604_v11, %v317_v29 }
  0xaf   :  { %v8497_v50 = vpop.permute.xlu0 %530  ;;  %v8499_v51 = vpop.permute.xlu1 %232  ;;  %v636_v39 = vsel %vm11444_vm12, %v620_v33, %v377_v32 }
  0xb0   :  { %v558_v52 = vsel %vm556_vm0, %v529_v49, %v8497_v50 }
  0xb1   :  { %480 = vrot.lane.b32.xlu0 %v8341_v19, %s8151_s10  ;;  %482 = vrot.lane.b32.xlu1 %v8345_v20, %s8151_s10 }
  0xb2   :  { %7982 = vmatprep.subr.msk.mxu0 %vm571_vm1, %v558_v52 }
  0xb3   :  { %v8508_v53 = vpop.permute.xlu0 %234  ;;  %v8510_v54 = vpop.permute.xlu1 %236 }
  0xb5   :  { %484 = vrot.lane.b32.xlu0 %v8354_v21, %s8151_s10  ;;  %486 = vrot.lane.b32.xlu1 %v8359_v22, %s8151_s10 }
  0xb7   :  { %v8526_v57 = vpop.permute.xlu0 %238  ;;  %v407_v58 = vpop.permute.xlu1 %406 }
  0xb8   :  { %v437_v7 = vsel %vm436_vm9, %v407_v58, %v8485_v47  ;;  %v8613_v47 = vld [vmem:[%s11433_s1] sm:$0xff] }
  0xb9   :  { %128 = vrot.lane.b32.xlu0 %v8519_v55, %s8144_s26  ;;  %130 = vrot.lane.b32.xlu1 %v8524_v56, %s8144_s26  ;;  %v652_v46 = vsel %vm651_vm13, %v636_v39, %v437_v7 }
  0xbb   :  { %v469_v62 = vpop.permute.xlu0 %468  ;;  %v8541_v63 = vpop.permute.xlu1 %470 }
  0xbc   :  { %v498_v52 = vsel %vm496_vm11, %v469_v62, %v8541_v63 }
  0xbd   :  { %188 = vrot.lane.b32.xlu0 %v8519_v55, %s8145_s27  ;;  %190 = vrot.lane.b32.xlu1 %v8524_v56, %s8145_s27  ;;  %v669_v25 = vsel %vm667_vm14, %v653_v3, %v498_v52  ;;  %v8650_v3 = vrot.slane %v8334_v18, %v53_v12 }
  0xbf   :  { %v527_v59 = vpop.permute.xlu0 %526  ;;  %v8563_v60 = vpop.permute.xlu1 %292 }
  0xc0   :  { %v557_v5 = vsel %vm556_vm0, %v527_v59, %v529_v49  ;;  %v11441_v49 = vmov 0  }
  0xc1   :  { %248 = vrot.lane.b32.xlu0 %v8519_v55, %s8146_s28  ;;  %250 = vrot.lane.b32.xlu1 %v8524_v56, %s8146_s28 }
  0xc2   :  { %7983 = vmatpush1.msk.msra.mxu0 %vm571_vm1, %v557_v5  ;;  %8120 = vset.pattern.permute.xlu0 %v11441_v49  ;;  %v139_v49 = vsel %vm136_vm3, %v8403_v26, %v8437_v35  ;;  %v142_v26 = vsel %vm136_vm3, %v8445_v37, %v8451_v38 }
  0xc3   :  { %754 = vmatprep.subr.mxu0 %v669_v25  ;;  %v8589_v9 = vpop.permute.xlu0 %294  ;;  %v8591_v6 = vpop.permute.xlu1 %296 }
  0xc5   :  { %308 = vrot.lane.b32.xlu0 %v8519_v55, %s8147_s29  ;;  %310 = vrot.lane.b32.xlu1 %v8524_v56, %s8147_s29 }
  0xc7   :  { %v8606_v0 = vpop.permute.xlu0 %298  ;;  %v467_v17 = vpop.permute.xlu1 %466 }
  0xc8   :  { %v497_v40 = vsel %vm496_vm11, %v467_v17, %v469_v62 }
  0xc9   :  { %368 = vrot.lane.b32.xlu0 %v8519_v55, %s8148_s30  ;;  %370 = vrot.lane.b32.xlu1 %v8524_v56, %s8148_s30  ;;  %v668_v58 = vsel %vm667_vm14, %v652_v46, %v497_v40 }
  0xca   :  { %755 = vmatpush1.msra.mxu0 %v668_v58 }
  0xcb   :  { %v8620_v52 = vpop.permute.xlu0 %120  ;;  %v8622_v62 = vpop.permute.xlu1 %122  ;;  %7984 = vmatmul.mubr.msk.f32.vlgmr.msra.gmra.mxu0 %vm690_vm15, %v8613_v47 }
  0xcc   :  { %930 = vmatprep.mubr.f32.mxu0 %v11442_v23 }
  0xcd   :  { %428 = vrot.lane.b32.xlu0 %v8519_v55, %s8149_s8  ;;  %430 = vrot.lane.b32.xlu1 %v8524_v56, %s8149_s8 }
  0xcf   :  { %v8631_v59 = vpop.permute.xlu0 %124  ;;  %v8633_v2 = vpop.permute.xlu1 %126 }
  0xd1   :  { %548 = vrot.lane.b32.xlu0 %v8519_v55, %s8150_s9  ;;  %550 = vrot.lane.b32.xlu1 %v8524_v56, %s8150_s9 }
  0xd3   :  { %v8639_v61 = vpop.permute.xlu0 %352  ;;  %v8641_v5 = vpop.permute.xlu1 %354 }
  0xd5   :  { %488 = vrot.lane.b32.xlu0 %v8519_v55, %s8151_s10  ;;  %490 = vrot.lane.b32.xlu1 %v8524_v56, %s8151_s10 }
  0xd7   :  { %v8657_v25 = vpop.permute.xlu0 %356  ;;  %v8659_v27 = vpop.permute.xlu1 %358 }
  0xd9   :  { %132 = vrot.lane.b32.xlu0 %v8650_v3, %s8144_s26  ;;  %134 = vrot.lane.b32.xlu1 %v8655_v24, %s8144_s26 }
  0xdb   :  { %v8665_v29 = vpop.permute.xlu0 %180  ;;  %v8667_v30 = vpop.permute.xlu1 %182 }
  0xdd   :  { %192 = vrot.lane.b32.xlu0 %v8650_v3, %s8145_s27  ;;  %194 = vrot.lane.b32.xlu1 %v8655_v24, %s8145_s27 }
  0xdf   :  { %v8673_v12 = vpop.permute.xlu0 %184  ;;  %v8675_v15 = vpop.permute.xlu1 %186 }
  0xe1   :  { %252 = vrot.lane.b32.xlu0 %v8650_v3, %s8146_s28  ;;  %254 = vrot.lane.b32.xlu1 %v8655_v24, %s8146_s28 }
  0xe3   :  { %v413_v18 = vpop.permute.xlu0 %412  ;;  %v8681_v32 = vpop.permute.xlu1 %414 }
  0xe5   :  { %312 = vrot.lane.b32.xlu0 %v8650_v3, %s8147_s29  ;;  %314 = vrot.lane.b32.xlu1 %v8655_v24, %s8147_s29 }
  0xe7   :  { %v8687_v11 = vpop.permute.xlu0 %416  ;;  %v8689_v7 = vpop.permute.xlu1 %418 }
  0xe9   :  { %372 = vrot.lane.b32.xlu0 %v8650_v3, %s8148_s30  ;;  %374 = vrot.lane.b32.xlu1 %v8655_v24, %s8148_s30 }
  0xeb   :  { %v533_v33 = vpop.permute.xlu0 %532  ;;  %v535_v39 = vpop.permute.xlu1 %534 }
  0xec   :  { %v560_v17 = vsel %vm556_vm0, %v533_v33, %v535_v39  ;;  %v559_v40 = vsel %vm556_vm0, %v8497_v50, %v533_v33  ;;  %v140_v33 = vsel %vm136_vm3, %v8437_v35, %v8443_v36  ;;  %v199_v35 = vsel %vm196_vm2, %v8411_v28, %v8467_v42 }
  0xed   :  { %432 = vrot.lane.b32.xlu0 %v8650_v3, %s8149_s8  ;;  %434 = vrot.lane.b32.xlu1 %v8655_v24, %s8149_s8  ;;  %v201_v28 = vsel %vm196_vm2, %v8469_v43, %v8475_v44 }
  0xee   :  { %7985 = vmatprep.subr.msk.mxu1 %vm571_vm1, %v560_v17  ;;  %v141_v17 = vsel %vm136_vm3, %v8443_v36, %v8445_v37  ;;  %v200_v36 = vsel %vm196_vm2, %v8467_v42, %v8469_v43  ;;  %v575_v37 = vsel %vm571_vm1, %v8254_v10, %v140_v33  ;;  %v202_v42 = vsel %vm196_vm2, %v8475_v44, %v8477_v45  ;;  %v684_v44 = vld [vmem:[%s11434_s2] sm:$0xff]  ;;  %s8156_s2 = smov 94  }
  0xef   :  { %7986 = vmatpush1.msk.msra.mxu1 %vm571_vm1, %v559_v40  ;;  %v537_v46 = vpop.permute.xlu0 %536  ;;  %v8704_v58 = vpop.permute.xlu1 %538  ;;  %v260_v10 = vsel %vm256_vm4, %v8499_v51, %v8508_v53  ;;  %v591_v43 = vsel %vm587_vm6, %v575_v37, %v200_v36  ;;  %v319_v33 = vsel %vm316_vm5, %v8435_v34, %v8563_v60  ;;  %v380_v34 = vsel %vm376_vm7, %v8639_v61, %v8641_v5 }
  0xf0   :  { %v561_v23 = vsel %vm556_vm0, %v535_v39, %v537_v46  ;;  %v562_v50 = vsel %vm556_vm0, %v537_v46, %v8704_v58  ;;  %v574_v39 = vsel %vm571_vm1, %v8232_v8, %v139_v49  ;;  %v576_v8 = vsel %vm571_vm1, %v8265_v13, %v141_v17 }
  0xf1   :  { %552 = vrot.lane.b32.xlu0 %v8650_v3, %s8150_s9  ;;  %554 = vrot.lane.b32.xlu1 %v8655_v24, %s8150_s9  ;;  %v259_v49 = vsel %vm256_vm4, %v8421_v31, %v8499_v51  ;;  %v590_v13 = vsel %vm587_vm6, %v574_v39, %v199_v35  ;;  %v262_v31 = vsel %vm256_vm4, %v8510_v54, %v8526_v57 }
  0xf2   :  { %7988 = vmatprep.subr.msk.mxu0 %vm571_vm1, %v562_v50  ;;  %v592_v51 = vsel %vm587_vm6, %v576_v8, %v201_v28  ;;  %v607_v39 = vsel %vm603_vm8, %v591_v43, %v260_v10  ;;  %v379_v35 = vsel %vm376_vm7, %v8461_v41, %v8639_v61  ;;  %v439_v37 = vsel %vm436_vm9, %v8491_v48, %v413_v18 }
  0xf3   :  { %7989 = vmatpush1.msk.msra.mxu0 %vm571_vm1, %v561_v23  ;;  %v8735_v40 = vpop.permute.xlu0 %240  ;;  %v8737_v46 = vpop.permute.xlu1 %242  ;;  %v577_v23 = vsel %vm571_vm1, %v8270_v14, %v142_v26  ;;  %v261_v14 = vsel %vm256_vm4, %v8508_v53, %v8510_v54  ;;  %v320_v53 = vsel %vm316_vm5, %v8563_v60, %v8589_v9  ;;  %v606_v54 = vsel %vm603_vm8, %v590_v13, %v259_v49 }
  0xf4   :  { %v593_v50 = vsel %vm587_vm6, %v577_v23, %v202_v42  ;;  %v608_v36 = vsel %vm603_vm8, %v592_v51, %v261_v14  ;;  %v440_v8 = vsel %vm436_vm9, %v413_v18, %v8681_v32  ;;  %v622_v28 = vsel %vm619_vm10, %v606_v54, %v319_v33 }
  0xf5   :  { %492 = vrot.lane.b32.xlu0 %v8650_v3, %s8151_s10  ;;  %494 = vrot.lane.b32.xlu1 %v8655_v24, %s8151_s10  ;;  %v609_v60 = vsel %vm603_vm8, %v593_v50, %v262_v31  ;;  %v623_v42 = vsel %vm619_vm10, %v607_v39, %v320_v53  ;;  %v321_v41 = vsel %vm316_vm5, %v8589_v9, %v8591_v6 }
  0xf6   :  { %v322_v61 = vsel %vm316_vm5, %v8591_v6, %v8606_v0  ;;  %v638_v23 = vsel %vm11444_vm12, %v622_v28, %v379_v35  ;;  %v639_v48 = vsel %vm11444_vm12, %v623_v42, %v380_v34  ;;  %v381_v18 = vsel %vm376_vm7, %v8641_v5, %v8657_v25 }
  0xf7   :  { %v8780_v17 = vpop.permute.xlu0 %244  ;;  %v8782_v26 = vpop.permute.xlu1 %246  ;;  %v382_v49 = vsel %vm376_vm7, %v8657_v25, %v8659_v27  ;;  %v655_v6 = vsel %vm651_vm13, %v639_v48, %v440_v8  ;;  %v654_v14 = vsel %vm651_vm13, %v638_v23, %v439_v37  ;;  %v441_v31 = vsel %vm436_vm9, %v8681_v32, %v8687_v11 }
  0xf8   :  { %v442_v5 = vsel %vm436_vm9, %v8687_v11, %v8689_v7  ;;  %v625_v51 = vsel %vm619_vm10, %v609_v60, %v322_v61  ;;  %v11449_v60 = vmov 0.0  }
  0xf9   :  { %687 = vperm.xlu0 %8120, %v684_v44   ;;  %v641_v33 = vsel %vm11444_vm12, %v625_v51, %v382_v49 }
  0xfa   :  { %v657_v35 = vsel %vm651_vm13, %v641_v33, %v442_v5 }
  0xfb   :  { %v473_v10 = vpop.permute.xlu0 %472  ;;  %v475_v13 = vpop.permute.xlu1 %474 }
  0xfc   :  { %v499_v9 = vsel %vm496_vm11, %v8541_v63, %v473_v10  ;;  %v500_v43 = vsel %vm496_vm11, %v473_v10, %v475_v13  ;;  %v624_v63 = vsel %vm619_vm10, %v608_v36, %v321_v41 }
  0xfd   :  { %v671_v25 = vsel %vm667_vm14, %v655_v6, %v500_v43  ;;  %v670_v44 = vsel %vm667_vm14, %v654_v14, %v499_v9  ;;  %v640_v50 = vsel %vm11444_vm12, %v624_v63, %v381_v18  ;;  %v143_v9 = vsel %vm136_vm3, %v8451_v38, %v8620_v52 }
  0xfe   :  { %825 = vmatprep.subr.mxu1 %v671_v25  ;;  %v656_v54 = vsel %vm651_vm13, %v640_v50, %v441_v31  ;;  %v144_v43 = vsel %vm136_vm3, %v8620_v52, %v8622_v62  ;;  %v145_v6 = vsel %vm136_vm3, %v8622_v62, %v8631_v59  ;;  %v146_v14 = vsel %vm136_vm3, %v8631_v59, %v8633_v2 }
  0xff   :  { %v477_v53 = vpop.permute.xlu0 %476  ;;  %826 = vmatpush1.msra.mxu1 %v670_v44  ;;  %v8831_v32 = vpop.permute.xlu1 %478  ;;  %v203_v31 = vsel %vm196_vm2, %v8477_v45, %v8665_v29  ;;  %v204_v38 = vsel %vm196_vm2, %v8665_v29, %v8667_v30  ;;  %v578_v5 = vsel %vm571_vm1, %v8280_v16, %v143_v9  ;;  %v579_v52 = vsel %vm571_vm1, %v8341_v19, %v144_v43 }
 0x100   :  { %v501_v11 = vsel %vm496_vm11, %v475_v13, %v477_v53  ;;  %v502_v39 = vsel %vm496_vm11, %v477_v53, %v8831_v32  ;;  %7987 = vmatmul.mubr.msk.f32.vlgmr.msra.gmra.mxu1 %vm690_vm15, %v8613_v47  ;;  %v205_v62 = vsel %vm196_vm2, %v8667_v30, %v8673_v12  ;;  %v206_v59 = vsel %vm196_vm2, %v8673_v12, %v8675_v15 }
 0x101   :  { %v673_v34 = vsel %vm667_vm14, %v657_v35, %v502_v39  ;;  %v672_v36 = vsel %vm667_vm14, %v656_v54, %v501_v11  ;;  %1001 = vmatprep.mubr.f32.mxu1 %v11449_v60  ;;  %v263_v29 = vsel %vm256_vm4, %v8526_v57, %v8735_v40  ;;  %v264_v16 = vsel %vm256_vm4, %v8735_v40, %v8737_v46 }
 0x102   :  { %896 = vmatprep.subr.mxu0 %v673_v34  ;;  %v580_v30 = vsel %vm571_vm1, %v8345_v20, %v145_v6  ;;  %v581_v12 = vsel %vm571_vm1, %v8354_v21, %v146_v14  ;;  %v594_v63 = vsel %vm587_vm6, %v578_v5, %v203_v31  ;;  %v595_v51 = vsel %vm587_vm6, %v579_v52, %v204_v38 }
 0x103   :  { %v301_v37 = vpop.permute.xlu0 %300  ;;  %897 = vmatpush1.msra.mxu0 %v672_v36  ;;  %v303_v8 = vpop.permute.xlu1 %302  ;;  %v596_v57 = vsel %vm587_vm6, %v580_v30, %v205_v62  ;;  %v597_v40 = vsel %vm587_vm6, %v581_v12, %v206_v59  ;;  %v266_v20 = vsel %vm256_vm4, %v8780_v17, %v8782_v26  ;;  %v610_v21 = vsel %vm603_vm8, %v594_v63, %v263_v29 }
 0x104   :  { %7990 = vmatmul.mubr.msk.f32.vlgmr.msra.gmra.mxu0 %vm690_vm15, %v8613_v47  ;;  %v611_v50 = vsel %vm603_vm8, %v595_v51, %v264_v16  ;;  %v323_v33 = vsel %vm316_vm5, %v8606_v0, %v301_v37  ;;  %v324_v53 = vsel %vm316_vm5, %v301_v37, %v303_v8  ;;  %v613_v36 = vsel %vm603_vm8, %v597_v40, %v266_v20 }
 0x105   :  { %1072 = vmatprep.mubr.f32.mxu0 %v11449_v60 }
 0x107   :  { %v305_v28 = vpop.permute.xlu0 %304  ;;  %v8846_v42 = vpop.permute.xlu1 %306 }
 0x108   :  { %v325_v9 = vsel %vm316_vm5, %v303_v8, %v305_v28  ;;  %v326_v43 = vsel %vm316_vm5, %v305_v28, %v8846_v42 }
 0x10b   :  { %v361_v41 = vpop.permute.xlu0 %360  ;;  %v363_v61 = vpop.permute.xlu1 %362 }
 0x10c   :  { %v384_v39 = vsel %vm376_vm7, %v361_v41, %v363_v61 }
 0x10f   :  { %v365_v23 = vpop.permute.xlu0 %364  ;;  %v8848_v48 = vpop.permute.xlu1 %366 }
 0x113   :  { %v421_v18 = vpop.permute.xlu0 %420  ;;  %v423_v49 = vpop.permute.xlu1 %422 }
 0x114   :  { %v443_v0 = vsel %vm436_vm9, %v8689_v7, %v421_v18  ;;  %v444_v37 = vsel %vm436_vm9, %v421_v18, %v423_v49  ;;  %v385_v7 = vsel %vm376_vm7, %v363_v61, %v365_v23  ;;  %v386_v18 = vsel %vm376_vm7, %v365_v23, %v8848_v48 }
 0x117   :  { %v425_v10 = vpop.permute.xlu0 %424  ;;  %v8850_v13 = vpop.permute.xlu1 %426 }
 0x118   :  { %v445_v62 = vsel %vm436_vm9, %v423_v49, %v425_v10  ;;  %v446_v59 = vsel %vm436_vm9, %v425_v10, %v8850_v13 }
 0x11b   :  { %v541_v25 = vpop.permute.xlu0 %540  ;;  %v543_v45 = vpop.permute.xlu1 %542 }
 0x11c   :  { %v563_v19 = vsel %vm556_vm0, %v8704_v58, %v541_v25  ;;  %v564_v44 = vsel %vm556_vm0, %v541_v25, %v543_v45  ;;  %v265_v58 = vsel %vm256_vm4, %v8737_v46, %v8780_v17  ;;  %v383_v46 = vsel %vm376_vm7, %v8659_v27, %v361_v41 }
 0x11d   :  { %7991 = vmatprep.subr.msk.mxu1 %vm571_vm1, %v564_v44  ;;  %v612_v34 = vsel %vm603_vm8, %v596_v57, %v265_v58  ;;  %v626_v27 = vsel %vm619_vm10, %v610_v21, %v323_v33  ;;  %v627_v41 = vsel %vm619_vm10, %v611_v50, %v324_v53 }
 0x11e   :  { %7992 = vmatpush1.msk.msra.mxu1 %vm571_vm1, %v563_v19  ;;  %v642_v6 = vsel %vm11444_vm12, %v626_v27, %v383_v46  ;;  %v643_v14 = vsel %vm11444_vm12, %v627_v41, %v384_v39  ;;  %v628_v25 = vsel %vm619_vm10, %v612_v34, %v325_v9 }
 0x11f   :  { %v545_v54 = vpop.permute.xlu0 %544  ;;  %v8910_v11 = vpop.permute.xlu1 %546  ;;  %v658_v5 = vsel %vm651_vm13, %v642_v6, %v443_v0  ;;  %v659_v52 = vsel %vm651_vm13, %v643_v14, %v444_v37 }
 0x120   :  { %v565_v17 = vsel %vm556_vm0, %v543_v45, %v545_v54  ;;  %v566_v35 = vsel %vm556_vm0, %v545_v54, %v8910_v11  ;;  %v629_v45 = vsel %vm619_vm10, %v613_v36, %v326_v43 }
 0x121   :  { %7994 = vmatprep.subr.msk.mxu0 %vm571_vm1, %v566_v35  ;;  %v645_v29 = vsel %vm11444_vm12, %v629_v45, %v386_v18 }
 0x122   :  { %7995 = vmatpush1.msk.msra.mxu0 %vm571_vm1, %v565_v17  ;;  %v661_v30 = vsel %vm651_vm13, %v645_v29, %v446_v59 }
 0x123   :  { %v481_v31 = vpop.permute.xlu0 %480  ;;  %v483_v38 = vpop.permute.xlu1 %482 }
 0x124   :  { %v503_v8 = vsel %vm496_vm11, %v8831_v32, %v481_v31  ;;  %v504_v28 = vsel %vm496_vm11, %v481_v31, %v483_v38  ;;  %v644_v32 = vsel %vm11444_vm12, %v628_v25, %v385_v7 }
 0x125   :  { %v675_v61 = vsel %vm667_vm14, %v659_v52, %v504_v28  ;;  %v674_v23 = vsel %vm667_vm14, %v658_v5, %v503_v8  ;;  %v660_v49 = vsel %vm651_vm13, %v644_v32, %v445_v62 }
 0x126   :  { %967 = vmatprep.subr.mxu1 %v675_v61 }
 0x127   :  { %v485_v16 = vpop.permute.xlu0 %484  ;;  %968 = vmatpush1.msra.mxu1 %v674_v23  ;;  %v487_v19 = vpop.permute.xlu1 %486 }
 0x128   :  { %v505_v10 = vsel %vm496_vm11, %v483_v38, %v485_v16  ;;  %v506_v44 = vsel %vm496_vm11, %v485_v16, %v487_v19  ;;  %7993 = vmatmul.mubr.msk.f32.vlgmr.msra.gmra.mxu1 %vm690_vm15, %v8613_v47 }
 0x129   :  { %v677_v12 = vsel %vm667_vm14, %v661_v30, %v506_v44  ;;  %v676_v63 = vsel %vm667_vm14, %v660_v49, %v505_v10  ;;  %1143 = vmatprep.mubr.f32.mxu1 %v11449_v60 }
 0x12a   :  { %1038 = vmatprep.subr.mxu0 %v677_v12 }
 0x12b   :  { %v129_v51 = vpop.permute.xlu0 %128  ;;  %1039 = vmatpush1.msra.mxu0 %v676_v63  ;;  %v8958_v57 = vpop.permute.xlu1 %130 }
 0x12c   :  { %7996 = vmatmul.mubr.msk.f32.vlgmr.msra.gmra.mxu0 %vm690_vm15, %v8613_v47  ;;  %v148_v46 = vsel %vm136_vm3, %v129_v51, %v8958_v57  ;;  %v147_v39 = vsel %vm136_vm3, %v8633_v2, %v129_v51 }
 0x12d   :  { %1214 = vmatprep.mubr.f32.mxu0 %v11449_v60  ;;  %v583_v34 = vsel %vm571_vm1, %v8519_v55, %v148_v46  ;;  %v582_v37 = vsel %vm571_vm1, %v8359_v22, %v147_v39 }
 0x12f   :  { %v189_v40 = vpop.permute.xlu0 %188  ;;  %v8963_v58 = vpop.permute.xlu1 %190 }
 0x130   :  { %v207_v36 = vsel %vm196_vm2, %v8675_v15, %v189_v40  ;;  %v208_v0 = vsel %vm196_vm2, %v189_v40, %v8963_v58 }
 0x131   :  { %v598_v41 = vsel %vm587_vm6, %v582_v37, %v207_v36  ;;  %v599_v9 = vsel %vm587_vm6, %v583_v34, %v208_v0 }
 0x133   :  { %v249_v20 = vpop.permute.xlu0 %248  ;;  %v8965_v21 = vpop.permute.xlu1 %250 }
 0x134   :  { %v267_v27 = vsel %vm256_vm4, %v8782_v26, %v249_v20  ;;  %v268_v2 = vsel %vm256_vm4, %v249_v20, %v8965_v21 }
 0x135   :  { %v615_v18 = vsel %vm603_vm8, %v599_v9, %v268_v2 }
 0x137   :  { %v309_v50 = vpop.permute.xlu0 %308  ;;  %v8967_v33 = vpop.permute.xlu1 %310 }
 0x138   :  { %v327_v55 = vsel %vm316_vm5, %v8846_v42, %v309_v50  ;;  %v328_v15 = vsel %vm316_vm5, %v309_v50, %v8967_v33  ;;  %v614_v42 = vsel %vm603_vm8, %v598_v41, %v267_v27 }
 0x139   :  { %v631_v5 = vsel %vm619_vm10, %v615_v18, %v328_v15 }
 0x13b   :  { %v369_v53 = vpop.permute.xlu0 %368  ;;  %v8969_v54 = vpop.permute.xlu1 %370 }
 0x13c   :  { %v387_v22 = vsel %vm376_vm7, %v8848_v48, %v369_v53  ;;  %v388_v26 = vsel %vm376_vm7, %v369_v53, %v8969_v54  ;;  %v630_v48 = vsel %vm619_vm10, %v614_v42, %v327_v55 }
 0x13d   :  { %v647_v8 = vsel %vm11444_vm12, %v631_v5, %v388_v26 }
 0x13f   :  { %v429_v17 = vpop.permute.xlu0 %428  ;;  %v8975_v35 = vpop.permute.xlu1 %430 }
 0x140   :  { %v447_v31 = vsel %vm436_vm9, %v8850_v13, %v429_v17  ;;  %v448_v38 = vsel %vm436_vm9, %v429_v17, %v8975_v35 }
 0x141   :  { %v663_v61 = vsel %vm651_vm13, %v647_v8, %v448_v38 }
 0x143   :  { %v549_v43 = vpop.permute.xlu0 %548  ;;  %v8995_v6 = vpop.permute.xlu1 %550 }
 0x144   :  { %v567_v14 = vsel %vm556_vm0, %v8910_v11, %v549_v43  ;;  %v568_v7 = vsel %vm556_vm0, %v549_v43, %v8995_v6  ;;  %v646_v11 = vsel %vm11444_vm12, %v630_v48, %v387_v22  ;;  %vm8154_vm12 = vmmov 0  }
 0x145   :  { %7997 = vmatprep.subr.msk.mxu1 %vm571_vm1, %v568_v7  ;;  %v662_v13 = vsel %vm651_vm13, %v646_v11, %v447_v31 }
 0x146   :  { %7998 = vmatpush1.msk.msra.mxu1 %vm571_vm1, %v567_v14 }
 0x147   :  { %v489_v28 = vpop.permute.xlu0 %488  ;;  %v9017_v52 = vpop.permute.xlu1 %490 }
 0x148   :  { %v507_v62 = vsel %vm496_vm11, %v487_v19, %v489_v28  ;;  %v508_v59 = vsel %vm496_vm11, %v489_v28, %v9017_v52 }
 0x149   :  { %v679_v23 = vsel %vm667_vm14, %v663_v61, %v508_v59  ;;  %v678_v25 = vsel %vm667_vm14, %v662_v13, %v507_v62 }
 0x14a   :  { %1109 = vmatprep.subr.mxu1 %v679_v23 }
 0x14b   :  { %v133_v45 = vpop.permute.xlu0 %132  ;;  %1110 = vmatpush1.msra.mxu1 %v678_v25  ;;  %v135_v32 = vpop.permute.xlu1 %134 }
 0x14c   :  { %7999 = vmatmul.mubr.msk.f32.vlgmr.msra.gmra.mxu1 %vm690_vm15, %v8613_v47  ;;  %8073 = vmatprep.subr.mxu1 %v11449_v60  ;;  %v150_v63 = vsel %vm136_vm3, %v133_v45, %v135_v32  ;;  %v149_v51 = vsel %vm136_vm3, %v8958_v57, %v133_v45  ;;  %v586_v40 = vsel %vm571_vm1, %v8655_v24, %v135_v32 }
 0x14d   :  { %8077 = vmatprep.mubr.msk.f32.mxu1 %vm8154_vm12, %v11449_v60  ;;  %v585_v20 = vsel %vm571_vm1, %v8650_v3, %v150_v63  ;;  %v584_v57 = vsel %vm571_vm1, %v8524_v56, %v149_v51  ;;  %vm5322_vm12 = vcmask 1041409  }
 0x14f   :  { %v193_v29 = vpop.permute.xlu0 %192  ;;  %v195_v16 = vpop.permute.xlu1 %194 }
 0x150   :  { %v209_v50 = vsel %vm196_vm2, %v8963_v58, %v193_v29  ;;  %v210_v53 = vsel %vm196_vm2, %v193_v29, %v195_v16  ;;  %v602_v24 = vsel %vm587_vm6, %v586_v40, %v195_v16 }
 0x151   :  { %v600_v36 = vsel %vm587_vm6, %v584_v57, %v209_v50  ;;  %v601_v3 = vsel %vm587_vm6, %v585_v20, %v210_v53 }
 0x153   :  { %v253_v19 = vpop.permute.xlu0 %252  ;;  %v255_v49 = vpop.permute.xlu1 %254 }
 0x154   :  { %v269_v17 = vsel %vm256_vm4, %v8965_v21, %v253_v19  ;;  %v270_v34 = vsel %vm256_vm4, %v253_v19, %v255_v49  ;;  %v618_v58 = vsel %vm603_vm8, %v602_v24, %v255_v49 }
 0x155   :  { %v616_v37 = vsel %vm603_vm8, %v600_v36, %v269_v17  ;;  %v617_v27 = vsel %vm603_vm8, %v601_v3, %v270_v34  ;;  %vm5310_vm8 = vcmask 1042434  }
 0x157   :  { %v313_v10 = vpop.permute.xlu0 %312  ;;  %v315_v44 = vpop.permute.xlu1 %314 }
 0x158   :  { %v330_v0 = vsel %vm316_vm5, %v313_v10, %v315_v44  ;;  %v329_v21 = vsel %vm316_vm5, %v8967_v33, %v313_v10  ;;  %v634_v33 = vsel %vm619_vm10, %v618_v58, %v315_v44  ;;  %vm11450_vm5 = vcmask 1044480  }
 0x159   :  { %v633_v22 = vsel %vm619_vm10, %v617_v27, %v330_v0  ;;  %vm11451_vm6 = vmmov %vm11450_vm5 }
 0x15b   :  { %v373_v30 = vpop.permute.xlu0 %372  ;;  %v375_v12 = vpop.permute.xlu1 %374 }
 0x15c   :  { %v390_v2 = vsel %vm376_vm7, %v373_v30, %v375_v12  ;;  %v389_v9 = vsel %vm376_vm7, %v8969_v54, %v373_v30  ;;  %v632_v54 = vsel %vm619_vm10, %v616_v37, %v329_v21  ;;  %vm5314_vm10 = vcmask 1044484  }
 0x15d   :  { %v649_v14 = vsel %vm11450_vm5, %v633_v22, %v390_v2 }
 0x15f   :  { %v433_v46 = vpop.permute.xlu0 %432  ;;  %v435_v39 = vpop.permute.xlu1 %434 }
 0x160   :  { %v450_v55 = vsel %vm436_vm9, %v433_v46, %v435_v39  ;;  %v449_v26 = vsel %vm436_vm9, %v8975_v35, %v433_v46  ;;  %vm5312_vm9 = vcmask 1043459  }
 0x161   :  { %v665_v35 = vsel %vm651_vm13, %v649_v14, %v450_v55 }
 0x163   :  { %v553_v56 = vpop.permute.xlu0 %552  ;;  %v555_v41 = vpop.permute.xlu1 %554 }
 0x164   :  { %v569_v15 = vsel %vm556_vm0, %v8995_v6, %v553_v56  ;;  %v570_v43 = vsel %vm556_vm0, %v553_v56, %v555_v41  ;;  %8074 = vmatpush3.msk.msra.mxu1 %vm571_vm1, %v555_v41  ;;  %v650_v6 = vsel %vm11451_vm6, %v634_v33, %v375_v12  ;;  %vm11452_vm0 = vmmov %vm11450_vm5  ;;  %vm5986_vm5 = vcmask 900096  }
 0x165   :  { %8000 = vmatprep.subr.msk.mxu0 %vm571_vm1, %v570_v43  ;;  %8075 = vmatprep.subr.mxu1 %v11449_v60  ;;  %v648_v7 = vsel %vm11452_vm0, %v632_v54, %v389_v9  ;;  %v666_v42 = vsel %vm651_vm13, %v650_v6, %v435_v39  ;;  %vm5966_vm6 = vcmask 908288   ;;  %vm5946_vm0 = vcmask 916480  }
 0x166   :  { %8001 = vmatpush1.msk.msra.mxu0 %vm571_vm1, %v569_v15  ;;  %v664_v11 = vsel %vm651_vm13, %v648_v7, %v449_v26  ;;  %vm5318_vm13 = vcmask 1046534  }
 0x167   :  { %v493_v18 = vpop.permute.xlu0 %492  ;;  %v495_v31 = vpop.permute.xlu1 %494 }
 0x168   :  { %v509_v38 = vsel %vm496_vm11, %v9017_v52, %v493_v18  ;;  %v510_v48 = vsel %vm496_vm11, %v493_v18, %v495_v31  ;;  %v682_v5 = vsel %vm667_vm14, %v666_v42, %v495_v31  ;;  %vm5316_vm11 = vcmask 1045509  }
 0x169   :  { %8076 = vmatpush3.msra.mxu1 %v682_v5  ;;  %v681_v8 = vsel %vm667_vm14, %v665_v35, %v510_v48  ;;  %v680_v28 = vsel %vm667_vm14, %v664_v11, %v509_v38 }
 0x16a   :  { %1180 = vmatprep.subr.mxu0 %v681_v8  ;;  %8078 = vmatmul.mubr.msk.f32.vlgmr.msra.gmra.mxu1 %vm690_vm15, %v8613_v47 }
 0x16b   :  { %1181 = vmatpush1.msra.mxu0 %v680_v28  ;;  %7696 = vmatprep.mubr.f32.mxu1 %v11449_v60 }
 0x16c   :  { %8002 = vmatmul.mubr.msk.f32.vlgmr.msra.gmra.mxu0 %vm690_vm15, %v8613_v47  ;;  %vm11447_vm15 = vcmask 1047559  }
 0x16d   :  { %6140 = vmatprep.mubr.f32.mxu0 %v11449_v60 }
 0x174   :  { %v688_v52 = vpop.permute.xlu0 %687 }
 0x18b   :  { %v790_v13 = vpop.f32.mrf.mxu0 }
 0x18c   :  { %v9088_v62 = vadd.f32 %v790_v13, %v688_v52 }
 0x18d   :  { %v792_v23 = vpop.f32.mrf.mxu0 }
 0x18e   :  { %v1291_v59 = vmax.f32 %v9088_v62, 0.0  ;;  %v793_v47 = vadd.f32 %v792_v23, %v688_v52 }
 0x190   :  { %1321 = vrot.lane.b32.xlu0 %v1291_v59, %s8144_s26  ;;  %v1292_v10 = vmax.f32 %v793_v47, 0.0 }
 0x1c0   :  { %v861_v61 = vpop.f32.mrf.mxu1 }
 0x1c1   :  { %v9094_v25 = vadd.f32 %v861_v61, %v688_v52 }
 0x1c2   :  { %v863_v45 = vpop.f32.mrf.mxu1 }
 0x1c3   :  { %v1293_v32 = vmax.f32 %v9094_v25, 0.0  ;;  %v9097_v29 = vadd.f32 %v863_v45, %v688_v52 }
 0x1c4   :  { %v932_v16 = vpop.f32.mrf.mxu0 }
 0x1c5   :  { %v1294_v19 = vmax.f32 %v9097_v29, 0.0  ;;  %v9100_v49 = vadd.f32 %v932_v16, %v688_v52  ;;  %1325 = vrot.lane.b32.xlu0 %v1293_v32, %s8144_s26 }
 0x1c6   :  { %v934_v63 = vpop.f32.mrf.mxu0 }
 0x1c7   :  { %v1295_v44 = vmax.f32 %v9100_v49, 0.0  ;;  %1327 = vrot.lane.b32.xlu1 %v1294_v19, %s8144_s26  ;;  %v935_v53 = vadd.f32 %v934_v63, %v688_v52 }
 0x1c9   :  { %1329 = vrot.lane.b32.xlu0 %v1295_v44, %s8144_s26  ;;  %v1296_v34 = vmax.f32 %v935_v53, 0.0 }
 0x1cb   :  { %1323 = vrot.lane.b32.xlu1 %v1292_v10, %s8144_s26 }
 0x1e8   :  { %v1003_v30 = vpop.f32.mrf.mxu1 }
 0x1e9   :  { %v9113_v12 = vadd.f32 %v1003_v30, %v688_v52 }
 0x1ea   :  { %v1005_v51 = vpop.f32.mrf.mxu1 }
 0x1eb   :  { %v1297_v40 = vmax.f32 %v9113_v12, 0.0  ;;  %v9116_v20 = vadd.f32 %v1005_v51, %v688_v52 }
 0x1ec   :  { %v1074_v50 = vpop.f32.mrf.mxu0 }
 0x1ed   :  { %v1298_v46 = vmax.f32 %v9116_v20, 0.0  ;;  %1333 = vrot.lane.b32.xlu0 %v1297_v40, %s8144_s26  ;;  %v9127_v57 = vadd.f32 %v1074_v50, %v688_v52 }
 0x1ee   :  { %v1076_v39 = vpop.f32.mrf.mxu0 }
 0x1ef   :  { %v9122_v17 = vadd.f32 %v1076_v39, %v688_v52  ;;  %1335 = vrot.lane.b32.xlu1 %v1298_v46, %s8144_s26  ;;  %v1299_v36 = vmax.f32 %v9127_v57, 0.0 }
 0x1f1   :  { %v1300_v24 = vmax.f32 %v9122_v17, 0.0 }
 0x1f3   :  { %1331 = vrot.lane.b32.xlu1 %v1296_v34, %s8144_s26  ;;  %1339 = vrot.lane.b32.xlu0 %v1300_v24, %s8144_s26 }
 0x1f7   :  { %1337 = vrot.lane.b32.xlu1 %v1299_v36, %s8144_s26 }
 0x202   :  { %v1322_v26 = vpop.permute.xlu0 %1321 }
 0x20c   :  { %v1145_v3 = vpop.f32.mrf.mxu1 }
 0x20d   :  { %v9136_v58 = vadd.f32 %v1145_v3, %v688_v52 }
 0x20e   :  { %v1147_v0 = vpop.f32.mrf.mxu1 }
 0x20f   :  { %v1301_v37 = vmax.f32 %v9136_v58, 0.0  ;;  %v9139_v27 = vadd.f32 %v1147_v0, %v688_v52 }
 0x211   :  { %1341 = vrot.lane.b32.xlu1 %v1301_v37, %s8144_s26  ;;  %v1302_v21 = vmax.f32 %v9139_v27, 0.0 }
 0x215   :  { %1343 = vrot.lane.b32.xlu1 %v1302_v21, %s8144_s26 }
 0x22a   :  { %v1287_v2 = vpop.f32.mrf.mxu1 }
 0x22b   :  { %v1288_v15 = vadd.f32 %v1287_v2, %v688_v52 }
 0x22c   :  { %v1216_v56 = vpop.f32.mrf.mxu0  ;;  %v8079_v41 = vpop.f32.mrf.mxu1 }
 0x22d   :  { %v9146_v9 = vadd.f32 %v1216_v56, %v688_v52  ;;  %v1305_v54 = vmax.f32 %v1288_v15, 0.0 }
 0x22e   :  { %v1218_v55 = vpop.f32.mrf.mxu0 }
 0x22f   :  { %v1303_v43 = vmax.f32 %v9146_v9, 0.0  ;;  %v1219_v22 = vadd.f32 %v1218_v55, %v688_v52 }
 0x231   :  { %v1304_v33 = vmax.f32 %v1219_v22, 0.0  ;;  %1345 = vrot.lane.b32.xlu0 %v1303_v43, %s8144_s26 }
 0x233   :  { %1347 = vrot.lane.b32.xlu1 %v1304_v33, %s8144_s26 }
 0x235   :  { %1349 = vrot.lane.b32.xlu0 %v1305_v54, %s8144_s26 }
 0x237   :  { %v1326_v14 = vpop.permute.xlu0 %1325 }
 0x239   :  { %v1328_v6 = vpop.permute.xlu1 %1327 }
 0x23a   :  { %v1353_v48 = vsel %vm136_vm3, %v1326_v14, %v1328_v6 }
 0x23b   :  { %v1330_v7 = vpop.permute.xlu0 %1329  ;;  %v9167_v11 = vmax.f32 %v1293_v32, %v1353_v48 }
 0x23c   :  { %v1354_v5 = vsel %vm136_vm3, %v1328_v6, %v1330_v7 }
 0x23d   :  { %v1324_v42 = vpop.permute.xlu1 %1323  ;;  %v1383_v8 = vmax.f32 %v1294_v19, %v1354_v5 }
 0x23e   :  { %v1351_v18 = vsel %vm136_vm3, %v1322_v26, %v1324_v42  ;;  %v1352_v31 = vsel %vm136_vm3, %v1324_v42, %v1326_v14 }
 0x23f   :  { %v1380_v35 = vmax.f32 %v1291_v59, %v1351_v18  ;;  %v9158_v38 = vmax.f32 %v1292_v10, %v1352_v31 }
 0x241   :  { %1412 = vrot.lane.b32.xlu0 %v9158_v38, %s8146_s28  ;;  %1410 = vrot.lane.b32.xlu1 %v1380_v35, %s8146_s28 }
 0x245   :  { %1414 = vrot.lane.b32.xlu0 %v9167_v11, %s8146_s28  ;;  %1416 = vrot.lane.b32.xlu1 %v1383_v8, %s8146_s28 }
 0x25f   :  { %v1334_v52 = vpop.permute.xlu0 %1333 }
 0x261   :  { %v1336_v28 = vpop.permute.xlu1 %1335 }
 0x262   :  { %v1357_v25 = vsel %vm136_vm3, %v1334_v52, %v1336_v28 }
 0x263   :  { %v9187_v47 = vmax.f32 %v1297_v40, %v1357_v25 }
 0x265   :  { %v1332_v13 = vpop.permute.xlu1 %1331  ;;  %v1340_v29 = vpop.permute.xlu0 %1339 }
 0x266   :  { %v1355_v62 = vsel %vm136_vm3, %v1330_v7, %v1332_v13  ;;  %v1356_v59 = vsel %vm136_vm3, %v1332_v13, %v1334_v52 }
 0x267   :  { %v1384_v61 = vmax.f32 %v1295_v44, %v1355_v62  ;;  %v9178_v23 = vmax.f32 %v1296_v34, %v1356_v59 }
 0x269   :  { %1420 = vrot.lane.b32.xlu1 %v9178_v23, %s8146_s28  ;;  %1418 = vrot.lane.b32.xlu0 %v1384_v61, %s8146_s28  ;;  %v1338_v45 = vpop.permute.xlu1 %1337 }
 0x26a   :  { %v1358_v32 = vsel %vm136_vm3, %v1336_v28, %v1338_v45  ;;  %v1359_v19 = vsel %vm136_vm3, %v1338_v45, %v1340_v29  ;;  %v8155_v28 = vmov 1983009808  }
 0x26b   :  { %v9191_v16 = vmax.f32 %v1298_v46, %v1358_v32  ;;  %v9198_v49 = vmax.f32 %v1299_v36, %v1359_v19  ;;  %v2175_v52 = vunpack.c.l.s4 %v8155_v28 }
 0x26d   :  { %1422 = vrot.lane.b32.xlu0 %v9187_v47, %s8146_s28  ;;  %1424 = vrot.lane.b32.xlu1 %v9191_v16, %s8146_s28  ;;  %v2176_v13 = vunpack.c.0.s8 %v2175_v52 }
 0x26f   :  { %v9269_v59 = vsub.s32 %v2176_v13, %v8204_v1 }
 0x271   :  { %1426 = vrot.lane.b32.xlu0 %v9198_v49, %s8146_s28 }
 0x283   :  { %v1342_v10 = vpop.permute.xlu1 %1341 }
 0x284   :  { %v1360_v44 = vsel %vm136_vm3, %v1340_v29, %v1342_v10 }
 0x285   :  { %v9205_v30 = vmax.f32 %v1300_v24, %v1360_v44 }
 0x287   :  { %1428 = vrot.lane.b32.xlu1 %v9205_v30, %s8146_s28  ;;  %v1344_v12 = vpop.permute.xlu1 %1343 }
 0x288   :  { %v1361_v63 = vsel %vm136_vm3, %v1342_v10, %v1344_v12 }
 0x289   :  { %v9210_v51 = vmax.f32 %v1301_v37, %v1361_v63 }
 0x28b   :  { %1430 = vrot.lane.b32.xlu0 %v9210_v51, %s8146_s28 }
 0x2a3   :  { %v1346_v40 = vpop.permute.xlu0 %1345 }
 0x2a4   :  { %v1362_v39 = vsel %vm136_vm3, %v1344_v12, %v1346_v40 }
 0x2a5   :  { %v1348_v20 = vpop.permute.xlu1 %1347  ;;  %v9223_v34 = vmax.f32 %v1302_v21, %v1362_v39 }
 0x2a6   :  { %v1363_v57 = vsel %vm136_vm3, %v1346_v40, %v1348_v20 }
 0x2a7   :  { %v1350_v50 = vpop.permute.xlu0 %1349  ;;  %v9230_v24 = vmax.f32 %v1303_v43, %v1363_v57 }
 0x2a8   :  { %v1364_v53 = vsel %vm136_vm3, %v1348_v20, %v1350_v50  ;;  %v1394_v46 = vmax.f32 %v1305_v54, %v1350_v50 }
 0x2a9   :  { %v9216_v17 = vmax.f32 %v1304_v33, %v1364_v53 }
 0x2aa   :  { %1438 = vrot.lane.b32.xlu1 %v1394_v46, %s8146_s28 }
 0x2ab   :  { %1436 = vrot.lane.b32.xlu0 %v9216_v17, %s8146_s28 }
 0x2ae   :  { %1432 = vrot.lane.b32.xlu1 %v9223_v34, %s8146_s28 }
 0x2b2   :  { %1434 = vrot.lane.b32.xlu1 %v9230_v24, %s8146_s28 }
 0x2b3   :  { %v1413_v36 = vpop.permute.xlu0 %1412  ;;  %v1411_v3 = vpop.permute.xlu1 %1410 }
 0x2b4   :  { %v1440_v27 = vsel %vm256_vm4, %v1411_v3, %v1413_v36 }
 0x2b5   :  { %v1469_v21 = vmax.f32 %v1380_v35, %v1440_v27 }
 0x2b7   :  { %v1415_v58 = vpop.permute.xlu0 %1414  ;;  %v1417_v0 = vpop.permute.xlu1 %1416 }
 0x2b8   :  { %v1442_v37 = vsel %vm256_vm4, %v1415_v58, %v1417_v0  ;;  %v1441_v33 = vsel %vm256_vm4, %v1413_v36, %v1415_v58 }
 0x2b9   :  { %v1470_v26 = vmax.f32 %v9158_v38, %v1441_v33  ;;  %v1471_v62 = vmax.f32 %v9167_v11, %v1442_v37 }
 0x2c9   :  { %1484 = vxpose.xlu0.b32.start.end [1/1] (short) %v1469_v21, 128 }
 0x2db   :  { %v1419_v2 = vpop.permute.xlu0 %1418  ;;  %v1421_v56 = vpop.permute.xlu1 %1420 }
 0x2dc   :  { %v1443_v41 = vsel %vm256_vm4, %v1417_v0, %v1419_v2  ;;  %v1444_v14 = vsel %vm256_vm4, %v1419_v2, %v1421_v56 }
 0x2dd   :  { %v1472_v9 = vmax.f32 %v1383_v8, %v1443_v41  ;;  %v1473_v42 = vmax.f32 %v1384_v61, %v1444_v14 }
 0x2df   :  { %v1423_v55 = vpop.permute.xlu0 %1422  ;;  %1580 = vxpose.xlu1.b32.start.end [1/1] (short) %v1472_v9, 128  ;;  %v9237_v15 = vpop.permute.xlu1 %1424 }
 0x2e0   :  { %v9240_v43 = vsel %vm256_vm4, %v1421_v56, %v1423_v55  ;;  %v9244_v22 = vsel %vm256_vm4, %v1423_v55, %v9237_v15 }
 0x2e3   :  { %v9248_v54 = vpop.permute.xlu0 %1426 }
 0x2f9   :  { %v9251_v6 = vpop.permute.xlu1 %1428 }
 0x2fa   :  { %v1448_v37 = vsel %vm256_vm4, %v9248_v54, %v9251_v6 }
 0x2fd   :  { %v9253_v7 = vpop.permute.xlu0 %1430 }
 0x306   :  { %1516 = vxpose.xlu0.b32.start.end [1/1] (short) %v1470_v26, 128 }
 0x31c   :  { %1612 = vxpose.xlu1.b32.start.end [1/1] (short) (narrow) %v1473_v42, 120  ;;  %v1439_v18 = vpop.permute.xlu1 %1438 }
 0x31d   :  { %v1437_v31 = vpop.permute.xlu0 %1436 }
 0x31e   :  { %v9256_v35 = vsel %vm256_vm4, %v1437_v31, %v1439_v18 }
 0x320   :  { %v9258_v48 = vpop.permute.xlu1 %1432 }
 0x324   :  { %v1435_v5 = vpop.permute.xlu1 %1434 }
 0x325   :  { %v9262_v38 = vsel %vm256_vm4, %v9258_v48, %v1435_v5  ;;  %v9265_v8 = vsel %vm256_vm4, %v1435_v5, %v1437_v31  ;;  %v1477_v5 = vmax.f32 %v9198_v49, %v1448_v37 }
 0x343   :  { %1548 = vxpose.xlu0.b32.start.end [1/1] (short) %v1471_v62, 128 }
 0x345   :  { %v1500_v61 = vpop.trf.xlu0 }
 0x346   :  { %v2076_v25 = vcombine.high %v1500_v61, %v1500_v61  ;;  %v2180_v45 = vrot.slane %v1500_v61, %v9269_v59 }
 0x348   :  { %v2181_v32 = vcombine.high %v2180_v45, %v2180_v45  ;;  %v2188_v29 = vrot.slane %v2076_v25, %v9269_v59  ;;  %v3745_v19 = vrot.slane %v2180_v45, %v8213_v4 }
 0x349   :  { %v1501_v10 = vpop.trf.xlu0 }
 0x34a   :  { %v2189_v44 = vcombine.high %v2188_v29, %v2188_v29  ;;  %v3749_v12 = vrot.slane %v2181_v32, %v8213_v4  ;;  %v3753_v63 = vrot.slane %v2188_v29, %v8213_v4  ;;  %v2077_v11 = vcombine.high %v1501_v10, %v1501_v10 }
 0x34b   :  { %v2196_v40 = vrot.slane %v1501_v10, %v9269_v59 }
 0x34c   :  { %v3757_v20 = vrot.slane %v2189_v44, %v8213_v4  ;;  %v5311_v50 = vsel %vm5310_vm8, %v3749_v12, %v3745_v19  ;;  %v2204_v53 = vrot.slane %v2077_v11, %v9269_v59 }
 0x34d   :  { %v5313_v46 = vsel %vm5312_vm9, %v3753_v63, %v5311_v50  ;;  %v2197_v39 = vcombine.high %v2196_v40, %v2196_v40  ;;  %v3761_v57 = vrot.slane %v2196_v40, %v8213_v4  ;;  %v1502_v36 = vpop.trf.xlu0 }
 0x34e   :  { %v2205_v3 = vcombine.high %v2204_v53, %v2204_v53  ;;  %v2078_v58 = vcombine.high %v1502_v36, %v1502_v36  ;;  %v2212_v0 = vrot.slane %v1502_v36, %v9269_v59  ;;  %v3769_v21 = vrot.slane %v2204_v53, %v8213_v4 }
 0x34f   :  { %v3765_v27 = vrot.slane %v2197_v39, %v8213_v4  ;;  %v5315_v2 = vsel %vm5314_vm10, %v3757_v20, %v5313_v46 }
 0x350   :  { %v3773_v56 = vrot.slane %v2205_v3, %v8213_v4  ;;  %v2213_v41 = vcombine.high %v2212_v0, %v2212_v0  ;;  %v2220_v9 = vrot.slane %v2078_v58, %v9269_v59  ;;  %v3777_v55 = vrot.slane %v2212_v0, %v8213_v4 }
 0x351   :  { %v1503_v33 = vpop.trf.xlu0  ;;  %v5317_v26 = vsel %vm5316_vm11, %v3761_v57, %v5315_v2 }
 0x352   :  { %v2221_v14 = vcombine.high %v2220_v9, %v2220_v9  ;;  %v3781_v42 = vrot.slane %v2213_v41, %v8213_v4  ;;  %v3785_v18 = vrot.slane %v2220_v9, %v8213_v4  ;;  %v5323_v31 = vsel %vm5322_vm12, %v3777_v55, %v3773_v56 }
 0x353   :  { %v2228_v28 = vrot.slane %v1503_v33, %v9269_v59  ;;  %v5319_v52 = vsel %vm5318_vm13, %v3765_v27, %v5317_v26 }
 0x354   :  { %v3789_v13 = vrot.slane %v2221_v14, %v8213_v4  ;;  %v5324_v62 = vsel %vm5310_vm8, %v3781_v42, %v5323_v31  ;;  %v9302_v61 = vsel %vm11447_vm15, %v3769_v21, %v5319_v52 }
 0x355   :  { %v2229_v25 = vcombine.high %v2228_v28, %v2228_v28  ;;  %v3793_v45 = vrot.slane %v2228_v28, %v8213_v4  ;;  %v1504_v32 = vpop.trf.xlu0  ;;  %1740 = vxpose.xlu1.b32.start.end [1/1] (short) %v1477_v5, 128  ;;  %v5325_v29 = vsel %vm5312_vm9, %v3785_v18, %v5324_v62 }
 0x356   :  { %v5326_v49 = vsel %vm5314_vm10, %v3789_v13, %v5325_v29 }
 0x357   :  { %v3797_v19 = vrot.slane %v2229_v25, %v8213_v4  ;;  %v5327_v10 = vsel %vm5316_vm11, %v3793_v45, %v5326_v49 }
 0x359   :  { %v1505_v44 = vpop.trf.xlu0  ;;  %v9310_v12 = vsel %vm5318_vm13, %v3797_v19, %v5327_v10 }
 0x35b   :  { %v9312_v63 = vpop.trf.xlu1 }
 0x35d   :  { %v1506_v11 = vpop.trf.xlu0 }
 0x35f   :  { %v1597_v40 = vpop.trf.xlu1 }
 0x361   :  { %v1507_v20 = vpop.trf.xlu0 }
 0x362   :  { %v2079_v50 = vcombine.high %v1507_v20, %v1507_v20 }
 0x363   :  { %v1598_v53 = vpop.trf.xlu1 }
 0x364   :  { %v2236_v46 = vrot.slane %v2079_v50, %v9269_v59 }
 0x365   :  { %v1508_v39 = vpop.trf.xlu0 }
 0x366   :  { %v2237_v57 = vcombine.high %v2236_v46, %v2236_v46  ;;  %v3801_v36 = vrot.slane %v2236_v46, %v8213_v4  ;;  %v2080_v3 = vcombine.high %v1508_v39, %v1508_v39  ;;  %v2244_v58 = vrot.slane %v1508_v39, %v9269_v59 }
 0x367   :  { %v1599_v0 = vpop.trf.xlu1 }
 0x368   :  { %v3805_v37 = vrot.slane %v2237_v57, %v8213_v4  ;;  %v2245_v27 = vcombine.high %v2244_v58, %v2244_v58  ;;  %v2252_v21 = vrot.slane %v2080_v3, %v9269_v59  ;;  %v3809_v2 = vrot.slane %v2244_v58, %v8213_v4 }
 0x369   :  { %v1509_v56 = vpop.trf.xlu0 }
 0x36a   :  { %v5329_v41 = vsel %vm5310_vm8, %v3805_v37, %v3801_v36  ;;  %v2253_v9 = vcombine.high %v2252_v21, %v2252_v21  ;;  %v3813_v55 = vrot.slane %v2245_v27, %v8213_v4  ;;  %v3817_v33 = vrot.slane %v2252_v21, %v8213_v4 }
 0x36b   :  { %v5330_v26 = vsel %vm5312_vm9, %v3809_v2, %v5329_v41  ;;  %v2081_v14 = vcombine.high %v1509_v56, %v1509_v56  ;;  %v2260_v42 = vrot.slane %v1509_v56, %v9269_v59  ;;  %v1600_v18 = vpop.trf.xlu1 }
 0x36c   :  { %v3821_v31 = vrot.slane %v2253_v9, %v8213_v4  ;;  %v2100_v5 = vcombine.high %v1600_v18, %v1600_v18  ;;  %v5331_v28 = vsel %vm5314_vm10, %v3813_v55, %v5330_v26 }
 0x36d   :  { %v2261_v52 = vcombine.high %v2260_v42, %v2260_v42  ;;  %v2268_v13 = vrot.slane %v2081_v14, %v9269_v59  ;;  %v3825_v62 = vrot.slane %v2260_v42, %v8213_v4  ;;  %v1510_v25 = vpop.trf.xlu0  ;;  %v5332_v45 = vsel %vm5316_vm11, %v3817_v33, %v5331_v28 }
 0x36e   :  { %v2572_v32 = vrot.slane %v2100_v5, %v9269_v59  ;;  %v2082_v29 = vcombine.high %v1510_v25, %v1510_v25  ;;  %v2276_v49 = vrot.slane %v1510_v25, %v9269_v59  ;;  %v5333_v19 = vsel %vm5318_vm13, %v3821_v31, %v5332_v45 }
 0x36f   :  { %v2269_v10 = vcombine.high %v2268_v13, %v2268_v13  ;;  %v3829_v44 = vrot.slane %v2261_v52, %v8213_v4  ;;  %v3833_v11 = vrot.slane %v2268_v13, %v8213_v4  ;;  %v1601_v40 = vpop.trf.xlu1  ;;  %v9336_v20 = vsel %vm11447_vm15, %v3825_v62, %v5333_v19 }
 0x370   :  { %v2573_v50 = vcombine.high %v2572_v32, %v2572_v32  ;;  %v2277_v53 = vcombine.high %v2276_v49, %v2276_v49  ;;  %v2284_v46 = vrot.slane %v2082_v29, %v9269_v59  ;;  %v3841_v36 = vrot.slane %v2276_v49, %v8213_v4 }
 0x371   :  { %v3837_v39 = vrot.slane %v2269_v10, %v8213_v4  ;;  %v5335_v57 = vsel %vm5322_vm12, %v3833_v11, %v3829_v44  ;;  %v2101_v3 = vcombine.high %v1601_v40, %v1601_v40  ;;  %v1511_v58 = vpop.trf.xlu0  ;;  %v4137_v0 = vrot.slane %v2572_v32, %v8213_v4 }
 0x372   :  { %v4141_v37 = vrot.slane %v2573_v50, %v8213_v4  ;;  %v2285_v27 = vcombine.high %v2284_v46, %v2284_v46  ;;  %v3845_v21 = vrot.slane %v2277_v53, %v8213_v4  ;;  %v3849_v56 = vrot.slane %v2284_v46, %v8213_v4 }
 0x373   :  { %v5336_v2 = vsel %vm5310_vm8, %v3837_v39, %v5335_v57  ;;  %v2580_v41 = vrot.slane %v1601_v40, %v9269_v59  ;;  %v2588_v9 = vrot.slane %v2101_v3, %v9269_v59  ;;  %v1602_v55 = vpop.trf.xlu1  ;;  %v1447_v53 = vsel %vm256_vm4, %v9237_v15, %v9248_v54 }
 0x374   :  { %v5401_v33 = vsel %vm5310_vm8, %v4141_v37, %v4137_v0  ;;  %v5337_v26 = vsel %vm5312_vm9, %v3841_v36, %v5336_v2  ;;  %v2102_v14 = vcombine.high %v1602_v55, %v1602_v55  ;;  %v2596_v42 = vrot.slane %v1602_v55, %v9269_v59 }
 0x375   :  { %v2581_v18 = vcombine.high %v2580_v41, %v2580_v41  ;;  %v2589_v31 = vcombine.high %v2588_v9, %v2588_v9  ;;  %v4145_v5 = vrot.slane %v2580_v41, %v8213_v4  ;;  %v4153_v28 = vrot.slane %v2588_v9, %v8213_v4  ;;  %v1512_v52 = vpop.trf.xlu0 }
 0x376   :  { %v2597_v13 = vcombine.high %v2596_v42, %v2596_v42  ;;  %v2604_v62 = vrot.slane %v2102_v14, %v9269_v59  ;;  %v4161_v25 = vrot.slane %v2596_v42, %v8213_v4  ;;  %v3853_v45 = vrot.slane %v2285_v27, %v8213_v4 }
 0x377   :  { %v4149_v32 = vrot.slane %v2581_v18, %v8213_v4  ;;  %v4157_v29 = vrot.slane %v2589_v31, %v8213_v4  ;;  %v5402_v49 = vsel %vm5312_vm9, %v4145_v5, %v5401_v33  ;;  %v1603_v19 = vpop.trf.xlu1  ;;  %v5338_v10 = vsel %vm5314_vm10, %v3845_v21, %v5337_v26 }
 0x378   :  { %v2605_v44 = vcombine.high %v2604_v62, %v2604_v62  ;;  %v4165_v11 = vrot.slane %v2597_v13, %v8213_v4  ;;  %v4169_v40 = vrot.slane %v2604_v62, %v8213_v4  ;;  %v2103_v50 = vcombine.high %v1603_v19, %v1603_v19 }
 0x379   :  { %v2612_v46 = vrot.slane %v1603_v19, %v9269_v59  ;;  %v1513_v39 = vpop.trf.xlu0  ;;  %v5403_v57 = vsel %vm5314_vm10, %v4149_v32, %v5402_v49  ;;  %v5339_v36 = vsel %vm5316_vm11, %v3849_v56, %v5338_v10  ;;  %v1476_v42 = vmax.f32 %v9191_v16, %v1447_v53 }
 0x37a   :  { %v4173_v3 = vrot.slane %v2605_v44, %v8213_v4  ;;  %v5407_v58 = vsel %vm5322_vm12, %v4169_v40, %v4165_v11  ;;  %v2620_v0 = vrot.slane %v2103_v50, %v9269_v59  ;;  %v5404_v37 = vsel %vm5316_vm11, %v4153_v28, %v5403_v57 }
 0x37b   :  { %v2613_v27 = vcombine.high %v2612_v46, %v2612_v46  ;;  %v4177_v21 = vrot.slane %v2612_v46, %v8213_v4  ;;  %v1604_v2 = vpop.trf.xlu1  ;;  %v5405_v15 = vsel %vm5318_vm13, %v4157_v29, %v5404_v37  ;;  %v9376_v54 = vsel %vm5318_vm13, %v3853_v45, %v5339_v36 }
 0x37c   :  { %v5408_v41 = vsel %vm5310_vm8, %v4173_v3, %v5407_v58  ;;  %v2621_v56 = vcombine.high %v2620_v0, %v2620_v0  ;;  %v4185_v9 = vrot.slane %v2620_v0, %v8213_v4  ;;  %v9381_v55 = vsel %vm11447_vm15, %v4161_v25, %v5405_v15 }
 0x37d   :  { %v4181_v33 = vrot.slane %v2613_v27, %v8213_v4  ;;  %v5409_v26 = vsel %vm5312_vm9, %v4177_v21, %v5408_v41  ;;  %v1514_v14 = vpop.trf.xlu0  ;;  %v1450_v53 = vsel %vm256_vm4, %v9253_v7, %v9258_v48 }
 0x37e   :  { %v4189_v18 = vrot.slane %v2621_v56, %v8213_v4  ;;  %v1479_v2 = vmax.f32 %v9210_v51, %v1450_v53 }
 0x37f   :  { %v1605_v31 = vpop.trf.xlu1  ;;  %v5410_v5 = vsel %vm5314_vm10, %v4181_v33, %v5409_v26 }
 0x380   :  { %1708 = vxpose.xlu0.b32.start.end [1/1] (short) %v1476_v42, 128  ;;  %v5411_v28 = vsel %vm5316_vm11, %v4185_v9, %v5410_v5 }
 0x381   :  { %v1515_v52 = vpop.trf.xlu0  ;;  %v9390_v13 = vsel %vm5318_vm13, %v4189_v18, %v5411_v28 }
 0x382   :  { %v2083_v62 = vcombine.high %v1515_v52, %v1515_v52  ;;  %v2292_v25 = vrot.slane %v1515_v52, %v9269_v59 }
 0x383   :  { %v1606_v45 = vpop.trf.xlu1 }
 0x384   :  { %v2293_v32 = vcombine.high %v2292_v25, %v2292_v25  ;;  %v2300_v29 = vrot.slane %v2083_v62, %v9269_v59  ;;  %v3857_v16 = vrot.slane %v2292_v25, %v8213_v4 }
 0x385   :  { %v1532_v49 = vpop.trf.xlu0 }
 0x386   :  { %v2301_v19 = vcombine.high %v2300_v29, %v2300_v29  ;;  %v3861_v10 = vrot.slane %v2293_v32, %v8213_v4  ;;  %v3865_v44 = vrot.slane %v2300_v29, %v8213_v4  ;;  %v2084_v11 = vcombine.high %v1532_v49, %v1532_v49 }
 0x387   :  { %v2308_v40 = vrot.slane %v1532_v49, %v9269_v59  ;;  %v1607_v50 = vpop.trf.xlu1 }
 0x388   :  { %v3869_v46 = vrot.slane %v2301_v19, %v8213_v4  ;;  %v5341_v39 = vsel %vm5310_vm8, %v3861_v10, %v3857_v16  ;;  %v2316_v57 = vrot.slane %v2084_v11, %v9269_v59 }
 0x389   :  { %v5342_v36 = vsel %vm5312_vm9, %v3865_v44, %v5341_v39  ;;  %v3873_v3 = vrot.slane %v2308_v40, %v8213_v4  ;;  %v1533_v58 = vpop.trf.xlu0  ;;  %v2309_v0 = vcombine.high %v2308_v40, %v2308_v40 }
 0x38a   :  { %v2317_v37 = vcombine.high %v2316_v57, %v2316_v57  ;;  %v2085_v27 = vcombine.high %v1533_v58, %v1533_v58  ;;  %v2324_v21 = vrot.slane %v1533_v58, %v9269_v59  ;;  %v5343_v48 = vsel %vm5314_vm10, %v3869_v46, %v5342_v36 }
 0x38b   :  { %v1608_v15 = vpop.trf.xlu1  ;;  %v3881_v26 = vrot.slane %v2316_v57, %v8213_v4  ;;  %v5344_v31 = vsel %vm5316_vm11, %v3873_v3, %v5343_v48  ;;  %v3877_v51 = vrot.slane %v2309_v0, %v8213_v4 }
 0x38c   :  { %v3885_v41 = vrot.slane %v2317_v37, %v8213_v4  ;;  %v2325_v56 = vcombine.high %v2324_v21, %v2324_v21  ;;  %v2332_v9 = vrot.slane %v2085_v27, %v9269_v59  ;;  %v3889_v33 = vrot.slane %v2324_v21, %v8213_v4 }
 0x38d   :  { %v2104_v14 = vcombine.high %v1608_v15, %v1608_v15  ;;  %v2628_v42 = vrot.slane %v1608_v15, %v9269_v59  ;;  %v1534_v18 = vpop.trf.xlu0  ;;  %v5345_v27 = vsel %vm5318_vm13, %v3877_v51, %v5344_v31 }
 0x38e   :  { %v2333_v5 = vcombine.high %v2332_v9, %v2332_v9  ;;  %v3893_v28 = vrot.slane %v2325_v56, %v8213_v4  ;;  %v5347_v52 = vsel %vm5322_vm12, %v3889_v33, %v3885_v41  ;;  %v3897_v62 = vrot.slane %v2332_v9, %v8213_v4 }
 0x38f   :  { %v2629_v25 = vcombine.high %v2628_v42, %v2628_v42  ;;  %v2636_v45 = vrot.slane %v2104_v14, %v9269_v59  ;;  %v2340_v32 = vrot.slane %v1534_v18, %v9269_v59  ;;  %v1609_v29 = vpop.trf.xlu1  ;;  %v4193_v49 = vrot.slane %v2628_v42, %v8213_v4 }
 0x390   :  { %v5348_v16 = vsel %vm5310_vm8, %v3893_v28, %v5347_v52  ;;  %v2105_v19 = vcombine.high %v1609_v29, %v1609_v29  ;;  %v2644_v10 = vrot.slane %v1609_v29, %v9269_v59  ;;  %v3901_v44 = vrot.slane %v2333_v5, %v8213_v4 }
 0x391   :  { %v2637_v11 = vcombine.high %v2636_v45, %v2636_v45  ;;  %v4197_v40 = vrot.slane %v2629_v25, %v8213_v4  ;;  %v4201_v50 = vrot.slane %v2636_v45, %v8213_v4  ;;  %v1535_v53 = vpop.trf.xlu0  ;;  %v2341_v46 = vcombine.high %v2340_v32, %v2340_v32 }
 0x392   :  { %v2645_v39 = vcombine.high %v2644_v10, %v2644_v10  ;;  %v2652_v57 = vrot.slane %v2105_v19, %v9269_v59  ;;  %v4209_v36 = vrot.slane %v2644_v10, %v8213_v4  ;;  %1804 = vxpose.xlu1.b32.start.end [1/1] (short) %v1479_v2, 128  ;;  %v3905_v0 = vrot.slane %v2340_v32, %v8213_v4 }
 0x393   :  { %v4205_v3 = vrot.slane %v2637_v11, %v8213_v4  ;;  %v5413_v58 = vsel %vm5310_vm8, %v4197_v40, %v4193_v49  ;;  %v1610_v37 = vpop.trf.xlu1  ;;  %v9439_v14 = vsel %vm11447_vm15, %v3881_v26, %v5345_v27  ;;  %v3909_v42 = vrot.slane %v2341_v46, %v8213_v4 }
 0x394   :  { %v5414_v21 = vsel %vm5312_vm9, %v4201_v50, %v5413_v58  ;;  %v2653_v15 = vcombine.high %v2652_v57, %v2652_v57  ;;  %v4213_v48 = vrot.slane %v2645_v39, %v8213_v4  ;;  %v2106_v41 = vcombine.high %v1610_v37, %v1610_v37 }
 0x395   :  { %v2660_v56 = vrot.slane %v1610_v37, %v9269_v59  ;;  %v1536_v9 = vpop.trf.xlu0  ;;  %v4217_v2 = vrot.slane %v2652_v57, %v8213_v4  ;;  %v5415_v33 = vsel %vm5314_vm10, %v4205_v3, %v5414_v21  ;;  %v5349_v45 = vsel %vm5312_vm9, %v3897_v62, %v5348_v16 }
 0x396   :  { %v4221_v18 = vrot.slane %v2653_v15, %v8213_v4  ;;  %v2668_v31 = vrot.slane %v2106_v41, %v9269_v59  ;;  %v5416_v51 = vsel %vm5316_vm11, %v4209_v36, %v5415_v33  ;;  %v5350_v40 = vsel %vm5314_vm10, %v3901_v44, %v5349_v45 }
 0x397   :  { %v2661_v5 = vcombine.high %v2660_v56, %v2660_v56  ;;  %v4225_v28 = vrot.slane %v2660_v56, %v8213_v4  ;;  %v1611_v52 = vpop.trf.xlu1  ;;  %v5417_v25 = vsel %vm5318_vm13, %v4213_v48, %v5416_v51  ;;  %v5351_v16 = vsel %vm5316_vm11, %v3905_v0, %v5350_v40 }
 0x398   :  { %v2669_v32 = vcombine.high %v2668_v31, %v2668_v31  ;;  %v4233_v26 = vrot.slane %v2668_v31, %v8213_v4  ;;  %v2676_v29 = vrot.slane %v1611_v52, %v9269_v59  ;;  %v9451_v49 = vsel %vm11447_vm15, %v4217_v2, %v5417_v25 }
 0x399   :  { %v4229_v19 = vrot.slane %v2661_v5, %v8213_v4  ;;  %v5419_v10 = vsel %vm5322_vm12, %v4225_v28, %v4221_v18  ;;  %v1537_v11 = vpop.trf.xlu0  ;;  %v9461_v57 = vsel %vm5318_vm13, %v3909_v42, %v5351_v16 }
 0x39a   :  { %v4237_v50 = vrot.slane %v2669_v32, %v8213_v4  ;;  %v2677_v53 = vcombine.high %v2676_v29, %v2676_v29  ;;  %v4241_v62 = vrot.slane %v2676_v29, %v8213_v4 }
 0x39b   :  { %v5420_v46 = vsel %vm5310_vm8, %v4229_v19, %v5419_v10  ;;  %v1628_v39 = vpop.trf.xlu1 }
 0x39c   :  { %v4245_v36 = vrot.slane %v2677_v53, %v8213_v4  ;;  %v5421_v3 = vsel %vm5312_vm9, %v4233_v26, %v5420_v46 }
 0x39d   :  { %v1538_v58 = vpop.trf.xlu0  ;;  %v5422_v44 = vsel %vm5314_vm10, %v4237_v50, %v5421_v3 }
 0x39e   :  { %v2086_v37 = vcombine.high %v1538_v58, %v1538_v58  ;;  %v5423_v27 = vsel %vm5316_vm11, %v4241_v62, %v5422_v44 }
 0x39f   :  { %v1629_v21 = vpop.trf.xlu1  ;;  %v9468_v15 = vsel %vm5318_vm13, %v4245_v36, %v5423_v27 }
 0x3a0   :  { %v2348_v0 = vrot.slane %v2086_v37, %v9269_v59 }
 0x3a1   :  { %v1539_v48 = vpop.trf.xlu0 }
 0x3a2   :  { %v2349_v41 = vcombine.high %v2348_v0, %v2348_v0  ;;  %v3913_v56 = vrot.slane %v2348_v0, %v8213_v4  ;;  %v2087_v9 = vcombine.high %v1539_v48, %v1539_v48  ;;  %v2356_v2 = vrot.slane %v1539_v48, %v9269_v59 }
 0x3a3   :  { %v1630_v33 = vpop.trf.xlu1 }
 0x3a4   :  { %v3917_v42 = vrot.slane %v2349_v41, %v8213_v4  ;;  %v2357_v18 = vcombine.high %v2356_v2, %v2356_v2  ;;  %v2364_v31 = vrot.slane %v2087_v9, %v9269_v59  ;;  %v3921_v51 = vrot.slane %v2356_v2, %v8213_v4 }
 0x3a5   :  { %v1540_v5 = vpop.trf.xlu0 }
 0x3a6   :  { %v5353_v28 = vsel %vm5310_vm8, %v3917_v42, %v3913_v56  ;;  %v2365_v52 = vcombine.high %v2364_v31, %v2364_v31  ;;  %v3925_v25 = vrot.slane %v2357_v18, %v8213_v4  ;;  %v3929_v45 = vrot.slane %v2364_v31, %v8213_v4 }
 0x3a7   :  { %v5354_v32 = vsel %vm5312_vm9, %v3921_v51, %v5353_v28  ;;  %v2088_v26 = vcombine.high %v1540_v5, %v1540_v5  ;;  %v2372_v29 = vrot.slane %v1540_v5, %v9269_v59  ;;  %v1631_v19 = vpop.trf.xlu1 }
 0x3a8   :  { %v3933_v10 = vrot.slane %v2365_v52, %v8213_v4  ;;  %v2107_v11 = vcombine.high %v1631_v19, %v1631_v19  ;;  %v5355_v40 = vsel %vm5314_vm10, %v3925_v25, %v5354_v32 }
 0x3a9   :  { %v2373_v50 = vcombine.high %v2372_v29, %v2372_v29  ;;  %v2380_v53 = vrot.slane %v2088_v26, %v9269_v59  ;;  %v3937_v62 = vrot.slane %v2372_v29, %v8213_v4  ;;  %v1541_v16 = vpop.trf.xlu0  ;;  %v5356_v46 = vsel %vm5316_vm11, %v3929_v45, %v5355_v40 }
 0x3aa   :  { %v2684_v39 = vrot.slane %v2107_v11, %v9269_v59  ;;  %v2089_v36 = vcombine.high %v1541_v16, %v1541_v16  ;;  %v2388_v3 = vrot.slane %v1541_v16, %v9269_v59  ;;  %v5357_v58 = vsel %vm5318_vm13, %v3933_v10, %v5356_v46 }
 0x3ab   :  { %v2381_v44 = vcombine.high %v2380_v53, %v2380_v53  ;;  %v3941_v37 = vrot.slane %v2373_v50, %v8213_v4  ;;  %v3945_v27 = vrot.slane %v2380_v53, %v8213_v4  ;;  %v1632_v21 = vpop.trf.xlu1  ;;  %v9492_v0 = vsel %vm11447_vm15, %v3937_v62, %v5357_v58 }
 0x3ac   :  { %v2685_v48 = vcombine.high %v2684_v39, %v2684_v39  ;;  %v2389_v41 = vcombine.high %v2388_v3, %v2388_v3  ;;  %v2396_v56 = vrot.slane %v2089_v36, %v9269_v59  ;;  %v3953_v33 = vrot.slane %v2388_v3, %v8213_v4 }
 0x3ad   :  { %v3949_v9 = vrot.slane %v2381_v44, %v8213_v4  ;;  %v5359_v2 = vsel %vm5322_vm12, %v3945_v27, %v3941_v37  ;;  %v2108_v42 = vcombine.high %v1632_v21, %v1632_v21  ;;  %v1542_v18 = vpop.trf.xlu0  ;;  %v4249_v31 = vrot.slane %v2684_v39, %v8213_v4 }
 0x3ae   :  { %v4253_v51 = vrot.slane %v2685_v48, %v8213_v4  ;;  %v2397_v5 = vcombine.high %v2396_v56, %v2396_v56  ;;  %v3957_v28 = vrot.slane %v2389_v41, %v8213_v4  ;;  %v3961_v25 = vrot.slane %v2396_v56, %v8213_v4 }
 0x3af   :  { %v5360_v52 = vsel %vm5310_vm8, %v3949_v9, %v5359_v2  ;;  %v2692_v45 = vrot.slane %v1632_v21, %v9269_v59  ;;  %v2700_v32 = vrot.slane %v2108_v42, %v9269_v59  ;;  %v1633_v26 = vpop.trf.xlu1  ;;  %v1449_v2 = vsel %vm256_vm4, %v9251_v6, %v9253_v7 }
 0x3b0   :  { %v5425_v29 = vsel %vm5310_vm8, %v4253_v51, %v4249_v31  ;;  %v5361_v19 = vsel %vm5312_vm9, %v3953_v33, %v5360_v52  ;;  %v2109_v10 = vcombine.high %v1633_v26, %v1633_v26  ;;  %v2708_v11 = vrot.slane %v1633_v26, %v9269_v59 }
 0x3b1   :  { %v2693_v40 = vcombine.high %v2692_v45, %v2692_v45  ;;  %v2701_v50 = vcombine.high %v2700_v32, %v2700_v32  ;;  %v4257_v53 = vrot.slane %v2692_v45, %v8213_v4  ;;  %v4265_v62 = vrot.slane %v2700_v32, %v8213_v4  ;;  %v1543_v16 = vpop.trf.xlu0 }
 0x3b2   :  { %v2709_v46 = vcombine.high %v2708_v11, %v2708_v11  ;;  %v2716_v39 = vrot.slane %v2109_v10, %v9269_v59  ;;  %v4273_v36 = vrot.slane %v2708_v11, %v8213_v4  ;;  %v3965_v3 = vrot.slane %v2397_v5, %v8213_v4 }
 0x3b3   :  { %v4261_v58 = vrot.slane %v2693_v40, %v8213_v4  ;;  %v4269_v44 = vrot.slane %v2701_v50, %v8213_v4  ;;  %v5426_v37 = vsel %vm5312_vm9, %v4257_v53, %v5425_v29  ;;  %v1634_v27 = vpop.trf.xlu1  ;;  %v5362_v21 = vsel %vm5314_vm10, %v3957_v28, %v5361_v19 }
 0x3b4   :  { %v2717_v48 = vcombine.high %v2716_v39, %v2716_v39  ;;  %v4277_v41 = vrot.slane %v2709_v46, %v8213_v4  ;;  %v4281_v56 = vrot.slane %v2716_v39, %v8213_v4  ;;  %v2110_v9 = vcombine.high %v1634_v27, %v1634_v27 }
 0x3b5   :  { %v2724_v33 = vrot.slane %v1634_v27, %v9269_v59  ;;  %v1544_v42 = vpop.trf.xlu0  ;;  %v5427_v18 = vsel %vm5314_vm10, %v4261_v58, %v5426_v37  ;;  %v5363_v31 = vsel %vm5316_vm11, %v3961_v25, %v5362_v21  ;;  %vm6045_vm4 = vcmask 769024  }
 0x3b6   :  { %v4285_v51 = vrot.slane %v2717_v48, %v8213_v4  ;;  %v5431_v5 = vsel %vm5322_vm12, %v4281_v56, %v4277_v41  ;;  %v2732_v28 = vrot.slane %v2110_v9, %v9269_v59  ;;  %v5428_v52 = vsel %vm5316_vm11, %v4265_v62, %v5427_v18 }
 0x3b7   :  { %v2725_v45 = vcombine.high %v2724_v33, %v2724_v33  ;;  %v4289_v32 = vrot.slane %v2724_v33, %v8213_v4  ;;  %v1635_v26 = vpop.trf.xlu1  ;;  %v5429_v6 = vsel %vm5318_vm13, %v4269_v44, %v5428_v52  ;;  %v9532_v7 = vsel %vm5318_vm13, %v3965_v3, %v5363_v31 }
 0x3b8   :  { %11453 = vst [vmem:[#allocation6_spill] sm:$0xff] %v9532_v7  ;;  %v5432_v29 = vsel %vm5310_vm8, %v4285_v51, %v5431_v5  ;;  %v2733_v25 = vcombine.high %v2732_v28, %v2732_v28  ;;  %v4297_v19 = vrot.slane %v2732_v28, %v8213_v4  ;;  %v9537_v10 = vsel %vm11447_vm15, %v4273_v36, %v5429_v6 }
 0x3b9   :  { %v4293_v11 = vrot.slane %v2725_v45, %v8213_v4  ;;  %v5433_v40 = vsel %vm5312_vm9, %v4289_v32, %v5432_v29  ;;  %v1545_v50 = vpop.trf.xlu0  ;;  %v1478_v62 = vmax.f32 %v9205_v30, %v1449_v2  ;;  %v1474_v29 = vmax.f32 %v9178_v23, %v9240_v43 }
 0x3ba   :  { %v4301_v53 = vrot.slane %v2733_v25, %v8213_v4 }
 0x3bb   :  { %v1636_v16 = vpop.trf.xlu1  ;;  %v5434_v46 = vsel %vm5314_vm10, %v4293_v11, %v5433_v40 }
 0x3bc   :  { %v5435_v39 = vsel %vm5316_vm11, %v4297_v19, %v5434_v46 }
 0x3bd   :  { %v1546_v3 = vpop.trf.xlu0  ;;  %1772 = vxpose.xlu0.b32.start.end [1/1] (short) %v1478_v62, 128  ;;  %v9546_v58 = vsel %vm5318_vm13, %v4301_v53, %v5435_v39 }
 0x3be   :  { %v2090_v36 = vcombine.high %v1546_v3, %v1546_v3  ;;  %v2404_v44 = vrot.slane %v1546_v3, %v9269_v59 }
 0x3bf   :  { %v1637_v37 = vpop.trf.xlu1 }
 0x3c0   :  { %v2405_v27 = vcombine.high %v2404_v44, %v2404_v44  ;;  %v2412_v21 = vrot.slane %v2090_v36, %v9269_v59  ;;  %v3969_v48 = vrot.slane %v2404_v44, %v8213_v4 }
 0x3c1   :  { %v1547_v30 = vpop.trf.xlu0 }
 0x3c2   :  { %v2413_v41 = vcombine.high %v2412_v21, %v2412_v21  ;;  %v3973_v56 = vrot.slane %v2405_v27, %v8213_v4  ;;  %v3977_v9 = vrot.slane %v2412_v21, %v8213_v4  ;;  %v2091_v2 = vcombine.high %v1547_v30, %v1547_v30 }
 0x3c3   :  { %v2420_v33 = vrot.slane %v1547_v30, %v9269_v59  ;;  %v1638_v42 = vpop.trf.xlu1 }
 0x3c4   :  { %v3981_v18 = vrot.slane %v2413_v41, %v8213_v4  ;;  %v5365_v31 = vsel %vm5310_vm8, %v3973_v56, %v3969_v48  ;;  %v2428_v51 = vrot.slane %v2091_v2, %v9269_v59 }
 0x3c5   :  { %v3985_v5 = vrot.slane %v2420_v33, %v8213_v4  ;;  %v1564_v28 = vpop.trf.xlu0  ;;  %v5366_v52 = vsel %vm5312_vm9, %v3977_v9, %v5365_v31  ;;  %v2421_v45 = vcombine.high %v2420_v33, %v2420_v33 }
 0x3c6   :  { %v2429_v32 = vcombine.high %v2428_v51, %v2428_v51  ;;  %v2092_v26 = vcombine.high %v1564_v28, %v1564_v28  ;;  %v2436_v6 = vrot.slane %v1564_v28, %v9269_v59  ;;  %v5367_v19 = vsel %vm5314_vm10, %v3981_v18, %v5366_v52 }
 0x3c7   :  { %v1639_v25 = vpop.trf.xlu1  ;;  %v3993_v62 = vrot.slane %v2428_v51, %v8213_v4  ;;  %v5368_v3 = vsel %vm5316_vm11, %v3985_v5, %v5367_v19  ;;  %v3989_v23 = vrot.slane %v2421_v45, %v8213_v4 }
 0x3c8   :  { %v3997_v11 = vrot.slane %v2429_v32, %v8213_v4  ;;  %v2437_v40 = vcombine.high %v2436_v6, %v2436_v6  ;;  %v2444_v50 = vrot.slane %v2092_v26, %v9269_v59  ;;  %v4001_v53 = vrot.slane %v2436_v6, %v8213_v4 }
 0x3c9   :  { %v2111_v16 = vcombine.high %v1639_v25, %v1639_v25  ;;  %v2740_v46 = vrot.slane %v1639_v25, %v9269_v59  ;;  %v1565_v39 = vpop.trf.xlu0  ;;  %v5369_v19 = vsel %vm5318_vm13, %v3989_v23, %v5368_v3 }
 0x3ca   :  { %v2445_v43 = vcombine.high %v2444_v50, %v2444_v50  ;;  %v4005_v36 = vrot.slane %v2437_v40, %v8213_v4  ;;  %v5371_v44 = vsel %vm5322_vm12, %v4001_v53, %v3997_v11  ;;  %v4009_v37 = vrot.slane %v2444_v50, %v8213_v4 }
 0x3cb   :  { %v2741_v27 = vcombine.high %v2740_v46, %v2740_v46  ;;  %v2748_v21 = vrot.slane %v2111_v16, %v9269_v59  ;;  %v2452_v48 = vrot.slane %v1565_v39, %v9269_v59  ;;  %v1640_v30 = vpop.trf.xlu1  ;;  %v4305_v56 = vrot.slane %v2740_v46, %v8213_v4 }
 0x3cc   :  { %v5372_v41 = vsel %vm5310_vm8, %v4005_v36, %v5371_v44  ;;  %v2112_v9 = vcombine.high %v1640_v30, %v1640_v30  ;;  %v2756_v2 = vrot.slane %v1640_v30, %v9269_v59  ;;  %v4013_v33 = vrot.slane %v2445_v43, %v8213_v4 }
 0x3cd   :  { %v2749_v42 = vcombine.high %v2748_v21, %v2748_v21  ;;  %v4309_v18 = vrot.slane %v2741_v27, %v8213_v4  ;;  %v4313_v31 = vrot.slane %v2748_v21, %v8213_v4  ;;  %v1566_v51 = vpop.trf.xlu0  ;;  %v2453_v5 = vcombine.high %v2452_v48, %v2452_v48 }
 0x3ce   :  { %v4017_v28 = vrot.slane %v2452_v48, %v8213_v4  ;;  %v2757_v52 = vcombine.high %v2756_v2, %v2756_v2  ;;  %v2764_v45 = vrot.slane %v2112_v9, %v9269_v59  ;;  %v4321_v6 = vrot.slane %v2756_v2, %v8213_v4 }
 0x3cf   :  { %v4317_v32 = vrot.slane %v2749_v42, %v8213_v4  ;;  %v5437_v26 = vsel %vm5310_vm8, %v4309_v18, %v4305_v56  ;;  %1644 = vxpose.xlu1.b32.start.end [1/1] (short) (narrow) %v1474_v29, 112  ;;  %v1641_v25 = vpop.trf.xlu1  ;;  %v9592_v43 = vsel %vm11447_vm15, %v3993_v62, %v5369_v19  ;;  %v5373_v36 = vsel %vm5312_vm9, %v4009_v37, %v5372_v41 }
 0x3d0   :  { %v2765_v11 = vcombine.high %v2764_v45, %v2764_v45  ;;  %v4325_v40 = vrot.slane %v2757_v52, %v8213_v4  ;;  %v4329_v50 = vrot.slane %v2764_v45, %v8213_v4  ;;  %v2113_v53 = vcombine.high %v1641_v25, %v1641_v25  ;;  %11454 = vst [vmem:[#allocation7_spill] sm:$0xff] %v9592_v43 }
 0x3d1   :  { %v2772_v16 = vrot.slane %v1641_v25, %v9269_v59  ;;  %v1567_v46 = vpop.trf.xlu0  ;;  %v5438_v39 = vsel %vm5312_vm9, %v4313_v31, %v5437_v26  ;;  %v4021_v29 = vrot.slane %v2453_v5, %v8213_v4  ;;  %v5374_v56 = vsel %vm5314_vm10, %v4013_v33, %v5373_v36 }
 0x3d2   :  { %v4333_v3 = vrot.slane %v2765_v11, %v8213_v4  ;;  %v2780_v23 = vrot.slane %v2113_v53, %v9269_v59  ;;  %v5439_v44 = vsel %vm5314_vm10, %v4317_v32, %v5438_v39  ;;  %v5375_v51 = vsel %vm5316_vm11, %v4017_v28, %v5374_v56 }
 0x3d3   :  { %v2773_v27 = vcombine.high %v2772_v16, %v2772_v16  ;;  %v4337_v21 = vrot.slane %v2772_v16, %v8213_v4  ;;  %v1642_v48 = vpop.trf.xlu1  ;;  %v5440_v30 = vsel %vm5316_vm11, %v4321_v6, %v5439_v44  ;;  %v9617_v26 = vsel %vm5318_vm13, %v4021_v29, %v5375_v51 }
 0x3d4   :  { %v2781_v62 = vcombine.high %v2780_v23, %v2780_v23  ;;  %v4345_v9 = vrot.slane %v2780_v23, %v8213_v4  ;;  %v2788_v37 = vrot.slane %v1642_v48, %v9269_v59  ;;  %v5441_v41 = vsel %vm5318_vm13, %v4325_v40, %v5440_v30  ;;  %11455 = vst [vmem:[#allocation8_spill] sm:$0xff] %v9617_v26 }
 0x3d5   :  { %v4341_v2 = vrot.slane %v2773_v27, %v8213_v4  ;;  %v5443_v42 = vsel %vm5322_vm12, %v4337_v21, %v4333_v3  ;;  %v1568_v18 = vpop.trf.xlu0  ;;  %v9608_v31 = vsel %vm11447_vm15, %v4329_v50, %v5441_v41 }
 0x3d6   :  { %v4349_v5 = vrot.slane %v2781_v62, %v8213_v4  ;;  %v2789_v33 = vcombine.high %v2788_v37, %v2788_v37  ;;  %v4353_v45 = vrot.slane %v2788_v37, %v8213_v4 }
 0x3d7   :  { %v5444_v52 = vsel %vm5310_vm8, %v4341_v2, %v5443_v42  ;;  %v9614_v32 = vpop.trf.xlu1 }
 0x3d8   :  { %v5445_v6 = vsel %vm5312_vm9, %v4345_v9, %v5444_v52  ;;  %v4357_v25 = vrot.slane %v2789_v33, %v8213_v4 }
 0x3d9   :  { %v1569_v19 = vpop.trf.xlu0  ;;  %v5446_v11 = vsel %vm5314_vm10, %v4349_v5, %v5445_v6 }
 0x3da   :  { %v2093_v28 = vcombine.high %v1569_v19, %v1569_v19  ;;  %v5447_v50 = vsel %vm5316_vm11, %v4353_v45, %v5446_v11 }
 0x3db   :  { %v1757_v40 = vpop.trf.xlu1  ;;  %v9628_v36 = vsel %vm5318_vm13, %v4357_v25, %v5447_v50 }
 0x3dc   :  { %v2460_v53 = vrot.slane %v2093_v28, %v9269_v59  ;;  %v2134_v16 = vcombine.high %v1757_v40, %v1757_v40  ;;  %v9625_v46 = vrot.slane %v1757_v40, %v9269_v59 }
 0x3dd   :  { %v1570_v39 = vpop.trf.xlu0 }
 0x3de   :  { %v2461_v29 = vcombine.high %v2460_v53, %v2460_v53  ;;  %v4025_v3 = vrot.slane %v2460_v53, %v8213_v4  ;;  %v2094_v23 = vcombine.high %v1570_v39, %v1570_v39  ;;  %v3101_v44 = vcombine.high %v9625_v46, %v9625_v46 }
 0x3df   :  { %v3108_v27 = vrot.slane %v2134_v16, %v9269_v59  ;;  %v2468_v21 = vrot.slane %v1570_v39, %v9269_v59  ;;  %v1758_v48 = vpop.trf.xlu1 }
 0x3e0   :  { %v4029_v30 = vrot.slane %v2461_v29, %v8213_v4  ;;  %v2476_v56 = vrot.slane %v2094_v23, %v9269_v59  ;;  %v2135_v62 = vcombine.high %v1758_v48, %v1758_v48  ;;  %v3116_v9 = vrot.slane %v1758_v48, %v9269_v59 }
 0x3e1   :  { %v3109_v37 = vcombine.high %v3108_v27, %v3108_v27  ;;  %v4669_v41 = vrot.slane %v3101_v44, %v8213_v4  ;;  %v4673_v2 = vrot.slane %v3108_v27, %v8213_v4  ;;  %v1571_v42 = vpop.trf.xlu0  ;;  %v2469_v51 = vcombine.high %v2468_v21, %v2468_v21 }
 0x3e2   :  { %v5377_v18 = vsel %vm5310_vm8, %v4029_v30, %v4025_v3  ;;  %v4033_v5 = vrot.slane %v2468_v21, %v8213_v4  ;;  %v2477_v45 = vcombine.high %v2476_v56, %v2476_v56  ;;  %v3117_v6 = vcombine.high %v3116_v9, %v3116_v9 }
 0x3e3   :  { %v4677_v33 = vrot.slane %v3109_v37, %v8213_v4  ;;  %v5515_v52 = vsel %vm5322_vm12, %v4673_v2, %v4669_v41  ;;  %v1759_v25 = vpop.trf.xlu1  ;;  %v4041_v19 = vrot.slane %v2476_v56, %v8213_v4  ;;  %v3124_v28 = vrot.slane %v2135_v62, %v9269_v59 }
 0x3e4   :  { %v5378_v11 = vsel %vm5312_vm9, %v4033_v5, %v5377_v18  ;;  %v4681_v40 = vrot.slane %v3116_v9, %v8213_v4  ;;  %v4685_v53 = vrot.slane %v3117_v6, %v8213_v4  ;;  %v2095_v16 = vcombine.high %v1571_v42, %v1571_v42 }
 0x3e5   :  { %v5516_v50 = vsel %vm5310_vm8, %v4677_v33, %v5515_v52  ;;  %v2484_v39 = vrot.slane %v1571_v42, %v9269_v59  ;;  %v1572_v29 = vpop.trf.xlu0  ;;  %v3125_v3 = vcombine.high %v3124_v28, %v3124_v28  ;;  %v4689_v23 = vrot.slane %v3124_v28, %v8213_v4 }
 0x3e6   :  { %v5517_v44 = vsel %vm5312_vm9, %v4681_v40, %v5516_v50  ;;  %v2096_v27 = vcombine.high %v1572_v29, %v1572_v29  ;;  %v4037_v21 = vrot.slane %v2469_v51, %v8213_v4  ;;  %v2492_v30 = vrot.slane %v2095_v16, %v9269_v59 }
 0x3e7   :  { %v2485_v48 = vcombine.high %v2484_v39, %v2484_v39  ;;  %v2500_v56 = vrot.slane %v1572_v29, %v9269_v59  ;;  %v1760_v62 = vpop.trf.xlu1  ;;  %v4045_v9 = vrot.slane %v2477_v45, %v8213_v4  ;;  %v4693_v37 = vrot.slane %v3125_v3, %v8213_v4 }
 0x3e8   :  { %v2508_v41 = vrot.slane %v2096_v27, %v9269_v59  ;;  %v5518_v2 = vsel %vm5314_vm10, %v4685_v53, %v5517_v44  ;;  %v2493_v42 = vcombine.high %v2492_v30, %v2492_v30  ;;  %v4057_v5 = vrot.slane %v2492_v30, %v8213_v4 }
 0x3e9   :  { %v4053_v18 = vrot.slane %v2485_v48, %v8213_v4  ;;  %v2501_v51 = vcombine.high %v2500_v56, %v2500_v56  ;;  %v1573_v33 = vpop.trf.xlu0  ;;  %v4049_v52 = vrot.slane %v2484_v39, %v8213_v4  ;;  %v4065_v25 = vrot.slane %v2500_v56, %v8213_v4 }
 0x3ea   :  { %v2509_v6 = vcombine.high %v2508_v41, %v2508_v41  ;;  %v5519_v45 = vsel %vm5316_vm11, %v4689_v23, %v5518_v2  ;;  %v4061_v28 = vrot.slane %v2493_v42, %v8213_v4  ;;  %v4073_v29 = vrot.slane %v2508_v41, %v8213_v4 }
 0x3eb   :  { %v5383_v40 = vsel %vm5322_vm12, %v4057_v5, %v4053_v18  ;;  %v4069_v50 = vrot.slane %v2501_v51, %v8213_v4  ;;  %v1761_v53 = vpop.trf.xlu1  ;;  %v9669_v16 = vsel %vm5318_vm13, %v4693_v37, %v5519_v45  ;;  %v5379_v3 = vsel %vm5314_vm10, %v4037_v21, %v5378_v11 }
 0x3ec   :  { %v5384_v39 = vsel %vm5310_vm8, %v4061_v28, %v5383_v40  ;;  %v5380_v27 = vsel %vm5316_vm11, %v4041_v19, %v5379_v3  ;;  %v4077_v23 = vrot.slane %v2509_v6, %v8213_v4  ;;  %v1480_v51 = vmax.f32 %v9223_v34, %v9262_v38 }
 0x3ed   :  { %v1574_v44 = vpop.trf.xlu0  ;;  %v5385_v48 = vsel %vm5312_vm9, %v4065_v25, %v5384_v39  ;;  %v5381_v30 = vsel %vm5318_vm13, %v4045_v9, %v5380_v27 }
 0x3ee   :  { %v9679_v62 = vsel %vm11447_vm15, %v4049_v52, %v5381_v30  ;;  %v5386_v37 = vsel %vm5314_vm10, %v4069_v50, %v5385_v48 }
 0x3ef   :  { %v1762_v56 = vpop.trf.xlu1  ;;  %11456 = vst [vmem:[#allocation9_spill] sm:$0xff] %v9679_v62  ;;  %v5387_v41 = vsel %vm5316_vm11, %v4073_v29, %v5386_v37 }
 0x3f0   :  { %v9684_v21 = vsel %vm5318_vm13, %v4077_v23, %v5387_v41 }
 0x3f1   :  { %v1575_v11 = vpop.trf.xlu0  ;;  %11457 = vst [vmem:[#allocation10_spill] sm:$0xff] %v9684_v21 }
 0x3f3   :  { %v1763_v2 = vpop.trf.xlu1 }
 0x3f4   :  { %v2136_v19 = vcombine.high %v1763_v2, %v1763_v2  ;;  %v3132_v42 = vrot.slane %v1763_v2, %v9269_v59 }
 0x3f5   :  { %v1576_v18 = vpop.trf.xlu0 }
 0x3f6   :  { %v3133_v5 = vcombine.high %v3132_v42, %v3132_v42  ;;  %v3140_v9 = vrot.slane %v2136_v19, %v9269_v59  ;;  %v4697_v33 = vrot.slane %v3132_v42, %v8213_v4  ;;  %v1481_v42 = vmax.f32 %v9230_v24, %v9265_v8 }
 0x3f7   :  { %v1764_v52 = vpop.trf.xlu1 }
 0x3f8   :  { %v3141_v6 = vcombine.high %v3140_v9, %v3140_v9  ;;  %v4701_v25 = vrot.slane %v3133_v5, %v8213_v4  ;;  %v4705_v45 = vrot.slane %v3140_v9, %v8213_v4  ;;  %v2137_v28 = vcombine.high %v1764_v52, %v1764_v52 }
 0x3f9   :  { %v3148_v40 = vrot.slane %v1764_v52, %v9269_v59  ;;  %v1577_v50 = vpop.trf.xlu0 }
 0x3fa   :  { %v4709_v53 = vrot.slane %v3141_v6, %v8213_v4  ;;  %v5521_v29 = vsel %vm5310_vm8, %v4701_v25, %v4697_v33  ;;  %v3156_v3 = vrot.slane %v2137_v28, %v9269_v59  ;;  %v2097_v39 = vcombine.high %v1577_v50, %v1577_v50  ;;  %1836 = vxpose.xlu0.b32.start.end [1/1] (short) (narrow) %v1480_v51, 120 }
 0x3fb   :  { %v5522_v34 = vsel %vm5312_vm9, %v4705_v45, %v5521_v29  ;;  %v3149_v38 = vcombine.high %v3148_v40, %v3148_v40  ;;  %v4713_v44 = vrot.slane %v3148_v40, %v8213_v4  ;;  %v2516_v27 = vrot.slane %v1577_v50, %v9269_v59  ;;  %v1765_v23 = vpop.trf.xlu1 }
 0x3fc   :  { %v5523_v48 = vsel %vm5314_vm10, %v4709_v53, %v5522_v34  ;;  %v3157_v30 = vcombine.high %v3156_v3, %v3156_v3  ;;  %v2524_v2 = vrot.slane %v2097_v39, %v9269_v59  ;;  %v2138_v19 = vcombine.high %v1765_v23, %v1765_v23 }
 0x3fd   :  { %v4717_v56 = vrot.slane %v3149_v38, %v8213_v4  ;;  %v5524_v37 = vsel %vm5316_vm11, %v4713_v44, %v5523_v48  ;;  %v2517_v41 = vcombine.high %v2516_v27, %v2516_v27  ;;  %v1578_v11 = vpop.trf.xlu0  ;;  %v3164_v5 = vrot.slane %v1765_v23, %v9269_v59 }
 0x3fe   :  { %v4725_v18 = vrot.slane %v3157_v30, %v8213_v4  ;;  %v2098_v9 = vcombine.high %v1578_v11, %v1578_v11  ;;  %v4081_v33 = vrot.slane %v2516_v27, %v8213_v4  ;;  %v3172_v6 = vrot.slane %v2138_v19, %v9269_v59 }
 0x3ff   :  { %v1766_v51 = vpop.trf.xlu1  ;;  %v4085_v52 = vrot.slane %v2517_v41, %v8213_v4  ;;  %v5525_v25 = vsel %vm5318_vm13, %v4717_v56, %v5524_v37  ;;  %v4721_v45 = vrot.slane %v3156_v3, %v8213_v4  ;;  %v3165_v28 = vcombine.high %v3164_v5, %v3164_v5 }
 0x400   :  { %v4729_v40 = vrot.slane %v3164_v5, %v8213_v4  ;;  %v3180_v24 = vrot.slane %v1766_v51, %v9269_v59  ;;  %v2525_v50 = vcombine.high %v2524_v2, %v2524_v2  ;;  %v3173_v53 = vcombine.high %v3172_v6, %v3172_v6 }
 0x401   :  { %v1579_v8 = vpop.trf.xlu0  ;;  %v4737_v29 = vrot.slane %v3172_v6, %v8213_v4  ;;  %v9717_v39 = vrot.slane %v2098_v9, %v9269_v59  ;;  %v4089_v34 = vrot.slane %v2524_v2, %v8213_v4  ;;  %v4733_v38 = vrot.slane %v3165_v28, %v8213_v4 }
 0x402   :  { %v5527_v44 = vsel %vm5322_vm12, %v4729_v40, %v4725_v18  ;;  %v5389_v27 = vsel %vm5310_vm8, %v4085_v52, %v4081_v33  ;;  %v4741_v23 = vrot.slane %v3173_v53, %v8213_v4  ;;  %v2532_v48 = vrot.slane %v1578_v11, %v9269_v59 }
 0x403   :  { %v1767_v3 = vpop.trf.xlu1  ;;  %v2541_v30 = vcombine.high %v9717_v39, %v9717_v39  ;;  %v5528_v56 = vsel %vm5310_vm8, %v4733_v38, %v5527_v44  ;;  %v3181_v37 = vcombine.high %v3180_v24, %v3180_v24  ;;  %v2099_v41 = vcombine.high %v1579_v8, %v1579_v8 }
 0x404   :  { %1868 = vxpose.xlu1.b32.start.end [1/1] (short) (narrow) %v1481_v42, 112  ;;  %v2548_v2 = vrot.slane %v1579_v8, %v9269_v59  ;;  %v4093_v18 = vrot.slane %v2525_v50, %v8213_v4  ;;  %v5529_v5 = vsel %vm5312_vm9, %v4737_v29, %v5528_v56  ;;  %v9735_v11 = vsel %vm11447_vm15, %v4721_v45, %v5525_v25 }
 0x405   :  { %v9729_v19 = vpop.trf.xlu0  ;;  %v4109_v9 = vrot.slane %v2541_v30, %v8213_v4  ;;  %v4745_v51 = vrot.slane %v3180_v24, %v8213_v4  ;;  %v2556_v33 = vrot.slane %v2099_v41, %v9269_v59  ;;  %v2533_v28 = vcombine.high %v2532_v48, %v2532_v48 }
 0x406   :  { %v2549_v42 = vcombine.high %v2548_v2, %v2548_v2  ;;  %v4113_v52 = vrot.slane %v2548_v2, %v8213_v4  ;;  %v4097_v40 = vrot.slane %v2532_v48, %v8213_v4  ;;  %v5530_v8 = vsel %vm5314_vm10, %v4741_v23, %v5529_v5 }
 0x407   :  { %v1768_v6 = vpop.trf.xlu1  ;;  %v5390_v50 = vsel %vm5312_vm9, %v4089_v34, %v5389_v27  ;;  %v4749_v53 = vrot.slane %v3181_v37, %v8213_v4  ;;  %v4121_v45 = vrot.slane %v2556_v33, %v8213_v4  ;;  %v5531_v3 = vsel %vm5316_vm11, %v4745_v51, %v5530_v8 }
 0x408   :  { %v4117_v25 = vrot.slane %v2549_v42, %v8213_v4  ;;  %v5395_v24 = vsel %vm5322_vm12, %v4113_v52, %v4109_v9  ;;  %v5391_v48 = vsel %vm5314_vm10, %v4093_v18, %v5390_v50  ;;  %v4101_v23 = vrot.slane %v2533_v28, %v8213_v4 }
 0x409   :  { %v9747_v29 = vpop.trf.xlu0  ;;  %v9754_v27 = vsel %vm5318_vm13, %v4749_v53, %v5531_v3  ;;  %v5392_v30 = vsel %vm5316_vm11, %v4097_v40, %v5391_v48  ;;  %v2557_v42 = vcombine.high %v2556_v33, %v2556_v33  ;;  %v2564_v28 = vrot.slane %v9312_v63, %v9269_v59 }
 0x40a   :  { %v5396_v38 = vsel %vm5310_vm8, %v4117_v25, %v5395_v24  ;;  %v5393_v2 = vsel %vm5318_vm13, %v4101_v23, %v5392_v30 }
 0x40b   :  { %v1769_v44 = vpop.trf.xlu1  ;;  %v5397_v56 = vsel %vm5312_vm9, %v4121_v45, %v5396_v38  ;;  %v4105_v45 = vrot.slane %v9717_v39, %v8213_v4  ;;  %v4125_v24 = vrot.slane %v2557_v42, %v8213_v4  ;;  %v2565_v48 = vcombine.high %v2564_v28, %v2564_v28 }
 0x40c   :  { %v4129_v39 = vrot.slane %v2564_v28, %v8213_v4  ;;  %v2125_v28 = vcombine.high %v9729_v19, %v9729_v19  ;;  %v2972_v19 = vrot.slane %v9747_v29, %v9269_v59 }
 0x40d   :  { %v1726_v34 = vpop.trf.xlu0  ;;  %v9782_v42 = vsel %vm11447_vm15, %v4105_v45, %v5393_v2 }
 0x40e   :  { %11458 = vst [vmem:[#allocation11_spill] sm:$0xff] %v9782_v42 }
 0x40f   :  { %v1770_v37 = vpop.trf.xlu1 }
 0x410   :  { %v2139_v41 = vcombine.high %v1770_v37, %v1770_v37 }
 0x411   :  { %v9759_v5 = vpop.trf.xlu0 }
 0x412   :  { %v3188_v9 = vrot.slane %v2139_v41, %v9269_v59 }
 0x413   :  { %v1771_v51 = vpop.trf.xlu1 }
 0x414   :  { %v3189_v18 = vcombine.high %v3188_v9, %v3188_v9  ;;  %v2140_v52 = vcombine.high %v1771_v51, %v1771_v51  ;;  %v4753_v40 = vrot.slane %v3188_v9, %v8213_v4  ;;  %v3196_v50 = vrot.slane %v1771_v51, %v9269_v59 }
 0x415   :  { %v1728_v6 = vpop.trf.xlu0 }
 0x416   :  { %v4757_v8 = vrot.slane %v3189_v18, %v8213_v4  ;;  %v3204_v53 = vrot.slane %v2140_v52, %v9269_v59  ;;  %v3197_v38 = vcombine.high %v3196_v50, %v3196_v50  ;;  %v4761_v63 = vrot.slane %v3196_v50, %v8213_v4 }
 0x417   :  { %v9768_v25 = vpop.trf.xlu1  ;;  %v5398_v52 = vsel %vm5314_vm10, %v4125_v24, %v5397_v56  ;;  %v4133_v6 = vrot.slane %v2565_v48, %v8213_v4  ;;  %v2964_v56 = vrot.slane %v2125_v28, %v9269_v59 }
 0x418   :  { %v5533_v33 = vsel %vm5310_vm8, %v4757_v8, %v4753_v40  ;;  %v3205_v44 = vcombine.high %v3204_v53, %v3204_v53  ;;  %v4769_v23 = vrot.slane %v3204_v53, %v8213_v4  ;;  %v4765_v30 = vrot.slane %v3197_v38, %v8213_v4 }
 0x419   :  { %v1729_v3 = vpop.trf.xlu0  ;;  %v5534_v41 = vsel %vm5312_vm9, %v4761_v63, %v5533_v33  ;;  %v5399_v53 = vsel %vm5316_vm11, %v4129_v39, %v5398_v52  ;;  %v2127_v63 = vcombine.high %v1726_v34, %v1726_v34  ;;  %v4537_v52 = vrot.slane %v2972_v19, %v8213_v4 }
 0x41a   :  { %v4773_v37 = vrot.slane %v3205_v44, %v8213_v4  ;;  %v5535_v18 = vsel %vm5314_vm10, %v4765_v30, %v5534_v41  ;;  %v9794_v33 = vsel %vm5318_vm13, %v4133_v6, %v5399_v53  ;;  %v2965_v44 = vcombine.high %v2964_v56, %v2964_v56 }
 0x41b   :  { %v1821_v9 = vpop.trf.xlu1  ;;  %v5536_v40 = vsel %vm5316_vm11, %v4769_v23, %v5535_v18  ;;  %11459 = vst [vmem:[#allocation12_spill] sm:$0xff] %v9794_v33  ;;  %v9800_v3 = vrot.slane %v1726_v34, %v9269_v59  ;;  %v4529_v30 = vrot.slane %v2964_v56, %v8213_v4  ;;  %v2126_v41 = vcombine.high %v9747_v29, %v9747_v29 }
 0x41c   :  { %v9788_v50 = vsel %vm5318_vm13, %v4773_v37, %v5536_v40  ;;  %v4533_v37 = vrot.slane %v2965_v44, %v8213_v4  ;;  %v2996_v9 = vrot.slane %v2127_v63, %v9269_v59  ;;  %v2133_v18 = vcombine.high %v9614_v32, %v9614_v32 }
 0x41d   :  { %v1730_v51 = vpop.trf.xlu0  ;;  %v2989_v34 = vcombine.high %v9800_v3, %v9800_v3  ;;  %v1482_v53 = vmax.f32 %v9216_v17, %v9256_v35  ;;  %v9832_v56 = vrot.slane %v9614_v32, %v9269_v59  ;;  %v3004_v44 = vrot.slane %v9759_v5, %v9269_v59 }
 0x41e   :  { %v2973_v51 = vcombine.high %v2972_v19, %v2972_v19  ;;  %v5485_v40 = vsel %vm5310_vm8, %v4533_v37, %v4529_v30  ;;  %v2997_v29 = vcombine.high %v2996_v9, %v2996_v9  ;;  %v1475_v63 = vmax.f32 %v9187_v47, %v9244_v22 }
 0x41f   :  { %v1822_v8 = vpop.trf.xlu1  ;;  %v4557_v28 = vrot.slane %v2989_v34, %v8213_v4  ;;  %v9840_v17 = vrot.slane %v2133_v18, %v9269_v59  ;;  %v5486_v35 = vsel %vm5312_vm9, %v4537_v52, %v5485_v40  ;;  %v2128_v37 = vcombine.high %v9759_v5, %v9759_v5 }
 0x420   :  { %v2980_v8 = vrot.slane %v2126_v41, %v9269_v59  ;;  %v4565_v32 = vrot.slane %v2997_v29, %v8213_v4  ;;  %v9850_v41 = vsel %vm571_vm1, 0.0, %v9381_v55  ;;  %v9856_v34 = vsel %vm667_vm14, %v9390_v13, 0.0 }
 0x421   :  { %v1731_v2 = vpop.trf.xlu0  ;;  %v3085_v5 = vcombine.high %v9832_v56, %v9832_v56  ;;  %v3005_v55 = vcombine.high %v3004_v44, %v3004_v44  ;;  %v3093_v40 = vcombine.high %v9840_v17, %v9840_v17 }
 0x422   :  { %v4561_v2 = vrot.slane %v2996_v9, %v8213_v4  ;;  %v2981_v30 = vcombine.high %v2980_v8, %v2980_v8  ;;  %v4545_v47 = vrot.slane %v2980_v8, %v8213_v4  ;;  %v4569_v8 = vrot.slane %v3004_v44, %v8213_v4 }
 0x423   :  { %v1823_v45 = vpop.trf.xlu1 }
 0x424   :  { %v5491_v22 = vsel %vm5322_vm12, %v4561_v2, %v4557_v28  ;;  %v3012_v2 = vrot.slane %v2128_v37, %v9269_v59 }
 0x425   :  { %v9797_v24 = vpop.trf.xlu0  ;;  %v5492_v28 = vsel %vm5310_vm8, %v4565_v32, %v5491_v22 }
 0x426   :  { %v3020_v52 = vrot.slane %v9797_v24, %v9269_v59  ;;  %v4577_v32 = vrot.slane %v3012_v2, %v8213_v4 }
 0x427   :  { %v1824_v38 = vpop.trf.xlu1 }
 0x428   :  { %v4541_v38 = vrot.slane %v2973_v51, %v8213_v4  ;;  %v9860_v51 = vsel %vm571_vm1, 0.0, %v9451_v49  ;;  %v9876_v49 = vsel %vm667_vm14, %v9468_v15, 0.0  ;;  %v9890_v15 = vsel %vm667_vm14, %v9546_v58, 0.0 }
 0x429   :  { %v9802_v48 = vpop.trf.xlu0  ;;  %v3021_v37 = vcombine.high %v3020_v52, %v3020_v52  ;;  %v4553_v58 = vrot.slane %v9800_v3, %v8213_v4 }
 0x42a   :  { %v5487_v18 = vsel %vm5314_vm10, %v4541_v38, %v5486_v35  ;;  %v2130_v13 = vcombine.high %v9802_v48, %v9802_v48  ;;  %v2129_v38 = vcombine.high %v9797_v24, %v9797_v24  ;;  %v9899_v24 = vrot.slane %v3085_v5, %v8213_v4 }
 0x42b   :  { %v9806_v23 = vpop.trf.xlu1  ;;  %v5488_v44 = vsel %vm5316_vm11, %v4545_v47, %v5487_v18  ;;  %v5493_v47 = vsel %vm5312_vm9, %v4569_v8, %v5492_v28  ;;  %v9911_v18 = vrot.slane %v3093_v40, %v8213_v4  ;;  %v3013_v5 = vcombine.high %v3012_v2, %v3012_v2 }
 0x42c   :  { %v9920_v8 = vsel %vm667_vm14, %v9669_v16, 0.0  ;;  %v4585_v40 = vrot.slane %v3020_v52, %v8213_v4  ;;  %v4589_v28 = vrot.slane %v3021_v37, %v8213_v4  ;;  %v9933_v2 = vrot.slane %v9768_v25, %v9269_v59 }
 0x42d   :  { %v9815_v39 = vpop.trf.xlu0  ;;  %v2149_v37 = vcombine.high %v9768_v25, %v9768_v25 }
 0x42e   :  { %v5497_v25 = vsel %vm5310_vm8, %v4589_v28, %v4585_v40 }
 0x42f   :  { %v9820_v6 = vpop.trf.xlu1 }
 0x431   :  { %v9828_v45 = vpop.trf.xlu0 }
 0x433   :  { %1900 = vxpose.xlu0.b32.start.end [1/1] (short) (narrow) %v1482_v53, 48  ;;  %v9843_v19 = vpop.trf.xlu1  ;;  %v4549_v53 = vrot.slane %v2981_v30, %v8213_v4  ;;  %v9894_v30 = vsel %vm571_vm1, 0.0, %v9608_v31  ;;  %v9908_v31 = vrot.slane %v2130_v13, %v9269_v59  ;;  %v9924_v13 = vsel %vm667_vm14, %v9628_v36, 0.0 }
 0x434   :  { %v2131_v36 = vcombine.high %v9815_v39, %v9815_v39 }
 0x435   :  { %v1736_v9 = vpop.trf.xlu0  ;;  %v3045_v16 = vcombine.high %v9908_v31, %v9908_v31 }
 0x436   :  { %v9886_v9 = vsel %vm571_vm1, 0.0, %v9537_v10  ;;  %v3036_v10 = vrot.slane %v9802_v48, %v9269_v59  ;;  %v3060_v48 = vrot.slane %v2131_v36, %v9269_v59 }
 0x437   :  { %v9872_v29 = vpop.trf.xlu1 }
 0x438   :  { %v3037_v33 = vcombine.high %v3036_v10, %v3036_v10 }
 0x439   :  { %v1737_v35 = vpop.trf.xlu0  ;;  %1676 = vxpose.xlu1.b32.start.end [1/1] (short) (narrow) %v1475_v63, 40  ;;  %v4573_v63 = vrot.slane %v3005_v55, %v8213_v4  ;;  %v5489_v55 = vsel %vm5318_vm13, %v4549_v53, %v5488_v44  ;;  %v3052_v53 = vrot.slane %v9815_v39, %v9269_v59 }
 0x43a   :  { %v3028_v35 = vrot.slane %v2129_v38, %v9269_v59  ;;  %v5490_v52 = vsel %vm11447_vm15, %v4553_v58, %v5489_v55  ;;  %v9953_v58 = vsel %vm667_vm14, %v9754_v27, 0.0  ;;  %v9965_v27 = vrot.slane %v2149_v37, %v9269_v59 }
 0x43b   :  { %v1829_v22 = vpop.trf.xlu1  ;;  %v5494_v38 = vsel %vm5314_vm10, %v4573_v63, %v5493_v47  ;;  %v9945_v63 = vsel %vm571_vm1, 0.0, %v9735_v11  ;;  %v3053_v55 = vcombine.high %v3052_v53, %v3052_v53  ;;  %v4601_v11 = vrot.slane %v3036_v10, %v8213_v4 }
 0x43c   :  { %v3029_v22 = vcombine.high %v3028_v35, %v3028_v35  ;;  %v4593_v47 = vrot.slane %v3028_v35, %v8213_v4  ;;  %v5495_v39 = vsel %vm5316_vm11, %v4577_v32, %v5494_v38  ;;  %v4613_v35 = vrot.slane %v3045_v16, %v8213_v4 }
 0x43d   :  { %v1738_v3 = vpop.trf.xlu0  ;;  %v4617_v32 = vrot.slane %v3052_v53, %v8213_v4  ;;  %v2150_v16 = vcombine.high %v9806_v23, %v9806_v23  ;;  %v4621_v53 = vrot.slane %v3053_v55, %v8213_v4  ;;  %v2151_v10 = vcombine.high %v9820_v6, %v9820_v6 }
 0x43e   :  { %v4581_v3 = vrot.slane %v3013_v5, %v8213_v4  ;;  %v4597_v40 = vrot.slane %v3029_v22, %v8213_v4  ;;  %v9980_v22 = vrot.slane %v9806_v23, %v9269_v59  ;;  %v4609_v23 = vrot.slane %v9908_v31, %v8213_v4 }
 0x43f   :  { %v1830_v44 = vpop.trf.xlu1 }
 0x440   :  { %v9957_v44 = vsel %vm571_vm1, 0.0, %v5490_v52  ;;  %v5496_v28 = vsel %vm5318_vm13, %v4581_v3, %v5495_v39  ;;  %v5498_v52 = vsel %vm5312_vm9, %v4593_v47, %v5497_v25  ;;  %v3061_v3 = vcombine.high %v3060_v48, %v3060_v48 }
 0x441   :  { %v1739_v1 = vpop.trf.xlu0  ;;  %v5503_v47 = vsel %vm5322_vm12, %v4617_v32, %v4613_v35  ;;  %v4625_v35 = vrot.slane %v3060_v48, %v8213_v4  ;;  %v5751_v21 = vsel %vm667_vm14, %v5496_v28, 0.0  ;;  %v5499_v62 = vsel %vm5314_vm10, %v4597_v40, %v5498_v52 }
 0x442   :  { %v2132_v5 = vcombine.high %v1739_v1, %v1739_v1  ;;  %v5504_v26 = vsel %vm5310_vm8, %v4621_v53, %v5503_v47  ;;  %v3357_v31 = vcombine.high %v9980_v22, %v9980_v22  ;;  %v4629_v48 = vrot.slane %v3061_v3, %v8213_v4 }
 0x443   :  { %v1831_v38 = vpop.trf.xlu1  ;;  %v10010_v28 = vrot.slane %v2151_v10, %v9269_v59  ;;  %v3388_v3 = vrot.slane %v9843_v19, %v9269_v59  ;;  %v5505_v43 = vsel %vm5312_vm9, %v4625_v35, %v5504_v26 }
 0x444   :  { %v3076_v1 = vrot.slane %v2132_v5, %v9269_v59  ;;  %v4925_v7 = vrot.slane %v3357_v31, %v8213_v4 }
 0x445   :  { %v1788_v36 = vpop.trf.xlu0 }
 0x446   :  { %v3077_v38 = vcombine.high %v3076_v1, %v3076_v1  ;;  %v2141_v37 = vcombine.high %v1788_v36, %v1788_v36  ;;  %v9976_v42 = vrot.slane %v1788_v36, %v9269_v59  ;;  %v4641_v25 = vrot.slane %v3076_v1, %v8213_v4 }
 0x447   :  { %v9985_v39 = vpop.trf.xlu1  ;;  %v4605_v1 = vrot.slane %v3037_v33, %v8213_v4 }
 0x448   :  { %v4645_v55 = vrot.slane %v3077_v38, %v8213_v4  ;;  %v3213_v5 = vcombine.high %v9976_v42, %v9976_v42  ;;  %v3220_v36 = vrot.slane %v2141_v37, %v9269_v59  ;;  %5829 = vxpose.xlu0.b32.start [1/16] (narrow) %v11449_v60, 8  ;;  %v10000_v38 = vrot.slane %v2150_v16, %v9269_v59 }
 0x449   :  { %v1789_v32 = vpop.trf.xlu0  ;;  %v3068_v37 = vrot.slane %v9828_v45, %v9269_v59  ;;  %v5500_v45 = vsel %vm5316_vm11, %v4601_v11, %v5499_v62  ;;  %v11460_v11 = vrot.slane %v9832_v56, %v8213_v4  ;;  %v5506_v56 = vsel %vm5314_vm10, %v4629_v48, %v5505_v43 }
 0x44a   :  { %5797 = vxpose.xlu1.b32.start [1/14] (short) (narrow) %v9850_v41, 8  ;;  %v3221_v40 = vcombine.high %v3220_v36, %v3220_v36  ;;  %v5509_v52 = vsel %vm5310_vm8, %v4645_v55, %v4641_v25  ;;  %v4781_v16 = vrot.slane %v3213_v5, %v8213_v4  ;;  %v4785_v53 = vrot.slane %v3220_v36, %v8213_v4 }
 0x44b   :  { %v10012_v33 = vpop.trf.xlu1  ;;  %v4921_v41 = vrot.slane %v9980_v22, %v8213_v4  ;;  %v3228_v47 = vrot.slane %v1789_v32, %v9269_v59  ;;  %v3365_v25 = vcombine.high %v10000_v38, %v10000_v38  ;;  %v4929_v55 = vrot.slane %v10000_v38, %v8213_v4 }
 0x44c   :  { %5830 = vxpose.xlu0.b32.cont [2/16] (narrow) %v11449_v60, 8  ;;  %v3069_v5 = vcombine.high %v3068_v37, %v3068_v37  ;;  %v4633_v62 = vrot.slane %v3068_v37, %v8213_v4  ;;  %v5510_v22 = vsel %vm5312_vm9, %v11460_v11, %v5509_v52  ;;  %v4789_v36 = vrot.slane %v3221_v40, %v8213_v4 }
 0x44d   :  { %v1790_v10 = vpop.trf.xlu0  ;;  %v5501_v35 = vsel %vm5318_vm13, %v4605_v1, %v5500_v45  ;;  %v3381_v38 = vcombine.high %v10010_v28, %v10010_v28  ;;  %v5539_v37 = vsel %vm5322_vm12, %v4785_v53, %v4781_v16  ;;  %v3389_v40 = vcombine.high %v3388_v3, %v3388_v3 }
 0x44e   :  { %5798 = vxpose.xlu1.b32.cont [2/14] (short) (narrow) %v9856_v34, 8  ;;  %v2142_v10 = vcombine.high %v1789_v32, %v1789_v32  ;;  %v10047_v34 = vrot.slane %v9820_v6, %v9269_v59  ;;  %v2152_v32 = vcombine.high %v9843_v19, %v9843_v19  ;;  %v3229_v1 = vcombine.high %v3228_v47, %v3228_v47 }
 0x44f   :  { %v10036_v26 = vpop.trf.xlu1  ;;  %v4637_v31 = vrot.slane %v3069_v5, %v8213_v4  ;;  %v4793_v45 = vrot.slane %v3228_v47, %v8213_v4  ;;  %v5511_v43 = vsel %vm5314_vm10, %v9899_v24, %v5510_v22  ;;  %v5540_v6 = vsel %vm5310_vm8, %v4789_v36, %v5539_v37 }
 0x450   :  { %5831 = vxpose.xlu0.b32.cont [3/16] (narrow) %v9957_v44, 8  ;;  %v5502_v44 = vsel %vm11447_vm15, %v4609_v23, %v5501_v35  ;;  %v3236_v48 = vrot.slane %v2142_v10, %v9269_v59  ;;  %v5507_v19 = vsel %vm5316_vm11, %v4633_v62, %v5506_v56  ;;  %v11461_v53 = vrot.slane %v9840_v17, %v8213_v4 }
 0x451   :  { %v1791_v52 = vpop.trf.xlu0  ;;  %v4949_v23 = vrot.slane %v3381_v38, %v8213_v4  ;;  %v4953_v5 = vrot.slane %v3388_v3, %v8213_v4  ;;  %v3396_v11 = vrot.slane %v2152_v32, %v9269_v59  ;;  %v4797_v22 = vrot.slane %v3229_v1, %v8213_v4 }
 0x452   :  { %5799 = vxpose.xlu1.b32.cont [3/14] (short) (narrow) %v9860_v51, 8  ;;  %v5512_v47 = vsel %vm5316_vm11, %v11461_v53, %v5511_v43  ;;  %v5569_v51 = vsel %vm5310_vm8, %v4925_v7, %v4921_v41  ;;  %v5724_v36 = vsel %vm571_vm1, 0.0, %v5502_v44  ;;  %v11462_v17 = vrot.slane %v9625_v46, %v8213_v4 }
 0x453   :  { %v10059_v16 = vpop.trf.xlu1  ;;  %v5513_v24 = vsel %vm5318_vm13, %v9911_v18, %v5512_v47  ;;  %v3349_v41 = vcombine.high %v9965_v27, %v9965_v27  ;;  %v5541_v18 = vsel %vm5312_vm9, %v4793_v45, %v5540_v6  ;;  %v5508_v3 = vsel %vm5318_vm13, %v4637_v31, %v5507_v19 }
 0x454   :  { %5832 = vxpose.xlu0.b32.cont [4/16] (narrow) %v5751_v21, 8  ;;  %v5514_v7 = vsel %vm11447_vm15, %v11462_v17, %v5513_v24  ;;  %v4933_v10 = vrot.slane %v3365_v25, %v8213_v4  ;;  %v5570_v35 = vsel %vm5312_vm9, %v4929_v55, %v5569_v51  ;;  %v4957_v46 = vrot.slane %v3389_v40, %v8213_v4 }
 0x455   :  { %v1792_v62 = vpop.trf.xlu0  ;;  %v3237_v38 = vcombine.high %v3236_v48, %v3236_v48  ;;  %v3373_v56 = vcombine.high %v10047_v34, %v10047_v34  ;;  %v5575_v32 = vsel %vm5322_vm12, %v4953_v5, %v4949_v23  ;;  %v10093_v1 = vrot.slane %v9872_v29, %v9269_v59 }
 0x456   :  { %5800 = vxpose.xlu1.b32.cont [4/14] (short) (narrow) %v9876_v49, 8  ;;  %v4801_v49 = vrot.slane %v3236_v48, %v8213_v4  ;;  %v3397_v52 = vcombine.high %v3396_v11, %v3396_v11  ;;  %v2153_v25 = vcombine.high %v9985_v39, %v9985_v39  ;;  %v5752_v40 = vsel %vm667_vm14, %v5508_v3, 0.0 }
 0x457   :  { %v1660_v37 = vpop.trf.xlu1  ;;  %v5542_v31 = vsel %vm5314_vm10, %v4797_v22, %v5541_v18  ;;  %v11463_v45 = vcombine.high %v9933_v2, %v9933_v2  ;;  %v4937_v29 = vrot.slane %v10047_v34, %v8213_v4  ;;  %v4961_v6 = vrot.slane %v3396_v11, %v8213_v4 }
 0x458   :  { %5833 = vxpose.xlu0.b32.cont [5/16] (narrow) %v5724_v36, 8  ;;  %v5576_v39 = vsel %vm5310_vm8, %v4957_v46, %v5575_v32  ;;  %v4777_v48 = vrot.slane %v9976_v42, %v8213_v4  ;;  %v4805_v53 = vrot.slane %v3237_v38, %v8213_v4  ;;  %v5571_v47 = vsel %vm5314_vm10, %v4933_v10, %v5570_v35 }
 0x459   :  { %v1793_v55 = vpop.trf.xlu0  ;;  %v10104_v44 = vrot.slane %v11463_v45, %v8213_v4  ;;  %v10118_v51 = vrot.slane %v3373_v56, %v8213_v4  ;;  %v10126_v5 = vrot.slane %v3397_v52, %v8213_v4  ;;  %v10129_v42 = vrot.slane %v2153_v25, %v9269_v59 }
 0x45a   :  { %5801 = vxpose.xlu1.b32.cont [5/14] (short) (narrow) %v9886_v9, 8  ;;  %v5543_v9 = vsel %vm5316_vm11, %v4801_v49, %v5542_v31  ;;  %v2155_v24 = vcombine.high %v10036_v26, %v10036_v26  ;;  %v10135_v11 = vrot.slane %v10036_v26, %v9269_v59  ;;  %v10140_v17 = vsel %vm5316_vm11, %v4937_v29, %v5571_v47 }
 0x45b   :  { %v1661_v19 = vpop.trf.xlu1  ;;  %v10143_v18 = vsel %vm5312_vm9, %v4961_v6, %v5576_v39  ;;  %v2154_v3 = vcombine.high %v10012_v33, %v10012_v33  ;;  %v5725_v35 = vsel %vm571_vm1, 0.0, %v5514_v7  ;;  %v5538_v26 = vsel %vm11447_vm15, %v4777_v48, %v9788_v50 }
 0x45c   :  { %5834 = vxpose.xlu0.b32.cont [6/16] (narrow) %v5752_v40, 8  ;;  %v5544_v46 = vsel %vm5318_vm13, %v4805_v53, %v5543_v9  ;;  %v3413_v32 = vcombine.high %v10129_v42, %v10129_v42  ;;  %v10157_v49 = vrot.slane %v10012_v33, %v9269_v59  ;;  %v3437_v7 = vcombine.high %v10135_v11, %v10135_v11 }
 0x45d   :  { %v1794_v22 = vpop.trf.xlu0  ;;  %v10162_v50 = vrot.slane %v2155_v24, %v9269_v59  ;;  %v10172_v39 = vsel %vm571_vm1, 0.0, %v5538_v26  ;;  %v10175_v48 = vsel %vm667_vm14, %v5544_v46, 0.0  ;;  %v10288_v33 = vrot.slane %v10059_v16, %v9269_v59 }
 0x45e   :  { %v2143_v62 = vcombine.high %v1794_v22, %v1794_v22  ;;  %v3244_v36 = vrot.slane %v1794_v22, %v9269_v59  ;;  %5802 = vxpose.xlu1.b32.cont [6/14] (short) (narrow) %v9890_v15, 8 }
 0x45f   :  { %v1662_v10 = vpop.trf.xlu1 }
 0x460   :  { %v3245_v38 = vcombine.high %v3244_v36, %v3244_v36  ;;  %v3252_v15 = vrot.slane %v2143_v62, %v9269_v59  ;;  %v4809_v37 = vrot.slane %v3244_v36, %v8213_v4  ;;  %v2114_v56 = vcombine.high %v1662_v10, %v1662_v10  ;;  %5835 = vxpose.xlu0.b32.cont [7/16] (narrow) %v5725_v35, 8 }
 0x461   :  { %v1795_v52 = vpop.trf.xlu0 }
 0x462   :  { %v3253_v25 = vcombine.high %v3252_v15, %v3252_v15  ;;  %v4813_v55 = vrot.slane %v3245_v38, %v8213_v4  ;;  %v4817_v40 = vrot.slane %v3252_v15, %v8213_v4  ;;  %v2796_v31 = vrot.slane %v2114_v56, %v9269_v59  ;;  %5803 = vxpose.xlu1.b32.cont [7/14] (short) (narrow) %v9894_v30, 8 }
 0x463   :  { %v2144_v45 = vcombine.high %v1795_v52, %v1795_v52  ;;  %v10169_v29 = vrot.slane %v1795_v52, %v9269_v59  ;;  %v1663_v6 = vpop.trf.xlu1 }
 0x464   :  { %v10178_v19 = vrot.slane %v3253_v25, %v8213_v4  ;;  %v5545_v53 = vsel %vm5310_vm8, %v4813_v55, %v4809_v37  ;;  %v2797_v47 = vcombine.high %v2796_v31, %v2796_v31  ;;  %v4361_v9 = vrot.slane %v2796_v31, %v8213_v4  ;;  %5836 = vxpose.xlu0.b32.cont [8/16] (narrow) %v9920_v8, 8 }
 0x465   :  { %v10184_v30 = vsel %vm5312_vm9, %v4817_v40, %v5545_v53  ;;  %v3261_v24 = vcombine.high %v10169_v29, %v10169_v29  ;;  %v10189_v22 = vrot.slane %v2144_v45, %v9269_v59  ;;  %v4825_v62 = vrot.slane %v10169_v29, %v8213_v4  ;;  %v1796_v36 = vpop.trf.xlu0 }
 0x466   :  { %v4365_v10 = vrot.slane %v2797_v47, %v8213_v4  ;;  %v2115_v35 = vcombine.high %v1663_v6, %v1663_v6  ;;  %v2804_v26 = vrot.slane %v1663_v6, %v9269_v59  ;;  %v2145_v46 = vcombine.high %v1796_v36, %v1796_v36  ;;  %5804 = vxpose.xlu1.b32.cont [8/14] (short) (narrow) %v9924_v13, 8 }
 0x467   :  { %v3269_v8 = vcombine.high %v10189_v22, %v10189_v22  ;;  %v10199_v38 = vrot.slane %v3261_v24, %v8213_v4  ;;  %v4833_v15 = vrot.slane %v10189_v22, %v8213_v4  ;;  %v3276_v37 = vrot.slane %v1796_v36, %v9269_v59  ;;  %v1664_v56 = vpop.trf.xlu1 }
 0x468   :  { %v5449_v52 = vsel %vm5310_vm8, %v4365_v10, %v4361_v9  ;;  %v2805_v25 = vcombine.high %v2804_v26, %v2804_v26  ;;  %v2812_v55 = vrot.slane %v2115_v35, %v9269_v59  ;;  %v4369_v40 = vrot.slane %v2804_v26, %v8213_v4  ;;  %5837 = vxpose.xlu0.b32.cont [9/16] (narrow) %v9945_v63, 8 }
 0x469   :  { %v4837_v13 = vrot.slane %v3269_v8, %v8213_v4  ;;  %v3277_v31 = vcombine.high %v3276_v37, %v3276_v37  ;;  %v3284_v45 = vrot.slane %v2145_v46, %v9269_v59  ;;  %v4841_v6 = vrot.slane %v3276_v37, %v8213_v4  ;;  %v1797_v53 = vpop.trf.xlu0 }
 0x46a   :  { %v2813_v47 = vcombine.high %v2812_v55, %v2812_v55  ;;  %v4373_v24 = vrot.slane %v2805_v25, %v8213_v4  ;;  %v4377_v9 = vrot.slane %v2812_v55, %v8213_v4  ;;  %v5450_v36 = vsel %vm5312_vm9, %v4369_v40, %v5449_v52 }
 0x46b   :  { %v3285_v10 = vcombine.high %v3284_v45, %v3284_v45  ;;  %v4845_v35 = vrot.slane %v3277_v31, %v8213_v4  ;;  %v4849_v63 = vrot.slane %v3284_v45, %v8213_v4  ;;  %v5551_v26 = vsel %vm5322_vm12, %v4841_v6, %v4837_v13  ;;  %v1665_v8 = vpop.trf.xlu1 }
 0x46c   :  { %v2116_v21 = vcombine.high %v1664_v56, %v1664_v56  ;;  %v2820_v46 = vrot.slane %v1664_v56, %v9269_v59  ;;  %v3292_v37 = vrot.slane %v1797_v53, %v9269_v59  ;;  %v2117_v23 = vcombine.high %v1665_v8, %v1665_v8  ;;  %5838 = vxpose.xlu0.b32.cont [10/16] (narrow) %v9953_v58, 8 }
 0x46d   :  { %v4853_v25 = vrot.slane %v3285_v10, %v8213_v4  ;;  %v5552_v52 = vsel %vm5310_vm8, %v4845_v35, %v5551_v26  ;;  %v2836_v55 = vrot.slane %v1665_v8, %v9269_v59  ;;  %v1798_v40 = vpop.trf.xlu0  ;;  %v4381_v31 = vrot.slane %v2813_v47, %v8213_v4 }
 0x46e   :  { %v2821_v45 = vcombine.high %v2820_v46, %v2820_v46  ;;  %v2828_v13 = vrot.slane %v2116_v21, %v9269_v59  ;;  %v4385_v6 = vrot.slane %v2820_v46, %v8213_v4  ;;  %v3293_v56 = vcombine.high %v3292_v37, %v3292_v37 }
 0x46f   :  { %v4857_v53 = vrot.slane %v3292_v37, %v8213_v4  ;;  %v2837_v43 = vcombine.high %v2836_v55, %v2836_v55  ;;  %v2844_v58 = vrot.slane %v2117_v23, %v9269_v59  ;;  %v4401_v10 = vrot.slane %v2836_v55, %v8213_v4  ;;  %v1666_v34 = vpop.trf.xlu1 }
 0x470   :  { %v2829_v35 = vcombine.high %v2828_v13, %v2828_v13  ;;  %v4389_v26 = vrot.slane %v2821_v45, %v8213_v4  ;;  %v4393_v8 = vrot.slane %v2828_v13, %v8213_v4  ;;  %v4861_v47 = vrot.slane %v3293_v56, %v8213_v4  ;;  %5839 = vxpose.xlu0.b32.cont [11/16] (narrow) %v10172_v39, 8 }
 0x471   :  { %v2845_v21 = vcombine.high %v2844_v58, %v2844_v58  ;;  %v4405_v46 = vrot.slane %v2837_v43, %v8213_v4  ;;  %v4409_v37 = vrot.slane %v2844_v58, %v8213_v4  ;;  %v5451_v40 = vsel %vm5314_vm10, %v4373_v24, %v5450_v36  ;;  %v1799_v23 = vpop.trf.xlu0 }
 0x472   :  { %v4397_v55 = vrot.slane %v2829_v35, %v8213_v4  ;;  %v5455_v34 = vsel %vm5322_vm12, %v4393_v8, %v4389_v26  ;;  %v5452_v45 = vsel %vm5316_vm11, %v4377_v9, %v5451_v40  ;;  %v5547_v13 = vsel %vm5314_vm10, %v10178_v19, %v10184_v30 }
 0x473   :  { %v5453_v39 = vsel %vm5318_vm13, %v4381_v31, %v5452_v45  ;;  %v1667_v56 = vpop.trf.xlu1  ;;  %v4413_v43 = vrot.slane %v2845_v21, %v8213_v4  ;;  %v5548_v24 = vsel %vm5316_vm11, %v4825_v62, %v5547_v13  ;;  %v5553_v36 = vsel %vm5312_vm9, %v4849_v63, %v5552_v52 }
 0x474   :  { %v5454_v58 = vsel %vm11447_vm15, %v4385_v6, %v5453_v39  ;;  %v5456_v9 = vsel %vm5310_vm8, %v4397_v55, %v5455_v34  ;;  %5840 = vxpose.xlu0.b32.cont [12/16] (narrow) %v10175_v48, 8  ;;  %v5549_v19 = vsel %vm5318_vm13, %v10199_v38, %v5548_v24  ;;  %v5554_v30 = vsel %vm5314_vm10, %v4853_v25, %v5553_v36 }
 0x475   :  { %v5720_v31 = vsel %vm571_vm1, 0.0, %v5454_v58  ;;  %v1800_v35 = vpop.trf.xlu0  ;;  %v5457_v29 = vsel %vm5312_vm9, %v4401_v10, %v5456_v9  ;;  %v5550_v62 = vsel %vm11447_vm15, %v4833_v15, %v5549_v19  ;;  %v5555_v63 = vsel %vm5316_vm11, %v4857_v53, %v5554_v30 }
 0x476   :  { %5805 = vxpose.xlu1.b32.cont [9/14] (short) (narrow) %v5720_v31, 8  ;;  %v5458_v48 = vsel %vm5314_vm10, %v4405_v46, %v5457_v29  ;;  %v5728_v52 = vsel %vm571_vm1, 0.0, %v5550_v62  ;;  %v5556_v38 = vsel %vm5318_vm13, %v4861_v47, %v5555_v63  ;;  %v5573_v25 = vsel %vm5318_vm13, %v10118_v51, %v10140_v17 }
 0x477   :  { %v3421_v6 = vcombine.high %v10157_v49, %v10157_v49  ;;  %v10274_v22 = vrot.slane %v2154_v3, %v9269_v59  ;;  %v5459_v15 = vsel %vm5316_vm11, %v4409_v37, %v5458_v48  ;;  %v1668_v53 = vpop.trf.xlu1  ;;  %v5578_v10 = vsel %vm5314_vm10, %v10126_v5, %v10143_v18 }
 0x478   :  { %v4981_v51 = vrot.slane %v3413_v32, %v8213_v4  ;;  %v3445_v17 = vcombine.high %v10162_v50, %v10162_v50  ;;  %v5460_v3 = vsel %vm5318_vm13, %v4413_v43, %v5459_v15  ;;  %5841 = vxpose.xlu0.b32.cont [13/16] (narrow) %v5728_v52, 8  ;;  %v5005_v5 = vrot.slane %v3437_v7, %v8213_v4 }
 0x479   :  { %v5009_v18 = vrot.slane %v10162_v50, %v8213_v4  ;;  %v5748_v32 = vsel %vm667_vm14, %v5460_v3, 0.0  ;;  %v1801_v26 = vpop.trf.xlu0  ;;  %v5756_v8 = vsel %vm667_vm14, %v5556_v38, 0.0  ;;  %v4913_v47 = vrot.slane %v9965_v27, %v8213_v4 }
 0x47a   :  { %v4977_v21 = vrot.slane %v10129_v42, %v8213_v4  ;;  %5806 = vxpose.xlu1.b32.cont [10/14] (short) (narrow) %v5748_v32, 8  ;;  %v2146_v46 = vcombine.high %v1801_v26, %v1801_v26  ;;  %v10307_v7 = vrot.slane %v3349_v41, %v8213_v4  ;;  %v11464_v50 = vcombine.high %v10093_v1, %v10093_v1 }
 0x47b   :  { %v4985_v40 = vrot.slane %v10157_v49, %v8213_v4  ;;  %v2156_v42 = vcombine.high %v10059_v16, %v10059_v16  ;;  %v1669_v23 = vpop.trf.xlu1  ;;  %v11465_v55 = vrot.slane %v10010_v28, %v8213_v4  ;;  %v3429_v45 = vcombine.high %v10274_v22, %v10274_v22 }
 0x47c   :  { %v10313_v37 = vrot.slane %v11464_v50, %v8213_v4  ;;  %v5581_v41 = vsel %vm5310_vm8, %v4981_v51, %v4977_v21  ;;  %v3300_v13 = vrot.slane %v2146_v46, %v9269_v59  ;;  %5842 = vxpose.xlu0.b32.cont [14/16] (narrow) %v5756_v8, 8  ;;  %v11466_v49 = vrot.slane %v10093_v1, %v8213_v4 }
 0x47d   :  { %v10323_v34 = vsel %vm11447_vm15, %v11465_v55, %v5573_v25  ;;  %v10336_v39 = vrot.slane %v3421_v6, %v8213_v4  ;;  %v5013_v28 = vrot.slane %v3445_v17, %v8213_v4  ;;  %v5587_v56 = vsel %vm5322_vm12, %v5009_v18, %v5005_v5  ;;  %v1802_v24 = vpop.trf.xlu0 }
 0x47e   :  { %v10333_v16 = vsel %vm5316_vm11, %v11466_v49, %v5578_v10  ;;  %v3453_v43 = vcombine.high %v10288_v33, %v10288_v33  ;;  %v3301_v36 = vcombine.high %v3300_v13, %v3300_v13  ;;  %v4865_v58 = vrot.slane %v3300_v13, %v8213_v4 }
 0x47f   :  { %v2147_v9 = vcombine.high %v1802_v24, %v1802_v24  ;;  %v3308_v1 = vrot.slane %v1802_v24, %v9269_v59  ;;  %v4993_v19 = vrot.slane %v10274_v22, %v8213_v4  ;;  %v10347_v30 = vsel %vm5312_vm9, %v4985_v40, %v5581_v41  ;;  %v1670_v29 = vpop.trf.xlu1 }
 0x480   :  { %v10350_v31 = vrot.slane %v2156_v42, %v9269_v59  ;;  %v5017_v35 = vrot.slane %v10288_v33, %v8213_v4  ;;  %v4869_v62 = vrot.slane %v3301_v36, %v8213_v4  ;;  %v10358_v38 = vsel %vm5310_vm8, %v5013_v28, %v5587_v56 }
 0x481   :  { %v3309_v63 = vcombine.high %v3308_v1, %v3308_v1  ;;  %v3316_v48 = vrot.slane %v2147_v9, %v9269_v59  ;;  %v4873_v52 = vrot.slane %v3308_v1, %v8213_v4  ;;  %v10361_v25 = vrot.slane %v3453_v43, %v8213_v4  ;;  %v1803_v53 = vpop.trf.xlu0 }
 0x482   :  { %v2118_v6 = vcombine.high %v1670_v29, %v1670_v29  ;;  %v2852_v15 = vrot.slane %v1670_v29, %v9269_v59  ;;  %v5557_v10 = vsel %vm5310_vm8, %v4869_v62, %v4865_v58  ;;  %v2148_v46 = vcombine.high %v1803_v53, %v1803_v53 }
 0x483   :  { %v3317_v51 = vcombine.high %v3316_v48, %v3316_v48  ;;  %v4877_v17 = vrot.slane %v3309_v63, %v8213_v4  ;;  %v4881_v3 = vrot.slane %v3316_v48, %v8213_v4  ;;  %v5558_v5 = vsel %vm5312_vm9, %v4873_v52, %v5557_v10  ;;  %v1671_v8 = vpop.trf.xlu1 }
 0x484   :  { %v2853_v18 = vcombine.high %v2852_v15, %v2852_v15  ;;  %v2860_v32 = vrot.slane %v2118_v6, %v9269_v59  ;;  %v4417_v26 = vrot.slane %v2852_v15, %v8213_v4  ;;  %v3324_v50 = vrot.slane %v1803_v53, %v9269_v59 }
 0x485   :  { %v4885_v21 = vrot.slane %v3317_v51, %v8213_v4  ;;  %v2119_v40 = vcombine.high %v1671_v8, %v1671_v8  ;;  %v2868_v41 = vrot.slane %v1671_v8, %v9269_v59  ;;  %v1852_v13 = vpop.trf.xlu0  ;;  %v3332_v28 = vrot.slane %v2148_v46, %v9269_v59 }
 0x486   :  { %v2861_v42 = vcombine.high %v2860_v32, %v2860_v32  ;;  %v4421_v23 = vrot.slane %v2853_v18, %v8213_v4  ;;  %v4425_v55 = vrot.slane %v2860_v32, %v8213_v4  ;;  %v3325_v49 = vcombine.high %v3324_v50, %v3324_v50 }
 0x487   :  { %v4889_v56 = vrot.slane %v3324_v50, %v8213_v4  ;;  %v2876_v43 = vrot.slane %v2119_v40, %v9269_v59  ;;  %v2869_v58 = vcombine.high %v2868_v41, %v2868_v41  ;;  %v4433_v9 = vrot.slane %v2868_v41, %v8213_v4  ;;  %v1672_v1 = vpop.trf.xlu1 }
 0x488   :  { %v4429_v24 = vrot.slane %v2861_v42, %v8213_v4  ;;  %v5461_v36 = vsel %vm5310_vm8, %v4421_v23, %v4417_v26  ;;  %v3333_v29 = vcombine.high %v3332_v28, %v3332_v28  ;;  %v4893_v62 = vrot.slane %v3325_v49, %v8213_v4 }
 0x489   :  { %v4897_v63 = vrot.slane %v3332_v28, %v8213_v4  ;;  %v2877_v48 = vcombine.high %v2876_v43, %v2876_v43  ;;  %v4437_v52 = vrot.slane %v2869_v58, %v8213_v4  ;;  %v2120_v6 = vcombine.high %v1672_v1, %v1672_v1  ;;  %v1853_v53 = vpop.trf.xlu0 }
 0x48a   :  { %v2884_v15 = vrot.slane %v1672_v1, %v9269_v59  ;;  %v5559_v10 = vsel %vm5314_vm10, %v4877_v17, %v5558_v5  ;;  %v4901_v51 = vrot.slane %v3333_v29, %v8213_v4  ;;  %v4441_v5 = vrot.slane %v2876_v43, %v8213_v4 }
 0x48b   :  { %v5563_v18 = vsel %vm5322_vm12, %v4897_v63, %v4893_v62  ;;  %v4445_v32 = vrot.slane %v2877_v48, %v8213_v4  ;;  %v5560_v26 = vsel %vm5316_vm11, %v4881_v3, %v5559_v10  ;;  %v2892_v46 = vrot.slane %v2120_v6, %v9269_v59  ;;  %v1673_v40 = vpop.trf.xlu1 }
 0x48c   :  { %v2885_v8 = vcombine.high %v2884_v15, %v2884_v15  ;;  %v4449_v50 = vrot.slane %v2884_v15, %v8213_v4  ;;  %v5561_v42 = vsel %vm5318_vm13, %v4885_v21, %v5560_v26  ;;  %v2900_v23 = vrot.slane %v1673_v40, %v9269_v59 }
 0x48d   :  { %v5562_v17 = vsel %vm11447_vm15, %v4889_v56, %v5561_v42  ;;  %v5462_v41 = vsel %vm5312_vm9, %v4425_v55, %v5461_v36  ;;  %v2893_v13 = vcombine.high %v2892_v46, %v2892_v46  ;;  %v4457_v3 = vrot.slane %v2892_v46, %v8213_v4  ;;  %v1854_v58 = vpop.trf.xlu0 }
 0x48e   :  { %v4453_v49 = vrot.slane %v2885_v8, %v8213_v4  ;;  %v5467_v28 = vsel %vm5322_vm12, %v4449_v50, %v4445_v32  ;;  %v2901_v1 = vcombine.high %v2900_v23, %v2900_v23  ;;  %v4465_v29 = vrot.slane %v2900_v23, %v8213_v4 }
 0x48f   :  { %v5729_v21 = vsel %vm571_vm1, 0.0, %v5562_v17  ;;  %v5463_v62 = vsel %vm5314_vm10, %v4429_v24, %v5462_v41  ;;  %v4461_v56 = vrot.slane %v2893_v13, %v8213_v4  ;;  %v1884_v43 = vpop.trf.xlu1  ;;  %v5564_v36 = vsel %vm5310_vm8, %v4901_v51, %v5563_v18 }
 0x490   :  { %5843 = vxpose.xlu0.b32.cont [15/16] (narrow) %v5729_v21, 8  ;;  %v5464_v55 = vsel %vm5316_vm11, %v4433_v9, %v5463_v62  ;;  %v5468_v63 = vsel %vm5310_vm8, %v4453_v49, %v5467_v28  ;;  %v4469_v48 = vrot.slane %v2901_v1, %v8213_v4  ;;  %v11467_v15 = vrot.slane %v9933_v2, %v8213_v4 }
 0x491   :  { %v5465_v6 = vsel %vm5318_vm13, %v4437_v52, %v5464_v55  ;;  %v5469_v24 = vsel %vm5312_vm9, %v4457_v3, %v5468_v63  ;;  %v1855_v32 = vpop.trf.xlu0  ;;  %v5583_v18 = vsel %vm5314_vm10, %v10336_v39, %v10347_v30  ;;  %v5589_v2 = vsel %vm5312_vm9, %v5017_v35, %v10358_v38 }
 0x492   :  { %v5565_v53 = vsel %vm5312_vm9, %v11467_v15, %v5564_v36  ;;  %v5466_v10 = vsel %vm11447_vm15, %v4441_v5, %v5465_v6  ;;  %v5470_v51 = vsel %vm5314_vm10, %v4461_v56, %v5469_v24  ;;  %v4997_v39 = vrot.slane %v3429_v45, %v8213_v4 }
 0x493   :  { %v5566_v9 = vsel %vm5314_vm10, %v10104_v44, %v5565_v53  ;;  %v5721_v52 = vsel %vm571_vm1, 0.0, %v5466_v10  ;;  %v5471_v26 = vsel %vm5316_vm11, %v4465_v29, %v5470_v51  ;;  %v3461_v30 = vcombine.high %v10350_v31, %v10350_v31  ;;  %v1885_v35 = vpop.trf.xlu1 }
 0x494   :  { %v5567_v44 = vsel %vm5316_vm11, %v4913_v47, %v5566_v9  ;;  %5807 = vxpose.xlu1.b32.cont [11/14] (short) (narrow) %v5721_v52, 8  ;;  %v5472_v38 = vsel %vm5318_vm13, %v4469_v48, %v5471_v26  ;;  %v5025_v27 = vrot.slane %v10350_v31, %v8213_v4  ;;  %v5584_v45 = vsel %vm5316_vm11, %v4993_v19, %v5583_v18 }
 0x495   :  { %v5568_v33 = vsel %vm5318_vm13, %v10307_v7, %v5567_v44  ;;  %v5749_v8 = vsel %vm667_vm14, %v5472_v38, 0.0  ;;  %v1856_v46 = vpop.trf.xlu0  ;;  %v5590_v7 = vsel %vm5314_vm10, %v10361_v25, %v5589_v2  ;;  %v5730_v50 = vsel %vm571_vm1, 0.0, %v10323_v34 }
 0x496   :  { %v5757_v47 = vsel %vm667_vm14, %v5568_v33, 0.0  ;;  %v2157_v40 = vcombine.high %v1856_v46, %v1856_v46  ;;  %v3468_v31 = vrot.slane %v1856_v46, %v9269_v59  ;;  %v5001_v42 = vrot.slane %v10135_v11, %v8213_v4 }
 0x497   :  { %5844 = vxpose.xlu0.b32.end [16/16] (narrow) %v5757_v47, 8  ;;  %v1886_v23 = vpop.trf.xlu1  ;;  %v5580_v22 = vsel %vm5318_vm13, %v10313_v37, %v10333_v16  ;;  %v5585_v19 = vsel %vm5318_vm13, %v4997_v39, %v5584_v45  ;;  %v5029_v17 = vrot.slane %v3461_v30, %v8213_v4  ;;  %v5591_v41 = vsel %vm5316_vm11, %v5025_v27, %v5590_v7 }
 0x498   :  { %5808 = vxpose.xlu1.b32.cont [12/14] (short) (narrow) %v5749_v8, 8  ;;  %v3469_v25 = vcombine.high %v3468_v31, %v3468_v31  ;;  %v3476_v5 = vrot.slane %v2157_v40, %v9269_v59  ;;  %v5033_v34 = vrot.slane %v3468_v31, %v8213_v4  ;;  %v5758_v37 = vsel %vm667_vm14, %v5580_v22, 0.0 }
 0x499   :  { %v1857_v13 = vpop.trf.xlu0  ;;  %v5586_v1 = vsel %vm11447_vm15, %v5001_v42, %v5585_v19  ;;  %v5592_v29 = vsel %vm5318_vm13, %v5029_v17, %v5591_v41 }
 0x49a   :  { %v3477_v11 = vcombine.high %v3476_v5, %v3476_v5  ;;  %v5037_v49 = vrot.slane %v3469_v25, %v8213_v4  ;;  %v5041_v3 = vrot.slane %v3476_v5, %v8213_v4  ;;  %v2158_v28 = vcombine.high %v1857_v13, %v1857_v13 }
 0x49b   :  { %5861 = vxpose.xlu0.b32.start [1/14] (short) (narrow) %v5730_v50, 8  ;;  %v3484_v16 = vrot.slane %v1857_v13, %v9269_v59  ;;  %v1887_v58 = vpop.trf.xlu1  ;;  %v5731_v10 = vsel %vm571_vm1, 0.0, %v5586_v1  ;;  %v5759_v32 = vsel %vm667_vm14, %v5592_v29, 0.0 }
 0x49c   :  { %v5045_v21 = vrot.slane %v3477_v11, %v8213_v4  ;;  %v5593_v62 = vsel %vm5310_vm8, %v5037_v49, %v5033_v34  ;;  %v3492_v56 = vrot.slane %v2158_v28, %v9269_v59  ;;  %v2164_v55 = vcombine.high %v1887_v58, %v1887_v58 }
 0x49d   :  { %v5594_v43 = vsel %vm5312_vm9, %v5041_v3, %v5593_v62  ;;  %v3580_v36 = vrot.slane %v1887_v58, %v9269_v59  ;;  %v1858_v63 = vpop.trf.xlu0  ;;  %v3485_v48 = vcombine.high %v3484_v16, %v3484_v16  ;;  %v5049_v53 = vrot.slane %v3484_v16, %v8213_v4 }
 0x49e   :  { %v3493_v6 = vcombine.high %v3492_v56, %v3492_v56  ;;  %v3588_v15 = vrot.slane %v2164_v55, %v9269_v59  ;;  %v5595_v51 = vsel %vm5314_vm10, %v5045_v21, %v5594_v43  ;;  %v5057_v18 = vrot.slane %v3492_v56, %v8213_v4 }
 0x49f   :  { %5862 = vxpose.xlu0.b32.cont [2/14] (short) (narrow) %v5758_v37, 8  ;;  %v3581_v24 = vcombine.high %v3580_v36, %v3580_v36  ;;  %v1888_v9 = vpop.trf.xlu1  ;;  %v2159_v52 = vcombine.high %v1858_v63, %v1858_v63  ;;  %v3500_v39 = vrot.slane %v1858_v63, %v9269_v59  ;;  %v5053_v35 = vrot.slane %v3485_v48, %v8213_v4 }
 0x4a0   :  { %v5061_v2 = vrot.slane %v3493_v6, %v8213_v4  ;;  %v3589_v44 = vcombine.high %v3588_v15, %v3588_v15  ;;  %v2165_v30 = vcombine.high %v1888_v9, %v1888_v9  ;;  %v5145_v38 = vrot.slane %v3580_v36, %v8213_v4 }
 0x4a1   :  { %v5149_v26 = vrot.slane %v3581_v24, %v8213_v4  ;;  %v1859_v33 = vpop.trf.xlu0  ;;  %v3508_v27 = vrot.slane %v2159_v52, %v9269_v59  ;;  %v5596_v8 = vsel %vm5316_vm11, %v5049_v53, %v5595_v51  ;;  %v5153_v45 = vrot.slane %v3588_v15, %v8213_v4 }
 0x4a2   :  { %v3516_v47 = vrot.slane %v1859_v33, %v9269_v59  ;;  %v3501_v46 = vcombine.high %v3500_v39, %v3500_v39  ;;  %v5065_v7 = vrot.slane %v3500_v39, %v8213_v4  ;;  %v3604_v23 = vrot.slane %v2165_v30, %v9269_v59 }
 0x4a3   :  { %5863 = vxpose.xlu0.b32.cont [3/14] (short) (narrow) %v5731_v10, 8  ;;  %v1889_v50 = vpop.trf.xlu1  ;;  %v5617_v40 = vsel %vm5310_vm8, %v5149_v26, %v5145_v38  ;;  %v3509_v31 = vcombine.high %v3508_v27, %v3508_v27  ;;  %v5073_v42 = vrot.slane %v3508_v27, %v8213_v4  ;;  %v5157_v22 = vrot.slane %v3589_v44, %v8213_v4 }
 0x4a4   :  { %v5069_v19 = vrot.slane %v3501_v46, %v8213_v4  ;;  %v5599_v17 = vsel %vm5322_vm12, %v5065_v7, %v5061_v2  ;;  %v3596_v25 = vrot.slane %v1888_v9, %v9269_v59  ;;  %v3605_v41 = vcombine.high %v3604_v23, %v3604_v23 }
 0x4a5   :  { %v1860_v5 = vpop.trf.xlu0  ;;  %v5077_v34 = vrot.slane %v3509_v31, %v8213_v4  ;;  %v3517_v13 = vcombine.high %v3516_v47, %v3516_v47  ;;  %v5597_v11 = vsel %vm5318_vm13, %v5053_v35, %v5596_v8  ;;  %v5618_v49 = vsel %vm5312_vm9, %v5153_v45, %v5617_v40 }
 0x4a6   :  { %v5600_v3 = vsel %vm5310_vm8, %v5069_v19, %v5599_v17  ;;  %v2166_v28 = vcombine.high %v1889_v50, %v1889_v50  ;;  %v3612_v37 = vrot.slane %v1889_v50, %v9269_v59  ;;  %v5173_v1 = vrot.slane %v3605_v41, %v8213_v4 }
 0x4a7   :  { %5864 = vxpose.xlu0.b32.cont [4/14] (short) (narrow) %v5759_v32, 8  ;;  %v1890_v16 = vpop.trf.xlu1  ;;  %v5601_v58 = vsel %vm5312_vm9, %v5073_v42, %v5600_v3  ;;  %v5081_v29 = vrot.slane %v3516_v47, %v8213_v4  ;;  %v5085_v21 = vrot.slane %v3517_v13, %v8213_v4  ;;  %v5598_v36 = vsel %vm11447_vm15, %v5057_v18, %v5597_v11 }
 0x4a8   :  { %v3613_v62 = vcombine.high %v3612_v37, %v3612_v37  ;;  %v3620_v56 = vrot.slane %v2166_v28, %v9269_v59  ;;  %v5177_v55 = vrot.slane %v3612_v37, %v8213_v4  ;;  %v3597_v63 = vcombine.high %v3596_v25, %v3596_v25 }
 0x4a9   :  { %v1861_v43 = vpop.trf.xlu0  ;;  %v5161_v48 = vrot.slane %v3596_v25, %v8213_v4  ;;  %v5732_v6 = vsel %vm571_vm1, 0.0, %v5598_v36  ;;  %v5602_v15 = vsel %vm5314_vm10, %v5077_v34, %v5601_v58  ;;  %v5619_v18 = vsel %vm5314_vm10, %v5157_v22, %v5618_v49 }
 0x4aa   :  { %v3621_v53 = vcombine.high %v3620_v56, %v3620_v56  ;;  %v5181_v24 = vrot.slane %v3613_v62, %v8213_v4  ;;  %v5185_v10 = vrot.slane %v3620_v56, %v8213_v4  ;;  %v5623_v9 = vsel %vm5322_vm12, %v5177_v55, %v5173_v1 }
 0x4ab   :  { %v1891_v32 = vpop.trf.xlu1  ;;  %5865 = vxpose.xlu0.b32.cont [5/14] (short) (narrow) %v5732_v6, 8  ;;  %v5603_v51 = vsel %vm5316_vm11, %v5081_v29, %v5602_v15  ;;  %v3628_v52 = vrot.slane %v1890_v16, %v9269_v59  ;;  %v5165_v39 = vrot.slane %v3597_v63, %v8213_v4  ;;  %v5620_v27 = vsel %vm5316_vm11, %v5161_v48, %v5619_v18 }
 0x4ac   :  { %v5624_v2 = vsel %vm5310_vm8, %v5181_v24, %v5623_v9  ;;  %v5604_v26 = vsel %vm5318_vm13, %v5085_v21, %v5603_v51  ;;  %v5189_v30 = vrot.slane %v3621_v53, %v8213_v4  ;;  %v5169_v47 = vrot.slane %v3604_v23, %v8213_v4 }
 0x4ad   :  { %v1862_v44 = vpop.trf.xlu0  ;;  %v5760_v33 = vsel %vm667_vm14, %v5604_v26, 0.0  ;;  %v5625_v35 = vsel %vm5312_vm9, %v5185_v10, %v5624_v2  ;;  %v3629_v8 = vcombine.high %v3628_v52, %v3628_v52  ;;  %v5193_v45 = vrot.slane %v3628_v52, %v8213_v4 }
 0x4ae   :  { %v5621_v50 = vsel %vm5318_vm13, %v5165_v39, %v5620_v27  ;;  %v5626_v40 = vsel %vm5314_vm10, %v5189_v30, %v5625_v35 }
 0x4af   :  { %v1892_v38 = vpop.trf.xlu1  ;;  %5866 = vxpose.xlu0.b32.cont [6/14] (short) (narrow) %v5760_v33, 8  ;;  %v5197_v22 = vrot.slane %v3629_v8, %v8213_v4  ;;  %v5622_v17 = vsel %vm11447_vm15, %v5169_v47, %v5621_v50  ;;  %v5627_v25 = vsel %vm5316_vm11, %v5193_v45, %v5626_v40 }
 0x4b0   :  { %v10542_v58 = vsel %vm571_vm1, 0.0, %v5622_v17 }
 0x4b1   :  { %v1863_v46 = vpop.trf.xlu0  ;;  %v10545_v1 = vsel %vm5318_vm13, %v5197_v22, %v5627_v25 }
 0x4b2   :  { %v2160_v7 = vcombine.high %v1863_v46, %v1863_v46 }
 0x4b3   :  { %v1893_v31 = vpop.trf.xlu1 }
 0x4b4   :  { %v3524_v42 = vrot.slane %v2160_v7, %v9269_v59 }
 0x4b5   :  { %v1864_v19 = vpop.trf.xlu0 }
 0x4b6   :  { %v3525_v23 = vcombine.high %v3524_v42, %v3524_v42  ;;  %v5089_v5 = vrot.slane %v3524_v42, %v8213_v4  ;;  %v2161_v34 = vcombine.high %v1864_v19, %v1864_v19  ;;  %v3532_v41 = vrot.slane %v1864_v19, %v9269_v59 }
 0x4b7   :  { %v1894_v13 = vpop.trf.xlu1 }
 0x4b8   :  { %v5093_v11 = vrot.slane %v3525_v23, %v8213_v4  ;;  %v3533_v49 = vcombine.high %v3532_v41, %v3532_v41  ;;  %v10538_v3 = vrot.slane %v2161_v34, %v9269_v59  ;;  %v5097_v28 = vrot.slane %v3532_v41, %v8213_v4 }
 0x4b9   :  { %v2167_v37 = vcombine.high %v1894_v13, %v1894_v13  ;;  %v1865_v16 = vpop.trf.xlu0 }
 0x4ba   :  { %v5605_v29 = vsel %vm5310_vm8, %v5093_v11, %v5089_v5  ;;  %v3541_v21 = vcombine.high %v10538_v3, %v10538_v3  ;;  %v5101_v62 = vrot.slane %v3533_v49, %v8213_v4  ;;  %v5105_v56 = vrot.slane %v10538_v3, %v8213_v4 }
 0x4bb   :  { %v5606_v55 = vsel %vm5312_vm9, %v5097_v28, %v5605_v29  ;;  %v3636_v43 = vrot.slane %v2167_v37, %v9269_v59  ;;  %v2162_v36 = vcombine.high %v1865_v16, %v1865_v16  ;;  %v10556_v63 = vrot.slane %v1865_v16, %v9269_v59  ;;  %v1895_v48 = vpop.trf.xlu1 }
 0x4bc   :  { %v5109_v6 = vrot.slane %v3541_v21, %v8213_v4  ;;  %v2168_v15 = vcombine.high %v1895_v48, %v1895_v48  ;;  %v3644_v53 = vrot.slane %v1895_v48, %v9269_v59  ;;  %v5607_v24 = vsel %vm5314_vm10, %v5101_v62, %v5606_v55 }
 0x4bd   :  { %v3637_v10 = vcombine.high %v3636_v43, %v3636_v43  ;;  %v5201_v9 = vrot.slane %v3636_v43, %v8213_v4  ;;  %v3549_v32 = vcombine.high %v10556_v63, %v10556_v63  ;;  %v3556_v51 = vrot.slane %v2162_v36, %v9269_v59  ;;  %v1866_v18 = vpop.trf.xlu0 }
 0x4be   :  { %v5113_v2 = vrot.slane %v10556_v63, %v8213_v4  ;;  %v3645_v52 = vcombine.high %v3644_v53, %v3644_v53  ;;  %v3652_v44 = vrot.slane %v2168_v15, %v9269_v59  ;;  %v5209_v26 = vrot.slane %v3644_v53, %v8213_v4 }
 0x4bf   :  { %v5205_v39 = vrot.slane %v3637_v10, %v8213_v4  ;;  %v3557_v30 = vcombine.high %v3556_v51, %v3556_v51  ;;  %v5117_v33 = vrot.slane %v3549_v32, %v8213_v4  ;;  %v5121_v35 = vrot.slane %v3556_v51, %v8213_v4  ;;  %v1896_v38 = vpop.trf.xlu1 }
 0x4c0   :  { %v3653_v27 = vcombine.high %v3652_v44, %v3652_v44  ;;  %v5213_v47 = vrot.slane %v3645_v52, %v8213_v4  ;;  %v5217_v8 = vrot.slane %v3652_v44, %v8213_v4  ;;  %v2163_v45 = vcombine.high %v1866_v18, %v1866_v18 }
 0x4c1   :  { %v5629_v46 = vsel %vm5310_vm8, %v5205_v39, %v5201_v9  ;;  %v5125_v7 = vrot.slane %v3557_v30, %v8213_v4  ;;  %v5611_v50 = vsel %vm5322_vm12, %v5121_v35, %v5117_v33  ;;  %v3564_v40 = vrot.slane %v1866_v18, %v9269_v59  ;;  %v1916_v31 = vpop.trf.xlu0 }
 0x4c2   :  { %v5221_v42 = vrot.slane %v3653_v27, %v8213_v4  ;;  %v5630_v22 = vsel %vm5312_vm9, %v5209_v26, %v5629_v46  ;;  %v3572_v19 = vrot.slane %v2163_v45, %v9269_v59  ;;  %v2169_v17 = vcombine.high %v1896_v38, %v1896_v38 }
 0x4c3   :  { %v5631_v25 = vsel %vm5314_vm10, %v5213_v47, %v5630_v22  ;;  %v5612_v23 = vsel %vm5310_vm8, %v5125_v7, %v5611_v50  ;;  %v3565_v5 = vcombine.high %v3564_v40, %v3564_v40  ;;  %v5129_v34 = vrot.slane %v3564_v40, %v8213_v4  ;;  %v1897_v41 = vpop.trf.xlu1 }
 0x4c4   :  { %v3573_v13 = vcombine.high %v3572_v19, %v3572_v19  ;;  %v5137_v11 = vrot.slane %v3572_v19, %v8213_v4  ;;  %v3660_v49 = vrot.slane %v1896_v38, %v9269_v59  ;;  %v3668_v28 = vrot.slane %v2169_v17, %v9269_v59 }
 0x4c5   :  { %v5133_v37 = vrot.slane %v3565_v5, %v8213_v4  ;;  %v5613_v16 = vsel %vm5312_vm9, %v5129_v34, %v5612_v23  ;;  %v2170_v29 = vcombine.high %v1897_v41, %v1897_v41  ;;  %v3676_v21 = vrot.slane %v1897_v41, %v9269_v59  ;;  %v1917_v62 = vpop.trf.xlu0 }
 0x4c6   :  { %v5141_v55 = vrot.slane %v3573_v13, %v8213_v4  ;;  %v3661_v43 = vcombine.high %v3660_v49, %v3660_v49  ;;  %v3669_v36 = vcombine.high %v3668_v28, %v3668_v28  ;;  %v5225_v63 = vrot.slane %v3660_v49, %v8213_v4 }
 0x4c7   :  { %v5233_v48 = vrot.slane %v3668_v28, %v8213_v4  ;;  %v3677_v15 = vcombine.high %v3676_v21, %v3676_v21  ;;  %v3684_v53 = vrot.slane %v2170_v29, %v9269_v59  ;;  %v5241_v10 = vrot.slane %v3676_v21, %v8213_v4  ;;  %v1692_v9 = vpop.trf.xlu1 }
 0x4c8   :  { %v5229_v32 = vrot.slane %v3661_v43, %v8213_v4  ;;  %v5237_v51 = vrot.slane %v3669_v36, %v8213_v4  ;;  %v5608_v18 = vsel %vm5316_vm11, %v5105_v56, %v5607_v24  ;;  %v5614_v52 = vsel %vm5314_vm10, %v5133_v37, %v5613_v16 }
 0x4c9   :  { %v3685_v44 = vcombine.high %v3684_v53, %v3684_v53  ;;  %v5245_v26 = vrot.slane %v3677_v15, %v8213_v4  ;;  %v5249_v39 = vrot.slane %v3684_v53, %v8213_v4  ;;  %v5609_v30 = vsel %vm5318_vm13, %v5109_v6, %v5608_v18  ;;  %v1918_v33 = vpop.trf.xlu0 }
 0x4ca   :  { %v5635_v35 = vsel %vm5322_vm12, %v5233_v48, %v5229_v32  ;;  %v5610_v38 = vsel %vm11447_vm15, %v5113_v2, %v5609_v30  ;;  %v5615_v27 = vsel %vm5316_vm11, %v5137_v11, %v5614_v52  ;;  %v5632_v3 = vsel %vm5316_vm11, %v5217_v8, %v5631_v25 }
 0x4cb   :  { %v5636_v56 = vsel %vm5310_vm8, %v5237_v51, %v5635_v35  ;;  %v5253_v24 = vrot.slane %v3685_v44, %v8213_v4  ;;  %v5733_v47 = vsel %vm571_vm1, 0.0, %v5610_v38  ;;  %v5616_v45 = vsel %vm5318_vm13, %v5141_v55, %v5615_v27  ;;  %v1693_v46 = vpop.trf.xlu1 }
 0x4cc   :  { %v5637_v6 = vsel %vm5312_vm9, %v5241_v10, %v5636_v56  ;;  %5867 = vxpose.xlu0.b32.cont [7/14] (short) (narrow) %v5733_v47, 8  ;;  %v5761_v7 = vsel %vm667_vm14, %v5616_v45, 0.0  ;;  %v2121_v50 = vcombine.high %v1693_v46, %v1693_v46  ;;  %v5633_v2 = vsel %vm5318_vm13, %v5221_v42, %v5632_v3 }
 0x4cd   :  { %v5634_v40 = vsel %vm11447_vm15, %v5225_v63, %v5633_v2  ;;  %v5638_v8 = vsel %vm5314_vm10, %v5245_v26, %v5637_v6  ;;  %v2171_v31 = vcombine.high %v1918_v33, %v1918_v33  ;;  %v3692_v22 = vrot.slane %v1918_v33, %v9269_v59  ;;  %v1919_v19 = vpop.trf.xlu0 }
 0x4ce   :  { %v2908_v17 = vrot.slane %v2121_v50, %v9269_v59  ;;  %v5762_v25 = vsel %vm667_vm14, %v10545_v1, 0.0  ;;  %v5735_v23 = vsel %vm571_vm1, 0.0, %v5634_v40  ;;  %v5639_v5 = vsel %vm5316_vm11, %v5249_v39, %v5638_v8 }
 0x4cf   :  { %v1694_v34 = vpop.trf.xlu1  ;;  %v3693_v41 = vcombine.high %v3692_v22, %v3692_v22  ;;  %v3700_v42 = vrot.slane %v2171_v31, %v9269_v59  ;;  %v5257_v13 = vrot.slane %v3692_v22, %v8213_v4  ;;  %v2172_v11 = vcombine.high %v1919_v19, %v1919_v19 }
 0x4d0   :  { %5868 = vxpose.xlu0.b32.cont [8/14] (short) (narrow) %v5761_v7, 8  ;;  %v2909_v49 = vcombine.high %v2908_v17, %v2908_v17  ;;  %v2122_v28 = vcombine.high %v1694_v34, %v1694_v34  ;;  %v2916_v37 = vrot.slane %v1694_v34, %v9269_v59  ;;  %v5640_v16 = vsel %vm5318_vm13, %v5253_v24, %v5639_v5 }
 0x4d1   :  { %v4473_v1 = vrot.slane %v2908_v17, %v8213_v4  ;;  %v3701_v29 = vcombine.high %v3700_v42, %v3700_v42  ;;  %v5261_v21 = vrot.slane %v3693_v41, %v8213_v4  ;;  %v5265_v62 = vrot.slane %v3700_v42, %v8213_v4  ;;  %v1920_v33 = vpop.trf.xlu0 }
 0x4d2   :  { %v4477_v55 = vrot.slane %v2909_v49, %v8213_v4  ;;  %v2917_v43 = vcombine.high %v2916_v37, %v2916_v37  ;;  %v2924_v36 = vrot.slane %v2122_v28, %v9269_v59  ;;  %v4481_v63 = vrot.slane %v2916_v37, %v8213_v4 }
 0x4d3   :  { %v1695_v48 = vpop.trf.xlu1  ;;  %v5269_v15 = vrot.slane %v3701_v29, %v8213_v4  ;;  %v5641_v53 = vsel %vm5310_vm8, %v5261_v21, %v5257_v13  ;;  %v3708_v10 = vrot.slane %v1919_v19, %v9269_v59  ;;  %v10638_v9 = vrot.slane %v2172_v11, %v9269_v59 }
 0x4d4   :  { %v5473_v32 = vsel %vm5310_vm8, %v4477_v55, %v4473_v1  ;;  %5869 = vxpose.xlu0.b32.cont [9/14] (short) (narrow) %v10542_v58, 8  ;;  %v2925_v51 = vcombine.high %v2924_v36, %v2924_v36  ;;  %v4485_v18 = vrot.slane %v2917_v43, %v8213_v4  ;;  %v4489_v52 = vrot.slane %v2924_v36, %v8213_v4 }
 0x4d5   :  { %v5474_v44 = vsel %vm5312_vm9, %v4481_v63, %v5473_v32  ;;  %v2123_v26 = vcombine.high %v1695_v48, %v1695_v48  ;;  %v2932_v39 = vrot.slane %v1695_v48, %v9269_v59  ;;  %v5642_v30 = vsel %vm5312_vm9, %v5265_v62, %v5641_v53  ;;  %v1921_v13 = vpop.trf.xlu0 }
 0x4d6   :  { %v4493_v35 = vrot.slane %v2925_v51, %v8213_v4  ;;  %v5475_v38 = vsel %vm5314_vm10, %v4485_v18, %v5474_v44  ;;  %v5643_v27 = vsel %vm5314_vm10, %v5269_v15, %v5642_v30  ;;  %v3709_v58 = vcombine.high %v3708_v10, %v3708_v10 }
 0x4d7   :  { %v2933_v3 = vcombine.high %v2932_v39, %v2932_v39  ;;  %v2940_v56 = vrot.slane %v2123_v26, %v9269_v59  ;;  %v4497_v24 = vrot.slane %v2932_v39, %v8213_v4  ;;  %v1696_v47 = vpop.trf.xlu1  ;;  %v5476_v45 = vsel %vm5316_vm11, %v4489_v52, %v5475_v38 }
 0x4d8   :  { %5870 = vxpose.xlu0.b32.cont [10/14] (short) (narrow) %v5762_v25, 8  ;;  %v2124_v46 = vcombine.high %v1696_v47, %v1696_v47  ;;  %v2948_v6 = vrot.slane %v1696_v47, %v9269_v59  ;;  %v5477_v7 = vsel %vm5318_vm13, %v4493_v35, %v5476_v45  ;;  %v3717_v50 = vcombine.high %v10638_v9, %v10638_v9 }
 0x4d9   :  { %v2941_v2 = vcombine.high %v2940_v56, %v2940_v56  ;;  %v4501_v40 = vrot.slane %v2933_v3, %v8213_v4  ;;  %v4505_v8 = vrot.slane %v2940_v56, %v8213_v4  ;;  %v5478_v31 = vsel %vm11447_vm15, %v4497_v24, %v5477_v7 }
 0x4da   :  { %v2949_v22 = vcombine.high %v2948_v6, %v2948_v6  ;;  %v2956_v19 = vrot.slane %v2124_v46, %v9269_v59  ;;  %v4513_v17 = vrot.slane %v2948_v6, %v8213_v4  ;;  %v5722_v25 = vsel %vm571_vm1, 0.0, %v5478_v31  ;;  %v10720_v31 = vpop.trf.xlu0 }
 0x4db   :  { %v4509_v5 = vrot.slane %v2941_v2, %v8213_v4  ;;  %v5479_v34 = vsel %vm5322_vm12, %v4505_v8, %v4501_v40  ;;  %5809 = vxpose.xlu1.b32.cont [13/14] (short) (narrow) %v5722_v25, 8  ;;  %v5273_v41 = vrot.slane %v3708_v10, %v8213_v4  ;;  %v5277_v42 = vrot.slane %v3709_v58, %v8213_v4  ;;  %v11468_v40 = vld [vmem:[#allocation6_spill] sm:$0xff]  ;;  %v11469_v8 = vld [vmem:[#allocation7_spill] sm:$0xff] }
 0x4dc   :  { %5871 = vxpose.xlu0.b32.cont [11/14] (short) (narrow) %v5735_v23, 8  ;;  %v2957_v11 = vcombine.high %v2956_v19, %v2956_v19  ;;  %v4517_v49 = vrot.slane %v2949_v22, %v8213_v4  ;;  %v4521_v28 = vrot.slane %v2956_v19, %v8213_v4  ;;  %v5763_v37 = vsel %vm667_vm14, %v5640_v16, 0.0  ;;  %v11472_v19 = vld [vmem:[#allocation10_spill] sm:$0xff]  ;;  %v11473_v25 = vld [vmem:[#allocation11_spill] sm:$0xff] }
 0x4dd   :  { %v5480_v1 = vsel %vm5310_vm8, %v4509_v5, %v5479_v34  ;;  %v5285_v29 = vrot.slane %v3717_v50, %v8213_v4  ;;  %v5644_v21 = vsel %vm5316_vm11, %v5273_v41, %v5643_v27  ;;  %v2173_v62 = vcombine.high %v1920_v33, %v1920_v33  ;;  %v11474_v34 = vld [vmem:[#allocation12_spill] sm:$0xff] }
 0x4de   :  { %v4525_v55 = vrot.slane %v2957_v11, %v8213_v4  ;;  %v5481_v43 = vsel %vm5312_vm9, %v4513_v17, %v5480_v1  ;;  %v3724_v23 = vrot.slane %v1920_v33, %v9269_v59  ;;  %v3740_v36 = vrot.slane %v1921_v13, %v9269_v59 }
 0x4df   :  { %v5482_v63 = vsel %vm5314_vm10, %v4517_v49, %v5481_v43  ;;  %v5281_v16 = vrot.slane %v10638_v9, %v8213_v4  ;;  %v3732_v48 = vrot.slane %v2173_v62, %v9269_v59  ;;  %v5645_v15 = vsel %vm5318_vm13, %v5277_v42, %v5644_v21  ;;  %v6057_v21 = vld [vmem:[%s11436_s4] sm:$0xff] }
 0x4e0   :  { %5872 = vxpose.xlu0.b32.cont [12/14] (short) (narrow) %v5763_v37, 8  ;;  %v5483_v53 = vsel %vm5316_vm11, %v4521_v28, %v5482_v63  ;;  %v3725_v10 = vcombine.high %v3724_v23, %v3724_v23  ;;  %v5289_v32 = vrot.slane %v3724_v23, %v8213_v4  ;;  %v3741_v51 = vcombine.high %v3740_v36, %v3740_v36  ;;  %v6058_v28 = vld [vmem:[%s11436_s4 + $0x8] sm:$0xff] }
 0x4e1   :  { %v5484_v18 = vsel %vm5318_vm13, %v4525_v55, %v5483_v53  ;;  %v3733_v52 = vcombine.high %v3732_v48, %v3732_v48  ;;  %v5297_v44 = vrot.slane %v3732_v48, %v8213_v4  ;;  %v5305_v33 = vrot.slane %v3740_v36, %v8213_v4 }
 0x4e2   :  { %v5750_v26 = vsel %vm667_vm14, %v5484_v18, 0.0  ;;  %v5293_v9 = vrot.slane %v3725_v10, %v8213_v4  ;;  %v5647_v39 = vsel %vm5322_vm12, %v5289_v32, %v5285_v29  ;;  %v5646_v35 = vsel %vm11447_vm15, %v5281_v16, %v5645_v15 }
 0x4e3   :  { %5810 = vxpose.xlu1.b32.end [14/14] (short) (narrow) %v5750_v26, 8  ;;  %v5301_v30 = vrot.slane %v3733_v52, %v8213_v4  ;;  %v5309_v27 = vrot.slane %v3741_v51, %v8213_v4  ;;  %v5736_v58 = vsel %vm571_vm1, 0.0, %v5646_v35  ;;  %v5709_v46 = vsel %vm571_vm1, 0.0, %v9302_v61 }
 0x4e4   :  { %v5648_v38 = vsel %vm5310_vm8, %v5293_v9, %v5647_v39  ;;  %5873 = vxpose.xlu0.b32.cont [13/14] (short) (narrow) %v5736_v58, 8  ;;  %v5737_v6 = vsel %vm667_vm14, %v9310_v12, 0.0  ;;  %v5710_v7 = vsel %vm571_vm1, 0.0, %v9336_v20  ;;  %v5738_v50 = vsel %vm667_vm14, %v9376_v54, 0.0 }
 0x4e5   :  { %v5649_v3 = vsel %vm5312_vm9, %v5297_v44, %v5648_v38  ;;  %v5711_v2 = vsel %vm571_vm1, 0.0, %v9439_v14  ;;  %v5739_v61 = vsel %vm667_vm14, %v9461_v57, 0.0  ;;  %v5712_v12 = vsel %vm571_vm1, 0.0, %v9492_v0  ;;  %v11470_v14 = vld [vmem:[#allocation8_spill] sm:$0xff]  ;;  %v11471_v57 = vld [vmem:[#allocation9_spill] sm:$0xff] }
 0x4e6   :  { %v5650_v56 = vsel %vm5314_vm10, %v5301_v30, %v5649_v3  ;;  %v5740_v20 = vsel %vm667_vm14, %v11468_v40, 0.0  ;;  %v5713_v54 = vsel %vm571_vm1, 0.0, %v11469_v8  ;;  %v5741_v22 = vsel %vm667_vm14, %v11470_v14, 0.0 }
 0x4e7   :  { %5765 = vxpose.xlu1.b32.start [1/16] (narrow) %v11449_v60, 8  ;;  %v5651_v24 = vsel %vm5316_vm11, %v5305_v33, %v5650_v56  ;;  %v5714_v0 = vsel %vm571_vm1, 0.0, %v11471_v57  ;;  %v5742_v17 = vsel %vm667_vm14, %v11472_v19, 0.0  ;;  %v5715_v5 = vsel %vm571_vm1, 0.0, %v11473_v25 }
 0x4e8   :  { %v5652_v47 = vsel %vm5318_vm13, %v5309_v27, %v5651_v24  ;;  %v5743_v41 = vsel %vm667_vm14, %v11474_v34, 0.0  ;;  %v11475_v13 = vmov 0   ;;  %vm6069_vm15 = vcmask 588800  }
 0x4e9   :  { %v5764_v45 = vsel %vm667_vm14, %v5652_v47, 0.0  ;;  %vm6025_vm14 = vcmask 777216  }
 0x4ea   :  { %5874 = vxpose.xlu0.b32.end [14/14] (short) (narrow) %v5764_v45, 8 }
 0x4eb   :  { %5766 = vxpose.xlu1.b32.cont [2/16] (narrow) %v11449_v60, 8 }
 0x4ef   :  { %5767 = vxpose.xlu1.b32.cont [3/16] (narrow) %v5709_v46, 8 }
 0x4f3   :  { %5768 = vxpose.xlu1.b32.cont [4/16] (narrow) %v5737_v6, 8 }
 0x4f7   :  { %5769 = vxpose.xlu1.b32.cont [5/16] (narrow) %v5710_v7, 8 }
 0x4fb   :  { %5770 = vxpose.xlu1.b32.cont [6/16] (narrow) %v5738_v50, 8 }
 0x4ff   :  { %5771 = vxpose.xlu1.b32.cont [7/16] (narrow) %v5711_v2, 8 }
 0x503   :  { %5772 = vxpose.xlu1.b32.cont [8/16] (narrow) %v5739_v61, 8 }
 0x507   :  { %5773 = vxpose.xlu1.b32.cont [9/16] (narrow) %v5712_v12, 8 }
 0x50b   :  { %5774 = vxpose.xlu1.b32.cont [10/16] (narrow) %v5740_v20, 8 }
 0x50f   :  { %5775 = vxpose.xlu1.b32.cont [11/16] (narrow) %v5713_v54, 8  ;;  %v10860_v54 = vld [vmem:[%s11435_s3] sm:$0xff] }
 0x513   :  { %5776 = vxpose.xlu1.b32.cont [12/16] (narrow) %v5741_v22, 8  ;;  %6039 = vrot.lane.b32.xlu0 %v10720_v31, %s8156_s2 }
 0x517   :  { %5777 = vxpose.xlu1.b32.cont [13/16] (narrow) %v5714_v0, 8  ;;  %6000 = vrot.lane.b32.xlu0 %v10720_v31, %s8148_s30  ;;  %v10874_v0 = vld [vmem:[%s11435_s3 + $0x8] sm:$0xff] }
 0x51b   :  { %5778 = vxpose.xlu1.b32.cont [14/16] (narrow) %v5742_v17, 8 }
 0x51f   :  { %5779 = vxpose.xlu1.b32.cont [15/16] (narrow) %v5715_v5, 8 }
 0x523   :  { %5780 = vxpose.xlu1.b32.end [16/16] (narrow) %v5743_v41, 8 }
 0x52b   :  { %v10736_v42 = vpop.trf.xlu1 }
 0x52c   :  { %5978 = vrot.lane.b32.xlu0 %v10736_v42, %s8157_s15 }
 0x532   :  { %v10793_v49 = vpop.trf.xlu0 }
 0x541   :  { %6037 = vrot.lane.b32.xlu1 %v10736_v42, %s8156_s2 }
 0x542   :  { %8121 = vset.pattern.permute.xlu1 %v11475_v13 }
 0x563   :  { %v10743_v11 = vpop.trf.xlu1 }
 0x564   :  { %5976 = vrot.lane.b32.xlu0 %v10743_v11, %s8157_s15  ;;  %6035 = vrot.lane.b32.xlu1 %v10743_v11, %s8156_s2 }
 0x568   :  { %5960 = vrot.lane.b32.xlu0 %v10720_v31, %s8158_s16  ;;  %6017 = vrot.lane.b32.xlu1 %v10736_v42, %s8159_s17 }
 0x56c   :  { %5938 = vrot.lane.b32.xlu0 %v10736_v42, %s8160_s18  ;;  %6019 = vrot.lane.b32.xlu1 %v10720_v31, %s8159_s17 }
 0x570   :  { %5936 = vrot.lane.b32.xlu0 %v10743_v11, %s8160_s18  ;;  %6015 = vrot.lane.b32.xlu1 %v10743_v11, %s8159_s17 }
 0x574   :  { %5921 = vrot.lane.b32.xlu0 %v10720_v31, %s8145_s27  ;;  %5998 = vrot.lane.b32.xlu1 %v10736_v42, %s8148_s30 }
 0x578   :  { %5900 = vrot.lane.b32.xlu0 %v10736_v42, %s8144_s26  ;;  %5996 = vrot.lane.b32.xlu1 %v10743_v11, %s8148_s30 }
 0x57c   :  { %5898 = vrot.lane.b32.xlu0 %v10743_v11, %s8144_s26  ;;  %5980 = vrot.lane.b32.xlu1 %v10720_v31, %s8157_s15 }
 0x580   :  { %6043 = vrot.lane.b32.xlu0 %v11449_v60, %s8156_s2  ;;  %5958 = vrot.lane.b32.xlu1 %v10736_v42, %s8158_s16 }
 0x584   :  { %6023 = vrot.lane.b32.xlu0 %v11449_v60, %s8159_s17  ;;  %5956 = vrot.lane.b32.xlu1 %v10743_v11, %s8158_s16 }
 0x585   :  { %v10815_v37 = vpop.permute.xlu0 %6039 }
 0x588   :  { %6004 = vrot.lane.b32.xlu0 %v11449_v60, %s8148_s30  ;;  %5940 = vrot.lane.b32.xlu1 %v10720_v31, %s8160_s18 }
 0x589   :  { %v10824_v62 = vpop.permute.xlu0 %6000 }
 0x58c   :  { %5984 = vrot.lane.b32.xlu0 %v11449_v60, %s8157_s15  ;;  %5919 = vrot.lane.b32.xlu1 %v10736_v42, %s8145_s27 }
 0x590   :  { %5964 = vrot.lane.b32.xlu0 %v11449_v60, %s8158_s16  ;;  %5917 = vrot.lane.b32.xlu1 %v10743_v11, %s8145_s27 }
 0x594   :  { %5944 = vrot.lane.b32.xlu0 %v11449_v60, %s8160_s18  ;;  %5902 = vrot.lane.b32.xlu1 %v10720_v31, %s8144_s26 }
 0x598   :  { %5925 = vrot.lane.b32.xlu0 %v11449_v60, %s8145_s27  ;;  %6041 = vrot.lane.b32.xlu1 %v10793_v49, %s8156_s2 }
 0x59c   :  { %5906 = vrot.lane.b32.xlu0 %v11449_v60, %s8144_s26  ;;  %6021 = vrot.lane.b32.xlu1 %v10793_v49, %s8159_s17 }
 0x59e   :  { %v5979_v55 = vpop.permute.xlu0 %5978 }
 0x5a0   :  { %6066 = vperm.xlu0 %8120, %v6058_v28   ;;  %6002 = vrot.lane.b32.xlu1 %v10793_v49, %s8148_s30 }
 0x5a4   :  { %5982 = vrot.lane.b32.xlu1 %v10793_v49, %s8157_s15 }
 0x5a8   :  { %5962 = vrot.lane.b32.xlu1 %v10793_v49, %s8158_s16 }
 0x5ac   :  { %5942 = vrot.lane.b32.xlu1 %v10793_v49, %s8160_s18 }
 0x5b0   :  { %5923 = vrot.lane.b32.xlu1 %v10793_v49, %s8145_s27 }
 0x5b3   :  { %v6038_v1 = vpop.permute.xlu1 %6037 }
 0x5b4   :  { %5904 = vrot.lane.b32.xlu1 %v10793_v49, %s8144_s26  ;;  %v6047_v29 = vsel %vm6045_vm4, %v6038_v1, %v10815_v37 }
 0x5b5   :  { %6090 = vmatprep.subr.mxu0 %v6047_v29 }
 0x5b8   :  { %6061 = vperm.xlu1 %8121, %v6057_v21  }
 0x5d6   :  { %v5977_v43 = vpop.permute.xlu0 %5976  ;;  %v6036_v23 = vpop.permute.xlu1 %6035 }
 0x5d7   :  { %v6046_v36 = vsel %vm6045_vm4, %v6036_v23, %v6038_v1  ;;  %v5987_v33 = vsel %vm5986_vm5, %v5977_v43, %v5979_v55 }
 0x5d8   :  { %6091 = vmatpush1.msra.mxu0 %v6046_v36 }
 0x5da   :  { %v10827_v63 = vpop.permute.xlu0 %5960  ;;  %v6018_v16 = vpop.permute.xlu1 %6017 }
 0x5de   :  { %v10829_v48 = vpop.permute.xlu1 %6019  ;;  %v5939_v53 = vpop.permute.xlu0 %5938 }
 0x5df   :  { %v6027_v15 = vsel %vm6025_vm14, %v6018_v16, %v10829_v48 }
 0x5e0   :  { %6092 = vmatprep.subr.mxu0 %v6027_v15 }
 0x5e2   :  { %v6016_v10 = vpop.permute.xlu1 %6015  ;;  %v5937_v51 = vpop.permute.xlu0 %5936 }
 0x5e3   :  { %v6026_v32 = vsel %vm6025_vm14, %v6016_v10, %v6018_v16  ;;  %v5947_v45 = vsel %vm5946_vm0, %v5937_v51, %v5939_v53 }
 0x5e4   :  { %6093 = vmatpush1.msra.mxu0 %v6026_v32 }
 0x5e6   :  { %v5999_v18 = vpop.permute.xlu1 %5998  ;;  %v10837_v9 = vpop.permute.xlu0 %5921 }
 0x5e7   :  { %v6007_v52 = vsel %vm376_vm7, %v5999_v18, %v10824_v62 }
 0x5e8   :  { %6094 = vmatprep.subr.mxu0 %v6007_v52 }
 0x5ea   :  { %v5997_v44 = vpop.permute.xlu1 %5996  ;;  %v5901_v35 = vpop.permute.xlu0 %5900 }
 0x5eb   :  { %v6006_v26 = vsel %vm376_vm7, %v5997_v44, %v5999_v18 }
 0x5ec   :  { %6095 = vmatpush1.msra.mxu0 %v6006_v26 }
 0x5ee   :  { %v5981_v39 = vpop.permute.xlu1 %5980  ;;  %v5899_v56 = vpop.permute.xlu0 %5898 }
 0x5ef   :  { %v5988_v30 = vsel %vm5986_vm5, %v5979_v55, %v5981_v39  ;;  %v5908_v20 = vsel %vm136_vm3, %v5899_v56, %v5901_v35 }
 0x5f0   :  { %6096 = vmatprep.subr.mxu0 %v5988_v30 }
 0x5f1   :  { %6097 = vmatpush1.msra.mxu0 %v5987_v33 }
 0x5f2   :  { %v5959_v38 = vpop.permute.xlu1 %5958  ;;  %v10846_v46 = vpop.permute.xlu0 %6043 }
 0x5f3   :  { %v5968_v27 = vsel %vm5966_vm6, %v5959_v38, %v10827_v63 }
 0x5f4   :  { %6098 = vmatprep.subr.mxu0 %v5968_v27 }
 0x5f6   :  { %v5957_v58 = vpop.permute.xlu1 %5956  ;;  %v10850_v50 = vpop.permute.xlu0 %6023 }
 0x5f7   :  { %v5967_v3 = vsel %vm5966_vm6, %v5957_v58, %v5959_v38 }
 0x5f8   :  { %6099 = vmatpush1.msra.mxu0 %v5967_v3 }
 0x5fa   :  { %v5941_v24 = vpop.permute.xlu1 %5940  ;;  %v10855_v8 = vpop.permute.xlu0 %6004 }
 0x5fb   :  { %v5948_v47 = vsel %vm5946_vm0, %v5939_v53, %v5941_v24 }
 0x5fc   :  { %6100 = vmatprep.subr.mxu0 %v5948_v47 }
 0x5fd   :  { %6101 = vmatpush1.msra.mxu0 %v5947_v45 }
 0x5fe   :  { %v5920_v6 = vpop.permute.xlu1 %5919  ;;  %v5985_v19 = vpop.permute.xlu0 %5984 }
 0x5ff   :  { %v5928_v7 = vsel %vm196_vm2, %v5920_v6, %v10837_v9 }
 0x600   :  { %6102 = vmatprep.subr.mxu0 %v5928_v7 }
 0x602   :  { %v5918_v2 = vpop.permute.xlu1 %5917  ;;  %v5965_v13 = vpop.permute.xlu0 %5964 }
 0x603   :  { %v5927_v61 = vsel %vm196_vm2, %v5918_v2, %v5920_v6 }
 0x604   :  { %6103 = vmatpush1.msra.mxu0 %v5927_v61 }
 0x606   :  { %v5903_v12 = vpop.permute.xlu1 %5902  ;;  %v5945_v1 = vpop.permute.xlu0 %5944 }
 0x607   :  { %v5909_v40 = vsel %vm136_vm3, %v5901_v35, %v5903_v12 }
 0x608   :  { %6104 = vmatprep.subr.mxu0 %v5909_v40 }
 0x609   :  { %6105 = vmatpush1.msra.mxu0 %v5908_v20 }
 0x60a   :  { %6106 = vmatprep.subr.mxu0 %v10736_v42  ;;  %v6042_v14 = vpop.permute.xlu1 %6041  ;;  %v5926_v36 = vpop.permute.xlu0 %5925 }
 0x60b   :  { %v6048_v22 = vsel %vm6045_vm4, %v10815_v37, %v6042_v14  ;;  %6107 = vmatpush1.msra.mxu0 %v10743_v11  ;;  %v6049_v57 = vsel %vm6045_vm4, %v6042_v14, %v10846_v46 }
 0x60c   :  { %8005 = vmatmul.mubr.msk.f32.vlgmr.msra.gmra.mxu0 %vm6069_vm15, %v10860_v54  ;;  %6167 = vmatprep.subr.mxu0 %v6049_v57 }
 0x60d   :  { %6168 = vmatpush1.msra.mxu0 %v6048_v22  ;;  %6146 = vmatprep.mubr.f32.mxu0 %v11449_v60 }
 0x60e   :  { %v6022_v17 = vpop.permute.xlu1 %6021 }
 0x60f   :  { %v6028_v25 = vsel %vm6025_vm14, %v10829_v48, %v6022_v17  ;;  %v6029_v5 = vsel %vm6025_vm14, %v6022_v17, %v10850_v50 }
 0x610   :  { %8006 = vmatmul.mubr.msk.f32.gmra.mxu0 %vm6069_vm15, %v10874_v0  ;;  %6169 = vmatprep.subr.mxu0 %v6029_v5 }
 0x611   :  { %6170 = vmatpush1.msra.mxu0 %v6028_v25  ;;  %6217 = vmatprep.mubr.f32.mxu0 %v11449_v60 }
 0x612   :  { %v6003_v34 = vpop.permute.xlu1 %6002 }
 0x613   :  { %v6008_v41 = vsel %vm376_vm7, %v10824_v62, %v6003_v34  ;;  %v6009_v42 = vsel %vm376_vm7, %v6003_v34, %v10855_v8 }
 0x614   :  { %6171 = vmatprep.subr.mxu0 %v6009_v42 }
 0x615   :  { %6172 = vmatpush1.msra.mxu0 %v6008_v41 }
 0x616   :  { %v5983_v11 = vpop.permute.xlu1 %5982 }
 0x617   :  { %v5989_v28 = vsel %vm5986_vm5, %v5981_v39, %v5983_v11  ;;  %v5990_v37 = vsel %vm5986_vm5, %v5983_v11, %v5985_v19 }
 0x618   :  { %6173 = vmatprep.subr.mxu0 %v5990_v37 }
 0x619   :  { %6174 = vmatpush1.msra.mxu0 %v5989_v28 }
 0x61a   :  { %v5963_v29 = vpop.permute.xlu1 %5962 }
 0x61b   :  { %v5969_v21 = vsel %vm5966_vm6, %v10827_v63, %v5963_v29  ;;  %v5970_v62 = vsel %vm5966_vm6, %v5963_v29, %v5965_v13  ;;  %v5907_v63 = vpop.permute.xlu0 %5906 }
 0x61c   :  { %6175 = vmatprep.subr.mxu0 %v5970_v62 }
 0x61d   :  { %6176 = vmatpush1.msra.mxu0 %v5969_v21 }
 0x61e   :  { %v5943_v55 = vpop.permute.xlu1 %5942 }
 0x61f   :  { %v5949_v43 = vsel %vm5946_vm0, %v5941_v24, %v5943_v55  ;;  %v5950_v23 = vsel %vm5946_vm0, %v5943_v55, %v5945_v1  ;;  %v6067_v26 = vpop.permute.xlu0 %6066 }
 0x620   :  { %6177 = vmatprep.subr.mxu0 %v5950_v23 }
 0x621   :  { %6178 = vmatpush1.msra.mxu0 %v5949_v43 }
 0x622   :  { %v5924_v16 = vpop.permute.xlu1 %5923 }
 0x623   :  { %v5929_v48 = vsel %vm196_vm2, %v10837_v9, %v5924_v16  ;;  %v5930_v15 = vsel %vm196_vm2, %v5924_v16, %v5926_v36 }
 0x624   :  { %6179 = vmatprep.subr.mxu0 %v5930_v15 }
 0x625   :  { %6180 = vmatpush1.msra.mxu0 %v5929_v48 }
 0x626   :  { %v5905_v53 = vpop.permute.xlu1 %5904 }
 0x627   :  { %v5910_v10 = vsel %vm136_vm3, %v5903_v12, %v5905_v53  ;;  %v5911_v32 = vsel %vm136_vm3, %v5905_v53, %v5907_v63 }
 0x628   :  { %6181 = vmatprep.subr.mxu0 %v5911_v32 }
 0x629   :  { %6182 = vmatpush1.msra.mxu0 %v5910_v10 }
 0x62a   :  { %6183 = vmatprep.subr.mxu0 %v10793_v49 }
 0x62b   :  { %6184 = vmatpush1.msra.mxu0 %v10720_v31 }
 0x62c   :  { %8007 = vmatmul.mubr.msk.f32.vlgmr.msra.gmra.mxu0 %vm6069_vm15, %v10860_v54  ;;  %8080 = vmatprep.subr.mxu0 %v10846_v46 }
 0x62d   :  { %8081 = vmatpush3.msra.mxu0 %v10846_v46  ;;  %6223 = vmatprep.mubr.f32.mxu0 %v11449_v60 }
 0x62e   :  { %8082 = vmatprep.subr.mxu0 %v10850_v50 }
 0x62f   :  { %8083 = vmatpush3.msra.mxu0 %v10850_v50 }
 0x630   :  { %8008 = vmatmul.mubr.msk.f32.gmra.mxu0 %vm6069_vm15, %v10874_v0  ;;  %8084 = vmatprep.subr.mxu0 %v10855_v8 }
 0x631   :  { %8085 = vmatpush3.msra.mxu0 %v10855_v8  ;;  %8098 = vmatprep.mubr.msk.f32.mxu0 %vm6069_vm15, %v10860_v54 }
 0x632   :  { %8086 = vmatprep.subr.mxu0 %v5985_v19 }
 0x633   :  { %8087 = vmatpush3.msra.mxu0 %v5985_v19  ;;  %v6062_v31 = vpop.permute.xlu1 %6061 }
 0x634   :  { %8088 = vmatprep.subr.mxu0 %v5965_v13 }
 0x635   :  { %8089 = vmatpush3.msra.mxu0 %v5965_v13 }
 0x636   :  { %8090 = vmatprep.subr.mxu0 %v5945_v1 }
 0x637   :  { %8091 = vmatpush3.msra.mxu0 %v5945_v1 }
 0x638   :  { %8092 = vmatprep.subr.mxu0 %v5926_v36 }
 0x639   :  { %8093 = vmatpush3.msra.mxu0 %v5926_v36 }
 0x63a   :  { %8094 = vmatprep.subr.mxu0 %v5907_v63 }
 0x63b   :  { %8095 = vmatpush3.msra.mxu0 %v5907_v63 }
 0x63c   :  { %8096 = vmatprep.subr.mxu0 %v11449_v60 }
 0x63d   :  { %8097 = vmatpush3.msra.mxu0 %v11449_v60 }
 0x63e   :  { %8099 = vmatmul.mubr.msk.f32.vlgmr.msra.gmra.mxu0 %vm6069_vm15, %v10874_v0 }
 0x6cc   :  { %v6142_v49 = vpop.f32.mrf.mxu0 }
 0x6cd   :  { %v6143_v51 = vadd.f32 %v6142_v49, %v6062_v31 }
 0x6ce   :  { %v6144_v18 = vpop.f32.mrf.mxu0 }
 0x6cf   :  { %v6145_v52 = vadd.f32 %v6144_v18, %v6062_v31  ;;  %v6305_v44 = vmax.f32 %v6143_v51, 0.0 }
 0x6d0   :  { %v6148_v9 = vpop.f32.mrf.mxu0 }
 0x6d1   :  { %v6149_v39 = vadd.f32 %v6148_v9, %v6067_v26  ;;  %v6306_v30 = vmax.f32 %v6145_v52, 0.0  ;;  %6325 = vrot.lane.b32.xlu1 %v6305_v44, %s8144_s26 }
 0x6d2   :  { %v6150_v35 = vpop.f32.mrf.mxu0 }
 0x6d3   :  { %6327 = vrot.lane.b32.xlu0 %v6306_v30, %s8144_s26  ;;  %v6310_v33 = vmax.f32 %v6149_v39, 0.0  ;;  %v6151_v3 = vadd.f32 %v6150_v35, %v6067_v26 }
 0x6d5   :  { %v6311_v45 = vmax.f32 %v6151_v3, 0.0 }
 0x6d7   :  { %6335 = vrot.lane.b32.xlu0 %v6310_v33, %s8144_s26 }
 0x6ec   :  { %v6219_v38 = vpop.f32.mrf.mxu0 }
 0x6ed   :  { %v6220_v27 = vadd.f32 %v6219_v38, %v6062_v31 }
 0x6ee   :  { %v6221_v58 = vpop.f32.mrf.mxu0 }
 0x6ef   :  { %v6307_v56 = vmax.f32 %v6220_v27, 0.0  ;;  %v6222_v46 = vadd.f32 %v6221_v58, %v6062_v31 }
 0x6f0   :  { %v6225_v24 = vpop.f32.mrf.mxu0 }
 0x6f1   :  { %v6226_v47 = vadd.f32 %v6225_v24, %v6067_v26  ;;  %6329 = vrot.lane.b32.xlu1 %v6307_v56, %s8144_s26  ;;  %v6308_v50 = vmax.f32 %v6222_v46, 0.0 }
 0x6f2   :  { %v6227_v7 = vpop.f32.mrf.mxu0 }
 0x6f3   :  { %v6312_v6 = vmax.f32 %v6226_v47, 0.0  ;;  %v6228_v2 = vadd.f32 %v6227_v7, %v6067_v26 }
 0x6f5   :  { %6339 = vrot.lane.b32.xlu0 %v6312_v6, %s8144_s26  ;;  %6337 = vrot.lane.b32.xlu1 %v6311_v45, %s8144_s26  ;;  %v6313_v61 = vmax.f32 %v6228_v2, 0.0 }
 0x6f9   :  { %6331 = vrot.lane.b32.xlu1 %v6308_v50, %s8144_s26 }
 0x6fd   :  { %6341 = vrot.lane.b32.xlu1 %v6313_v61, %s8144_s26 }
 0x6fe   :  { %v8100_v12 = vpop.f32.mrf.mxu0 }
 0x6ff   :  { %v6302_v8 = vadd.f32 %v8100_v12, %v6067_v26  ;;  %v7611_v12 = vld [vmem:[%s11437_s5 + $0x60] sm:$0x1] }
 0x700   :  { %v6296_v40 = vpop.f32.mrf.mxu0 }
 0x701   :  { %v6297_v20 = vadd.f32 %v6296_v40, %v6062_v31  ;;  %v6314_v14 = vmax.f32 %v6302_v8, 0.0  ;;  %v7610_v40 = vld [vmem:[%s11437_s5 + $0x58] sm:$0xff] }
 0x703   :  { %v6309_v54 = vmax.f32 %v6297_v20, 0.0  ;;  %v7609_v20 = vld [vmem:[%s11437_s5 + $0x50] sm:$0xff] }
 0x705   :  { %6333 = vrot.lane.b32.xlu0 %v6309_v54, %s8144_s26 }
 0x709   :  { %6343 = vrot.lane.b32.xlu0 %v6314_v14, %s8144_s26  ;;  %s8162_s26 = smov [#allocation2]  }
 0x70a   :  { %s7974_s27 = sshll.u32 %s8162_s26, 4  ;;  %s7975_s27 = int_to_ptr.vmem [resolvable:$true] %s7974_s27 }
 0x70b   :  { %s8122_s28 = scalar_lea.vmem %s7975_s27, 32  ;;  %p8127_p1 = scmp.lt.s32.totalorder %s7975_s27, %s7975_s27 }
 0x70c   :  { %p8123_p0 = scmp.ne.s32.totalorder %s7975_s27, %s8122_s28  ;;  %p8128_p2 = scmp.lt.s32.totalorder %s8122_s28, %s8122_s28 }
 0x70e   :  { %p8129_p3 = por %p8128_p2, %p8127_p1 }
 0x710   :  { %p8130_p4 = pnand %p8129_p3, %p8123_p0 }
 0x743   :  { %v6326_v22 = vpop.permute.xlu1 %6325 }
 0x745   :  { %v6328_v57 = vpop.permute.xlu0 %6327 }
 0x746   :  { %v6345_v0 = vsel %vm136_vm3, %v6326_v22, %v6328_v57 }
 0x747   :  { %v6363_v19 = vmax.f32 %v6305_v44, %v6345_v0  ;;  %v7606_v0 = vld [vmem:[%s11437_s5 + $0x38] sm:$0xff] }
 0x749   :  { %6383 = vrot.lane.b32.xlu1 %v6363_v19, %s8160_s18  ;;  %v6336_v17 = vpop.permute.xlu0 %6335 }
 0x763   :  { %v6330_v25 = vpop.permute.xlu1 %6329 }
 0x764   :  { %v6346_v5 = vsel %vm136_vm3, %v6328_v57, %v6330_v25  ;;  %v7607_v57 = vld [vmem:[%s11437_s5 + $0x40] sm:$0xff] }
 0x765   :  { %v6364_v34 = vmax.f32 %v6306_v30, %v6346_v5  ;;  %v7605_v5 = vld [vmem:[%s11437_s5 + $0x30] sm:$0xff] }
 0x767   :  { %v6340_v41 = vpop.permute.xlu0 %6339  ;;  %6385 = vrot.lane.b32.xlu0 %v6364_v34, %s8160_s18  ;;  %v6338_v42 = vpop.permute.xlu1 %6337 }
 0x768   :  { %v6349_v13 = vsel %vm136_vm3, %v6336_v17, %v6338_v42  ;;  %v6350_v11 = vsel %vm136_vm3, %v6338_v42, %v6340_v41 }
 0x769   :  { %v6368_v28 = vmax.f32 %v6310_v33, %v6349_v13  ;;  %v6369_v37 = vmax.f32 %v6311_v45, %v6350_v11 }
 0x76b   :  { %6395 = vrot.lane.b32.xlu0 %v6369_v37, %s8160_s18  ;;  %6393 = vrot.lane.b32.xlu1 %v6368_v28, %s8160_s18  ;;  %v6332_v1 = vpop.permute.xlu1 %6331 }
 0x76c   :  { %v6347_v29 = vsel %vm136_vm3, %v6330_v25, %v6332_v1 }
 0x76d   :  { %v6365_v21 = vmax.f32 %v6307_v56, %v6347_v29 }
 0x76f   :  { %6387 = vrot.lane.b32.xlu1 %v6365_v21, %s8160_s18  ;;  %v6342_v62 = vpop.permute.xlu1 %6341 }
 0x770   :  { %v6351_v55 = vsel %vm136_vm3, %v6340_v41, %v6342_v62  ;;  %v7604_v41 = vld [vmem:[%s11437_s5 + $0x28] sm:$0xff] }
 0x771   :  { %v6370_v43 = vmax.f32 %v6312_v6, %v6351_v55  ;;  %v7601_v55 = vld [vmem:[%s11437_s5 + $0x10] sm:$0xff] }
 0x773   :  { %6397 = vrot.lane.b32.xlu1 %v6370_v43, %s8160_s18 }
 0x777   :  { %v6334_v23 = vpop.permute.xlu0 %6333 }
 0x778   :  { %v6367_v36 = vmax.f32 %v6309_v54, %v6334_v23  ;;  %v6348_v53 = vsel %vm136_vm3, %v6332_v1, %v6334_v23  ;;  %v7608_v54 = vld [vmem:[%s11437_s5 + $0x48] sm:$0xff]  ;;  %v7602_v1 = vld [vmem:[%s11437_s5 + $0x18] sm:$0xff] }
 0x779   :  { %v6366_v10 = vmax.f32 %v6308_v50, %v6348_v53 }
 0x77a   :  { %6391 = vrot.lane.b32.xlu1 %v6367_v36, %s8160_s18 }
 0x77b   :  { %v6344_v16 = vpop.permute.xlu0 %6343 }
 0x77c   :  { %v6372_v48 = vmax.f32 %v6314_v14, %v6344_v16  ;;  %v6352_v15 = vsel %vm136_vm3, %v6342_v62, %v6344_v16 }
 0x77d   :  { %v6371_v63 = vmax.f32 %v6313_v61, %v6352_v15  ;;  %v7612_v61 = vld [vmem:[%s11437_s5 + $0x68] sm:$0x1] }
 0x77e   :  { %6401 = vrot.lane.b32.xlu0 %v6372_v48, %s8160_s18  ;;  %8011 = vmatprep.subr.msk.mxu1 %vm571_vm1, %v7612_v61  ;;  %v7600_v48 = vld [vmem:[%s11437_s5 + $0x8] sm:$0xff] }
 0x77f   :  { %8012 = vmatpush1.msk.msra.mxu1 %vm571_vm1, %v7611_v12  ;;  %vm11476_vm1 = vcmask 1047559  }
 0x780   :  { %7652 = vmatprep.subr.mxu1 %v7610_v40  ;;  %vm11477_vm2 = vmmov %vm11476_vm1 }
 0x781   :  { %7653 = vmatpush1.msra.mxu1 %v7609_v20  ;;  %vm11478_vm3 = vmmov %vm11476_vm1 }
 0x782   :  { %6399 = vrot.lane.b32.xlu0 %v6371_v63, %s8160_s18  ;;  %7654 = vmatprep.subr.mxu1 %v7608_v54  ;;  %vm11479_vm7 = vmmov %vm11476_vm1 }
 0x783   :  { %7655 = vmatpush1.msra.mxu1 %v7607_v57  ;;  %vm11480_vm15 = vmmov %vm11476_vm1 }
 0x784   :  { %7656 = vmatprep.subr.mxu1 %v7606_v0  ;;  %vm11481_vm4 = vmmov %vm11476_vm1 }
 0x785   :  { %7657 = vmatpush1.msra.mxu1 %v7605_v5  ;;  %vm11482_vm14 = vmmov %vm11476_vm1 }
 0x786   :  { %6389 = vrot.lane.b32.xlu0 %v6366_v10, %s8160_s18  ;;  %7658 = vmatprep.subr.mxu1 %v7604_v41  ;;  %vm11483_vm5 = vmmov %vm11476_vm1 }
 0x787   :  { %vm11484_vm6 = vmmov %vm11476_vm1 }
 0x7bb   :  { %v6384_v32 = vpop.permute.xlu1 %6383 }
 0x7d9   :  { %v6386_v31 = vpop.permute.xlu0 %6385 }
 0x7da   :  { %v6403_v49 = vsel %vm5946_vm0, %v6384_v32, %v6386_v31 }
 0x7db   :  { %v6419_v51 = vmax.f32 %v6363_v19, %v6403_v49 }
 0x7dd   :  { %v6396_v18 = vpop.permute.xlu0 %6395  ;;  %6427 = vxpose.xlu1.b32.start [1/2] (short) (narrow) %v6419_v51, 112  ;;  %v6394_v52 = vpop.permute.xlu1 %6393 }
 0x7de   :  { %v6407_v44 = vsel %vm5946_vm0, %v6394_v52, %v6396_v18 }
 0x7df   :  { %v6423_v26 = vmax.f32 %v6368_v28, %v6407_v44  ;;  %v7603_v28 = vld [vmem:[%s11437_s5 + $0x20] sm:$0xff] }
 0x7e0   :  { %7659 = vmatpush1.msra.mxu1 %v7603_v28 }
 0x7e1   :  { %6428 = vxpose.xlu1.b32.end [2/2] (short) (narrow) %v6423_v26, 112  ;;  %v6388_v9 = vpop.permute.xlu1 %6387  ;;  %7660 = vmatprep.subr.mxu1 %v7602_v1 }
 0x7e2   :  { %v6404_v39 = vsel %vm5946_vm0, %v6386_v31, %v6388_v9  ;;  %7661 = vmatpush1.msra.mxu1 %v7601_v55 }
 0x7e3   :  { %v6420_v30 = vmax.f32 %v6364_v34, %v6404_v39  ;;  %7662 = vmatprep.subr.mxu1 %v7600_v48 }
 0x7e5   :  { %6459 = vxpose.xlu0.b32.start [1/2] (short) (narrow) %v6420_v30, 80  ;;  %v6398_v33 = vpop.permute.xlu1 %6397 }
 0x7e6   :  { %v6408_v35 = vsel %vm5946_vm0, %v6396_v18, %v6398_v33 }
 0x7e7   :  { %v6424_v38 = vmax.f32 %v6369_v37, %v6408_v35 }
 0x7e9   :  { %6460 = vxpose.xlu0.b32.end [2/2] (short) (narrow) %v6424_v38, 80 }
 0x7ec   :  { %v6392_v45 = vpop.permute.xlu1 %6391 }
 0x7f0   :  { %v6402_v27 = vpop.permute.xlu0 %6401 }
 0x7f4   :  { %v6400_v58 = vpop.permute.xlu0 %6399 }
 0x7f5   :  { %v6409_v47 = vsel %vm5946_vm0, %v6398_v33, %v6400_v58  ;;  %v6410_v50 = vsel %vm5946_vm0, %v6400_v58, %v6402_v27 }
 0x7f6   :  { %v6425_v46 = vmax.f32 %v6370_v43, %v6409_v47  ;;  %v6426_v2 = vmax.f32 %v6371_v63, %v6410_v50  ;;  %v7599_v63 = vld [vmem:[%s11437_s5] sm:$0xff] }
 0x7f7   :  { %7663 = vmatpush1.msra.mxu1 %v7599_v63 }
 0x7f8   :  { %v6390_v3 = vpop.permute.xlu0 %6389  ;;  %7896 = vmatprep.subr.mxu1 %v11449_v60 }
 0x7f9   :  { %v6405_v56 = vsel %vm5946_vm0, %v6388_v9, %v6390_v3  ;;  %v6406_v6 = vsel %vm5946_vm0, %v6390_v3, %v6392_v45  ;;  %vm7613_vm0 = vcmask 400384  }
 0x7fa   :  { %v6421_v24 = vmax.f32 %v6365_v21, %v6405_v56  ;;  %v6422_v7 = vmax.f32 %v6366_v10, %v6406_v6 }
 0x80a   :  { %6491 = vxpose.xlu0.b32.start [1/2] (short) (narrow) %v6421_v24, 112 }
 0x80e   :  { %6492 = vxpose.xlu0.b32.end [2/2] (short) (narrow) %v6425_v46, 112 }
 0x812   :  { %6523 = vxpose.xlu1.b32.start [1/2] (short) (narrow) %v6422_v7, 80 }
 0x816   :  { %6524 = vxpose.xlu1.b32.end [2/2] (short) (narrow) %v6426_v2, 80 }
 0x859   :  { %v6443_v8 = vpop.trf.xlu1 }
 0x85a   :  { %v6583_v14 = vcombine.high %v6443_v8, %v6443_v8  ;;  %v6590_v22 = vrot.slane %v6443_v8, %v9269_v59 }
 0x85c   :  { %v6597_v19 = vrot.slane %v6583_v14, %v9269_v59  ;;  %v6598_v17 = vcombine.high %v6590_v22, %v6590_v22  ;;  %v7048_v25 = vrot.slane %v6590_v22, %v8213_v4 }
 0x85d   :  { %v6444_v34 = vpop.trf.xlu1 }
 0x85e   :  { %v6599_v42 = vcombine.high %v6597_v19, %v6597_v19  ;;  %v7052_v13 = vrot.slane %v6598_v17, %v8213_v4  ;;  %v7056_v11 = vrot.slane %v6597_v19, %v8213_v4  ;;  %v6607_v37 = vrot.slane %v6444_v34, %v9269_v59 }
 0x85f   :  { %v6600_v62 = vcombine.high %v6444_v34, %v6444_v34 }
 0x860   :  { %v7060_v29 = vrot.slane %v6599_v42, %v8213_v4  ;;  %v7241_v21 = vsel %vm5322_vm12, %v7052_v13, %v7048_v25  ;;  %v6615_v23 = vcombine.high %v6607_v37, %v6607_v37  ;;  %v7064_v15 = vrot.slane %v6607_v37, %v8213_v4 }
 0x861   :  { %v7242_v43 = vsel %vm5310_vm8, %v7056_v11, %v7241_v21  ;;  %v11001_v36 = vpop.trf.xlu0  ;;  %v6445_v16 = vpop.trf.xlu1  ;;  %v6614_v10 = vrot.slane %v6600_v62, %v9269_v59 }
 0x862   :  { %v7243_v53 = vsel %vm5312_vm9, %v7060_v29, %v7242_v43  ;;  %v7068_v32 = vrot.slane %v6615_v23, %v8213_v4  ;;  %v6715_v55 = vcombine.high %v11001_v36, %v11001_v36  ;;  %v11044_v43 = vrot.slane %v11001_v36, %v9269_v59 }
 0x863   :  { %v7244_v51 = vsel %vm5314_vm10, %v7064_v15, %v7243_v53  ;;  %v7072_v18 = vrot.slane %v6614_v10, %v8213_v4 }
 0x864   :  { %v7245_v26 = vsel %vm5316_vm11, %v7068_v32, %v7244_v51 }
 0x865   :  { %v6476_v31 = vpop.trf.xlu0  ;;  %v6446_v49 = vpop.trf.xlu1  ;;  %v7246_v38 = vsel %vm5318_vm13, %v7072_v18, %v7245_v26  ;;  %v11058_v18 = vrot.slane %v6715_v55, %v9269_v59 }
 0x866   :  { %v6739_v57 = vrot.slane %v6476_v31, %v9269_v59  ;;  %v6732_v41 = vcombine.high %v6476_v31, %v6476_v31 }
 0x868   :  { %v6747_v42 = vcombine.high %v6739_v57, %v6739_v57  ;;  %v6746_v16 = vrot.slane %v6732_v41, %v9269_v59  ;;  %v7176_v36 = vrot.slane %v6739_v57, %v8213_v4 }
 0x869   :  { %v6477_v52 = vpop.trf.xlu0  ;;  %v6447_v44 = vpop.trf.xlu1 }
 0x86a   :  { %v6616_v9 = vcombine.high %v6447_v44, %v6447_v44  ;;  %v6623_v39 = vrot.slane %v6447_v44, %v9269_v59  ;;  %v7180_v48 = vrot.slane %v6747_v42, %v8213_v4 }
 0x86c   :  { %v6630_v30 = vrot.slane %v6616_v9, %v9269_v59  ;;  %v6631_v33 = vcombine.high %v6623_v39, %v6623_v39  ;;  %v7076_v35 = vrot.slane %v6623_v39, %v8213_v4  ;;  %v6730_v9 = vcombine.high %v11044_v43, %v11044_v43 }
 0x86d   :  { %v6478_v27 = vpop.trf.xlu0  ;;  %v6448_v58 = vpop.trf.xlu1  ;;  %v7184_v39 = vrot.slane %v6746_v16, %v8213_v4 }
 0x86e   :  { %v6632_v3 = vcombine.high %v6630_v30, %v6630_v30  ;;  %v7080_v56 = vrot.slane %v6631_v33, %v8213_v4  ;;  %v7084_v24 = vrot.slane %v6630_v30, %v8213_v4  ;;  %v6640_v47 = vrot.slane %v6448_v58, %v9269_v59 }
 0x86f   :  { %v7247_v45 = vsel %vm11476_vm1, %v7076_v35, %v7246_v38  ;;  %v6633_v7 = vcombine.high %v6448_v58, %v6448_v58  ;;  %v7269_v30 = vsel %vm5322_vm12, %v7180_v48, %v7176_v36 }
 0x870   :  { %v7088_v46 = vrot.slane %v6632_v3, %v8213_v4  ;;  %v7248_v6 = vsel %vm5322_vm12, %v7084_v24, %v7080_v56  ;;  %7290 = vxpose.xlu0.b32.start [1/7] (short) (narrow) %v7247_v45, 16  ;;  %v6648_v50 = vcombine.high %v6640_v47, %v6640_v47  ;;  %v7092_v12 = vrot.slane %v6640_v47, %v8213_v4 }
 0x871   :  { %v6479_v2 = vpop.trf.xlu0  ;;  %v6449_v61 = vpop.trf.xlu1  ;;  %v6647_v20 = vrot.slane %v6633_v7, %v9269_v59  ;;  %v7160_v24 = vrot.slane %v11044_v43, %v8213_v4  ;;  %v6731_v45 = vcombine.high %v11058_v18, %v11058_v18 }
 0x872   :  { %v7249_v40 = vsel %vm5310_vm8, %v7088_v46, %v7248_v6  ;;  %v7096_v8 = vrot.slane %v6648_v50, %v8213_v4  ;;  %v6748_v53 = vcombine.high %v6479_v2, %v6479_v2  ;;  %v6755_v10 = vrot.slane %v6479_v2, %v9269_v59 }
 0x873   :  { %v7250_v22 = vsel %vm5312_vm9, %v7092_v12, %v7249_v40  ;;  %v7100_v0 = vrot.slane %v6647_v20, %v8213_v4  ;;  %v11084_v50 = vrot.slane %v6730_v9, %v8213_v4  ;;  %v7168_v2 = vrot.slane %v11058_v18, %v8213_v4 }
 0x874   :  { %v7251_v25 = vsel %vm5314_vm10, %v7096_v8, %v7250_v22  ;;  %v11068_v35 = vrot.slane %v6748_v53, %v9269_v59  ;;  %v6763_v38 = vcombine.high %v6755_v10, %v6755_v10  ;;  %v7188_v27 = vrot.slane %v6755_v10, %v8213_v4 }
 0x875   :  { %v6480_v54 = vpop.trf.xlu0  ;;  %v6450_v14 = vpop.trf.xlu1  ;;  %v7252_v37 = vsel %vm5316_vm11, %v7100_v0, %v7251_v25  ;;  %v7270_v61 = vsel %vm5310_vm8, %v7184_v39, %v7269_v30 }
 0x876   :  { %v6765_v52 = vcombine.high %v6480_v54, %v6480_v54  ;;  %v11061_v44 = vrot.slane %v6480_v54, %v9269_v59  ;;  %v6764_v40 = vcombine.high %v11068_v35, %v11068_v35  ;;  %v11093_v20 = vrot.slane %v6763_v38, %v8213_v4 }
 0x877   :  { %v11096_v8 = vsel %vm5312_vm9, %v7188_v27, %v7270_v61 }
 0x878   :  { %v6779_v46 = vrot.slane %v6765_v52, %v9269_v59  ;;  %v6780_v6 = vcombine.high %v11061_v44, %v11061_v44 }
 0x879   :  { %v6481_v19 = vpop.trf.xlu0  ;;  %v6451_v17 = vpop.trf.xlu1 }
 0x87a   :  { %v6649_v5 = vcombine.high %v6451_v17, %v6451_v17  ;;  %v6656_v34 = vrot.slane %v6451_v17, %v9269_v59  ;;  %v7208_v25 = vrot.slane %v6780_v6, %v8213_v4 }
 0x87c   :  { %v6663_v13 = vrot.slane %v6649_v5, %v9269_v59  ;;  %v6664_v11 = vcombine.high %v6656_v34, %v6656_v34  ;;  %v7104_v28 = vrot.slane %v6656_v34, %v8213_v4  ;;  %v7212_v5 = vrot.slane %v6779_v46, %v8213_v4 }
 0x87d   :  { %v6482_v1 = vpop.trf.xlu0  ;;  %v6452_v29 = vpop.trf.xlu1 }
 0x87e   :  { %v6665_v21 = vcombine.high %v6663_v13, %v6663_v13  ;;  %v7108_v62 = vrot.slane %v6664_v11, %v8213_v4  ;;  %v7253_v23 = vsel %vm5318_vm13, %v7104_v28, %v7252_v37  ;;  %v6673_v15 = vrot.slane %v6452_v29, %v9269_v59 }
 0x87f   :  { %v7112_v49 = vrot.slane %v6663_v13, %v8213_v4  ;;  %v6666_v26 = vcombine.high %v6452_v29, %v6452_v29 }
 0x880   :  { %v7254_v63 = vsel %vm11477_vm2, %v7108_v62, %v7253_v23  ;;  %v7116_v51 = vrot.slane %v6665_v21, %v8213_v4  ;;  %v6681_v33 = vcombine.high %v6673_v15, %v6673_v15  ;;  %v7120_v58 = vrot.slane %v6673_v15, %v8213_v4 }
 0x881   :  { %v11052_v32 = vpop.trf.xlu0  ;;  %v6453_v31 = vpop.trf.xlu1  ;;  %7291 = vxpose.xlu0.b32.cont [2/7] (short) (narrow) %v7254_v63, 16  ;;  %v6680_v7 = vrot.slane %v6666_v26, %v9269_v59 }
 0x882   :  { %v7255_v47 = vsel %vm5322_vm12, %v7116_v51, %v7112_v49  ;;  %v7124_v12 = vrot.slane %v6681_v33, %v8213_v4  ;;  %v6788_v41 = vrot.slane %v11052_v32, %v9269_v59  ;;  %v6781_v37 = vcombine.high %v11052_v32, %v11052_v32 }
 0x883   :  { %v7256_v54 = vsel %vm5310_vm8, %v7120_v58, %v7255_v47  ;;  %v7128_v34 = vrot.slane %v6680_v7, %v8213_v4  ;;  %v7276_v31 = vsel %vm5322_vm12, %v7212_v5, %v7208_v25 }
 0x884   :  { %v7257_v42 = vsel %vm5312_vm9, %v7124_v12, %v7256_v54  ;;  %v6796_v63 = vcombine.high %v6788_v41, %v6788_v41  ;;  %v7216_v52 = vrot.slane %v6788_v41, %v8213_v4  ;;  %v6795_v47 = vrot.slane %v6781_v37, %v9269_v59 }
 0x885   :  { %v11072_v3 = vpop.trf.xlu0  ;;  %v6454_v56 = vpop.trf.xlu1  ;;  %v7258_v32 = vsel %vm5314_vm10, %v7128_v34, %v7257_v42  ;;  %v7272_v42 = vsel %vm5314_vm10, %v11093_v20, %v11096_v8  ;;  %v7204_v8 = vrot.slane %v11061_v44, %v8213_v4 }
 0x886   :  { %v7220_v46 = vrot.slane %v6796_v63, %v8213_v4 }
 0x889   :  { %v6507_v14 = vpop.trf.xlu0  ;;  %v6455_v22 = vpop.trf.xlu1 }
 0x88a   :  { %v6814_v57 = vcombine.high %v6507_v14, %v6507_v14  ;;  %v6821_v0 = vrot.slane %v6507_v14, %v9269_v59  ;;  %v6682_v19 = vcombine.high %v6455_v22, %v6455_v22  ;;  %v6689_v17 = vrot.slane %v6455_v22, %v9269_v59 }
 0x88b   :  { %v7196_v22 = vrot.slane %v11068_v35, %v8213_v4 }
 0x88c   :  { %v6828_v13 = vrot.slane %v6814_v57, %v9269_v59  ;;  %v6829_v11 = vcombine.high %v6821_v0, %v6821_v0  ;;  %v6696_v28 = vrot.slane %v6682_v19, %v9269_v59  ;;  %v7325_v1 = vrot.slane %v6821_v0, %v8213_v4 }
 0x88d   :  { %v6697_v29 = vcombine.high %v6689_v17, %v6689_v17  ;;  %v7132_v21 = vrot.slane %v6689_v17, %v8213_v4  ;;  %v6508_v62 = vpop.trf.xlu0  ;;  %v6456_v55 = vpop.trf.xlu1  ;;  %v7277_v57 = vsel %vm5310_vm8, %v7216_v52, %v7276_v31 }
 0x88e   :  { %v6830_v23 = vcombine.high %v6828_v13, %v6828_v13  ;;  %v7329_v16 = vrot.slane %v6829_v11, %v8213_v4  ;;  %v7333_v48 = vrot.slane %v6828_v13, %v8213_v4  ;;  %v6698_v15 = vcombine.high %v6696_v28, %v6696_v28 }
 0x88f   :  { %v7136_v53 = vrot.slane %v6697_v29, %v8213_v4  ;;  %v6838_v10 = vrot.slane %v6508_v62, %v9269_v59  ;;  %v7140_v49 = vrot.slane %v6696_v28, %v8213_v4  ;;  %v6699_v51 = vcombine.high %v6456_v55, %v6456_v55 }
 0x890   :  { %v7518_v36 = vsel %vm5322_vm12, %v7329_v16, %v7325_v1  ;;  %v7337_v26 = vrot.slane %v6830_v23, %v8213_v4  ;;  %v7144_v9 = vrot.slane %v6698_v15, %v8213_v4  ;;  %v6831_v39 = vcombine.high %v6508_v62, %v6508_v62 }
 0x891   :  { %v6509_v30 = vpop.trf.xlu0  ;;  %v11124_v33 = vpop.trf.xlu1  ;;  %v7519_v38 = vsel %vm5310_vm8, %v7333_v48, %v7518_v36  ;;  %v6706_v27 = vrot.slane %v6456_v55, %v9269_v59  ;;  %v6713_v58 = vrot.slane %v6699_v51, %v9269_v59  ;;  %v7259_v56 = vsel %vm5316_vm11, %v7132_v21, %v7258_v32 }
 0x892   :  { %v6846_v6 = vcombine.high %v6838_v10, %v6838_v10  ;;  %v7260_v7 = vsel %vm5318_vm13, %v7136_v53, %v7259_v56  ;;  %v7341_v61 = vrot.slane %v6838_v10, %v8213_v4  ;;  %v7520_v0 = vsel %vm5312_vm9, %v7337_v26, %v7519_v38 }
 0x893   :  { %v6714_v12 = vcombine.high %v6706_v27, %v6706_v27  ;;  %v7148_v54 = vrot.slane %v6706_v27, %v8213_v4  ;;  %v7261_v14 = vsel %vm11478_vm3, %v7140_v49, %v7260_v7  ;;  %v7156_v19 = vrot.slane %v6713_v58, %v8213_v4 }
 0x894   :  { %7292 = vxpose.xlu0.b32.cont [3/7] (short) (narrow) %v7261_v14, 16  ;;  %v6845_v5 = vrot.slane %v6831_v39, %v9269_v59  ;;  %v7172_v13 = vrot.slane %v6731_v45, %v8213_v4  ;;  %v6797_v11 = vcombine.high %v6795_v47, %v6795_v47  ;;  %v7224_v28 = vrot.slane %v6795_v47, %v8213_v4 }
 0x895   :  { %v6510_v17 = vpop.trf.xlu0  ;;  %v11141_v25 = vpop.trf.xlu1  ;;  %v7152_v34 = vrot.slane %v6714_v12, %v8213_v4  ;;  %v7262_v41 = vsel %vm5322_vm12, %v7148_v54, %v7144_v9  ;;  %v7345_v37 = vrot.slane %v6846_v6, %v8213_v4  ;;  %v7200_v1 = vrot.slane %v6764_v40, %v8213_v4 }
 0x896   :  { %v7278_v29 = vsel %vm5312_vm9, %v7220_v46, %v7277_v57  ;;  %v7521_v21 = vsel %vm5314_vm10, %v7341_v61, %v7520_v0  ;;  %v6805_v45 = vrot.slane %v11072_v3, %v9269_v59  ;;  %v7273_v23 = vsel %vm5316_vm11, %v7196_v22, %v7272_v42 }
 0x897   :  { %v7263_v20 = vsel %vm5310_vm8, %v7152_v34, %v7262_v41  ;;  %v7349_v35 = vrot.slane %v6845_v5, %v8213_v4  ;;  %v7228_v44 = vrot.slane %v6797_v11, %v8213_v4  ;;  %v7522_v53 = vsel %vm5316_vm11, %v7345_v37, %v7521_v21 }
 0x898   :  { %v7264_v62 = vsel %vm5312_vm9, %v7156_v19, %v7263_v20  ;;  %v7279_v10 = vsel %vm5314_vm10, %v7224_v28, %v7278_v29  ;;  %v7232_v49 = vrot.slane %v6805_v45, %v8213_v4  ;;  %v7274_v52 = vsel %vm5318_vm13, %v7200_v1, %v7273_v23 }
 0x899   :  { %v6511_v55 = vpop.trf.xlu0  ;;  %v6541_v16 = vpop.trf.xlu1  ;;  %v7265_v15 = vsel %vm5314_vm10, %v7160_v24, %v7264_v62  ;;  %v6813_v24 = vcombine.high %v6805_v45, %v6805_v45  ;;  %v7523_v38 = vsel %vm5318_vm13, %v7349_v35, %v7522_v53  ;;  %v7280_v27 = vsel %vm5316_vm11, %v7228_v44, %v7279_v10 }
 0x89a   :  { %v6847_v40 = vcombine.high %v6511_v55, %v6511_v55  ;;  %v6854_v48 = vrot.slane %v6511_v55, %v9269_v59  ;;  %v7266_v63 = vsel %vm5316_vm11, %v11084_v50, %v7265_v15  ;;  %v6798_v58 = vcombine.high %v11072_v3, %v11072_v3 }
 0x89b   :  { %v7267_v43 = vsel %vm5318_vm13, %v7168_v2, %v7266_v63  ;;  %v7236_v56 = vrot.slane %v6813_v24, %v8213_v4  ;;  %v7275_v46 = vsel %vm11481_vm4, %v7204_v8, %v7274_v52  ;;  %v7281_v54 = vsel %vm5318_vm13, %v7232_v49, %v7280_v27 }
 0x89c   :  { %v6861_v32 = vrot.slane %v6847_v40, %v9269_v59  ;;  %v6862_v31 = vcombine.high %v6854_v48, %v6854_v48  ;;  %v7353_v36 = vrot.slane %v6854_v48, %v8213_v4  ;;  %v7268_v51 = vsel %vm11479_vm7, %v7172_v13, %v7267_v43 }
 0x89d   :  { %v6512_v50 = vpop.trf.xlu0  ;;  %v6542_v26 = vpop.trf.xlu1  ;;  %7293 = vxpose.xlu0.b32.cont [4/7] (short) (narrow) %v7268_v51, 16  ;;  %v6812_v22 = vrot.slane %v6798_v58, %v9269_v59  ;;  %v7282_v0 = vsel %vm11482_vm14, %v7236_v56, %v7281_v54  ;;  %v6970_v21 = vrot.slane %v11141_v25, %v9269_v59  ;;  %v6963_v23 = vcombine.high %v11141_v25, %v11141_v25 }
 0x89e   :  { %v6863_v9 = vcombine.high %v6861_v32, %v6861_v32  ;;  %v7357_v39 = vrot.slane %v6862_v31, %v8213_v4  ;;  %v7361_v30 = vrot.slane %v6861_v32, %v8213_v4  ;;  %v6871_v18 = vrot.slane %v6512_v50, %v9269_v59 }
 0x89f   :  { %v7524_v2 = vsel %vm11480_vm15, %v7353_v36, %v7523_v38  ;;  %v6864_v12 = vcombine.high %v6512_v50, %v6512_v50  ;;  %v7240_v41 = vrot.slane %v6812_v22, %v8213_v4  ;;  %v6978_v44 = vcombine.high %v6970_v21, %v6970_v21 }
 0x8a0   :  { %7567 = vxpose.xlu1.b32.start [1/7] (short) (narrow) %v7524_v2, 16  ;;  %v7365_v47 = vrot.slane %v6863_v9, %v8213_v4  ;;  %v7525_v61 = vsel %vm5322_vm12, %v7361_v30, %v7357_v39  ;;  %v6879_v14 = vcombine.high %v6871_v18, %v6871_v18  ;;  %v7369_v3 = vrot.slane %v6871_v18, %v8213_v4 }
 0x8a1   :  { %v6513_v6 = vpop.trf.xlu0  ;;  %v11199_v7 = vpop.trf.xlu1  ;;  %7294 = vxpose.xlu0.b32.cont [5/7] (short) (narrow) %v7275_v46, 16  ;;  %v6878_v5 = vrot.slane %v6864_v12, %v9269_v59  ;;  %v6977_v31 = vrot.slane %v6963_v23, %v9269_v59  ;;  %v7453_v49 = vrot.slane %v6970_v21, %v8213_v4  ;;  %v7457_v51 = vrot.slane %v6978_v44, %v8213_v4 }
 0x8a2   :  { %v7526_v57 = vsel %vm5310_vm8, %v7365_v47, %v7525_v61  ;;  %v7373_v34 = vrot.slane %v6879_v14, %v8213_v4  ;;  %v6946_v39 = vcombine.high %v11124_v33, %v11124_v33  ;;  %v6979_v2 = vcombine.high %v11199_v7, %v11199_v7 }
 0x8a3   :  { %v7527_v42 = vsel %vm5312_vm9, %v7369_v3, %v7526_v57  ;;  %v7377_v28 = vrot.slane %v6878_v5, %v8213_v4  ;;  %v7461_v30 = vrot.slane %v6977_v31, %v8213_v4  ;;  %v7546_v47 = vsel %vm5322_vm12, %v7457_v51, %v7453_v49 }
 0x8a4   :  { %v7528_v29 = vsel %vm5314_vm10, %v7373_v34, %v7527_v42  ;;  %v11249_v46 = vrot.slane %v11124_v33, %v9269_v59  ;;  %v6986_v6 = vrot.slane %v11199_v7, %v9269_v59  ;;  %v11256_v14 = vrot.slane %v6946_v39, %v9269_v59 }
 0x8a5   :  { %v6514_v19 = vpop.trf.xlu0  ;;  %v6544_v17 = vpop.trf.xlu1  ;;  %7295 = vxpose.xlu0.b32.cont [6/7] (short) (narrow) %v7282_v0, 16  ;;  %v7529_v40 = vsel %vm5316_vm11, %v7377_v28, %v7528_v29  ;;  %v7547_v0 = vsel %vm5310_vm8, %v7461_v30, %v7546_v47  ;;  %v6993_v33 = vrot.slane %v6979_v2, %v9269_v59 }
 0x8a6   :  { %v6996_v24 = vcombine.high %v6544_v17, %v6544_v17  ;;  %v11234_v26 = vrot.slane %v6544_v17, %v9269_v59  ;;  %v6994_v42 = vcombine.high %v6986_v6, %v6986_v6  ;;  %v6962_v51 = vcombine.high %v11256_v14, %v11256_v14 }
 0x8a8   :  { %v7010_v58 = vrot.slane %v6996_v24, %v9269_v59  ;;  %v7011_v56 = vcombine.high %v11234_v26, %v11234_v26 }
 0x8a9   :  { %v6515_v13 = vpop.trf.xlu0  ;;  %v6545_v11 = vpop.trf.xlu1  ;;  %7296 = vxpose.xlu0.b32.end [7/7] (short) (narrow) %v7240_v41, 16 }
 0x8aa   :  { %v6880_v37 = vcombine.high %v6515_v13, %v6515_v13  ;;  %v6887_v1 = vrot.slane %v6515_v13, %v9269_v59  ;;  %v7485_v19 = vrot.slane %v7011_v56, %v8213_v4  ;;  %v7489_v7 = vrot.slane %v7010_v58, %v8213_v4 }
 0x8ab   :  { %v7465_v13 = vrot.slane %v6986_v6, %v8213_v4  ;;  %v7445_v56 = vrot.slane %v11256_v14, %v8213_v4  ;;  %v7449_v6 = vrot.slane %v6962_v51, %v8213_v4 }
 0x8ac   :  { %v6894_v20 = vrot.slane %v6880_v37, %v9269_v59  ;;  %v6895_v8 = vcombine.high %v6887_v1, %v6887_v1  ;;  %v7381_v45 = vrot.slane %v6887_v1, %v8213_v4 }
 0x8ad   :  { %v6516_v62 = vpop.trf.xlu0  ;;  %v6546_v55 = vpop.trf.xlu1 }
 0x8ae   :  { %v6896_v16 = vcombine.high %v6894_v20, %v6894_v20  ;;  %v7385_v35 = vrot.slane %v6895_v8, %v8213_v4  ;;  %v6904_v48 = vrot.slane %v6516_v62, %v9269_v59  ;;  %v7530_v15 = vsel %vm5318_vm13, %v7381_v45, %v7529_v40 }
 0x8af   :  { %v6897_v10 = vcombine.high %v6516_v62, %v6516_v62  ;;  %v7389_v25 = vrot.slane %v6894_v20, %v8213_v4  ;;  %v7553_v8 = vsel %vm5322_vm12, %v7489_v7, %v7485_v19 }
 0x8b0   :  { %v7393_v63 = vrot.slane %v6896_v16, %v8213_v4  ;;  %v7531_v53 = vsel %vm11483_vm5, %v7385_v35, %v7530_v15  ;;  %v6912_v36 = vcombine.high %v6904_v48, %v6904_v48  ;;  %v7397_v43 = vrot.slane %v6904_v48, %v8213_v4 }
 0x8b1   :  { %v6517_v32 = vpop.trf.xlu0  ;;  %7568 = vxpose.xlu1.b32.cont [2/7] (short) (narrow) %v7531_v53, 16  ;;  %v6911_v52 = vrot.slane %v6897_v10, %v9269_v59  ;;  %v6547_v18 = vpop.trf.xlu1  ;;  %v7469_v48 = vrot.slane %v6994_v42, %v8213_v4  ;;  %v6961_v53 = vcombine.high %v11249_v46, %v11249_v46  ;;  %v7548_v10 = vsel %vm5312_vm9, %v7465_v13, %v7547_v0 }
 0x8b2   :  { %v7532_v50 = vsel %vm5322_vm12, %v7393_v63, %v7389_v25  ;;  %v7401_v38 = vrot.slane %v6912_v36, %v8213_v4  ;;  %v7019_v54 = vrot.slane %v6547_v18, %v9269_v59  ;;  %v7012_v41 = vcombine.high %v6547_v18, %v6547_v18 }
 0x8b3   :  { %v7533_v27 = vsel %vm5310_vm8, %v7397_v43, %v7532_v50  ;;  %v7405_v61 = vrot.slane %v6911_v52, %v8213_v4  ;;  %v6995_v25 = vcombine.high %v6993_v33, %v6993_v33  ;;  %v7473_v50 = vrot.slane %v6993_v33, %v8213_v4 }
 0x8b4   :  { %v7534_v22 = vsel %vm5312_vm9, %v7401_v38, %v7533_v27  ;;  %v7027_v28 = vcombine.high %v7019_v54, %v7019_v54  ;;  %v7493_v62 = vrot.slane %v7019_v54, %v8213_v4  ;;  %v7026_v35 = vrot.slane %v7012_v41, %v9269_v59 }
 0x8b5   :  { %v6518_v9 = vpop.trf.xlu0  ;;  %v7535_v37 = vsel %vm5314_vm10, %v7405_v61, %v7534_v22  ;;  %v6548_v49 = vpop.trf.xlu1  ;;  %v7549_v38 = vsel %vm5314_vm10, %v7469_v48, %v7548_v10  ;;  %v7441_v18 = vrot.slane %v6961_v53, %v8213_v4  ;;  %v7477_v47 = vrot.slane %v6995_v25, %v8213_v4 }
 0x8b6   :  { %v7497_v31 = vrot.slane %v7027_v28, %v8213_v4  ;;  %v7554_v24 = vsel %vm5310_vm8, %v7493_v62, %v7553_v8  ;;  %v7028_v52 = vcombine.high %v7026_v35, %v7026_v35  ;;  %v7437_v9 = vrot.slane %v11249_v46, %v8213_v4 }
 0x8b7   :  { %v7501_v30 = vrot.slane %v7026_v35, %v8213_v4  ;;  %v7036_v58 = vrot.slane %v6548_v49, %v9269_v59  ;;  %v7550_v54 = vsel %vm5316_vm11, %v7473_v50, %v7549_v38  ;;  %v11489_v8 = vlaneseq }
 0x8b8   :  { %v7555_v27 = vsel %vm5312_vm9, %v7497_v31, %v7554_v24  ;;  %v7505_v61 = vrot.slane %v7028_v52, %v8213_v4  ;;  %v7551_v19 = vsel %vm5318_vm13, %v7477_v47, %v7550_v54  ;;  %v8161_v48 = vmov 1.0  }
 0x8b9   :  { %v6519_v12 = vpop.trf.xlu0  ;;  %v7044_v14 = vcombine.high %v7036_v58, %v7036_v58  ;;  %v7509_v33 = vrot.slane %v7036_v58, %v8213_v4 }
 0x8ba   :  { %v6913_v3 = vcombine.high %v6519_v12, %v6519_v12  ;;  %v6920_v57 = vrot.slane %v6519_v12, %v9269_v59 }
 0x8bc   :  { %v6927_v17 = vrot.slane %v6913_v3, %v9269_v59  ;;  %v6928_v5 = vcombine.high %v6920_v57, %v6920_v57  ;;  %v7409_v34 = vrot.slane %v6920_v57, %v8213_v4  ;;  %v7556_v3 = vsel %vm5314_vm10, %v7501_v30, %v7555_v27 }
 0x8bd   :  { %v6520_v11 = vpop.trf.xlu0  ;;  %v7481_v57 = vrot.slane %v11234_v26, %v8213_v4  ;;  %v7557_v7 = vsel %vm5316_vm11, %v7505_v61, %v7556_v3 }
 0x8be   :  { %v6929_v1 = vcombine.high %v6927_v17, %v6927_v17  ;;  %v7413_v29 = vrot.slane %v6928_v5, %v8213_v4  ;;  %v7417_v21 = vrot.slane %v6927_v17, %v8213_v4  ;;  %v6930_v20 = vcombine.high %v6520_v11, %v6520_v11 }
 0x8bf   :  { %v6937_v45 = vrot.slane %v6520_v11, %v9269_v59  ;;  %v7536_v55 = vsel %vm5316_vm11, %v7409_v34, %v7535_v37  ;;  %v7029_v17 = vcombine.high %v6548_v49, %v6548_v49  ;;  %v7513_v5 = vrot.slane %v7044_v14, %v8213_v4 }
 0x8c0   :  { %v7421_v23 = vrot.slane %v6929_v1, %v8213_v4  ;;  %v6944_v16 = vrot.slane %v6930_v20, %v9269_v59  ;;  %v7537_v40 = vsel %vm5318_vm13, %v7413_v29, %v7536_v55  ;;  %v7558_v41 = vsel %vm5318_vm13, %v7509_v33, %v7557_v7  ;;  %v11488_v1 = vld [vmem:[#allocation5_spill] sm:$0xff] }
 0x8c1   :  { %v6945_v15 = vcombine.high %v6937_v45, %v6937_v45  ;;  %v7425_v44 = vrot.slane %v6937_v45, %v8213_v4  ;;  %v7538_v63 = vsel %vm11484_vm6, %v7417_v21, %v7537_v40  ;;  %v7043_v26 = vrot.slane %v7029_v17, %v9269_v59 }
 0x8c2   :  { %v7433_v32 = vrot.slane %v6944_v16, %v8213_v4  ;;  %7569 = vxpose.xlu1.b32.cont [3/7] (short) (narrow) %v7538_v63, 16  ;;  %v7795_v29 = vadd.s32 120, %v11488_v1  ;;  %v7793_v21 = vadd.s32 104, %v11488_v1  ;;  %v7792_v20 = vadd.s32 96, %v11488_v1 }
 0x8c3   :  { %v7429_v36 = vrot.slane %v6945_v15, %v8213_v4  ;;  %v7539_v43 = vsel %vm5322_vm12, %v7425_v44, %v7421_v23  ;;  %v7517_v13 = vrot.slane %v7043_v26, %v8213_v4  ;;  %v7794_v4 = vadd.s32 112, %v11488_v1 }
 0x8c4   :  { %v11331_v45 = vand.u32 127, %v11489_v8  ;;  %v7815_v62 = vshra.s32 %v7795_v29, 4  ;;  %v7791_v55 = vadd.s32 88, %v11488_v1  ;;  %v7813_v16 = vshra.s32 %v7793_v21, 4 }
 0x8c5   :  { %v7540_v39 = vsel %vm5310_vm8, %v7429_v36, %v7539_v43  ;;  %vm11485_vm8 = vmmov %vm11476_vm1  ;;  %v7814_v23 = vshra.s32 %v7794_v4, 4  ;;  %v7812_v35 = vshra.s32 %v7792_v20, 4  ;;  %v7790_v40 = vadd.s32 80, %v11488_v1 }
 0x8c6   :  { %v7541_v2 = vsel %vm5312_vm9, %v7433_v32, %v7540_v39  ;;  %vm11486_vm9 = vmmov %vm11476_vm1  ;;  %v7811_v15 = vshra.s32 %v7791_v55, 4  ;;  %v7789_v44 = vadd.s32 72, %v11488_v1  ;;  %v7788_v10 = vadd.s32 64, %v11488_v1 }
 0x8c7   :  { %v7542_v46 = vsel %vm5314_vm10, %v7437_v9, %v7541_v2  ;;  %v7552_v34 = vsel %vm11486_vm9, %v7481_v57, %v7551_v19  ;;  %vm11487_vm10 = vmmov %vm11476_vm1  ;;  %vm7833_vm1 = vcmp.eq.s32.totalorder %v7813_v16, %v11331_v45  ;;  %vm7832_vm2 = vcmp.eq.s32.totalorder %v7812_v35, %v11331_v45 }
 0x8c8   :  { %v7543_v12 = vsel %vm5316_vm11, %v7441_v18, %v7542_v46  ;;  %v7559_v42 = vsel %vm11487_vm10, %v7513_v5, %v7558_v41  ;;  %vm7835_vm11 = vcmp.eq.s32.totalorder %v7815_v62, %v11331_v45  ;;  %v7810_v63 = vshra.s32 %v7790_v40, 4 }
 0x8c9   :  { %v7544_v22 = vsel %vm5318_vm13, %v7445_v56, %v7543_v12  ;;  %vm7834_vm13 = vcmp.eq.s32.totalorder %v7814_v23, %v11331_v45  ;;  %vm7831_vm3 = vcmp.eq.s32.totalorder %v7811_v15, %v11331_v45  ;;  %v7809_v53 = vshra.s32 %v7789_v44, 4 }
 0x8ca   :  { %v7545_v0 = vsel %vm11485_vm8, %v7449_v6, %v7544_v22  ;;  %vm7830_vm7 = vcmp.eq.s32.totalorder %v7810_v63, %v11331_v45  ;;  %v7808_v32 = vshra.s32 %v7788_v10, 4  ;;  %v7787_v31 = vadd.s32 56, %v11488_v1 }
 0x8cb   :  { %7570 = vxpose.xlu1.b32.cont [4/7] (short) (narrow) %v7545_v0, 16  ;;  %vm7829_vm15 = vcmp.eq.s32.totalorder %v7809_v53, %v11331_v45  ;;  %v7786_v36 = vadd.s32 48, %v11488_v1  ;;  %v11367_v43 = vadd.s32 24, %v11488_v1  ;;  %v7785_v49 = vadd.s32 40, %v11488_v1 }
 0x8cc   :  { %vm7828_vm4 = vcmp.eq.s32.totalorder %v7808_v32, %v11331_v45  ;;  %v7807_v25 = vshra.s32 %v7787_v31, 4  ;;  %v7784_v51 = vadd.s32 32, %v11488_v1  ;;  %v11372_v50 = vadd.s32 16, %v11488_v1 }
 0x8cd   :  { %v7806_v24 = vshra.s32 %v7786_v36, 4  ;;  %v7803_v52 = vshra.s32 %v11367_v43, 4  ;;  %v7805_v9 = vshra.s32 %v7785_v49, 4  ;;  %v7723_v30 = vadd.s32 8, %v11488_v1 }
 0x8ce   :  { %vm7827_vm14 = vcmp.eq.s32.totalorder %v7807_v25, %v11331_v45  ;;  %v7804_v39 = vshra.s32 %v7784_v51, 4  ;;  %v7802_v38 = vshra.s32 %v11372_v50, 4  ;;  %v7799_v2 = vadd.s32 152, %v11488_v1 }
 0x8cf   :  { %7571 = vxpose.xlu1.b32.cont [5/7] (short) (narrow) %v7552_v34, 16  ;;  %vm7826_vm5 = vcmp.eq.s32.totalorder %v7806_v24, %v11331_v45  ;;  %vm7825_vm6 = vcmp.eq.s32.totalorder %v7805_v9, %v11331_v45  ;;  %v7801_v18 = vshra.s32 %v7723_v30, 4  ;;  %vm7823_vm9 = vcmp.eq.s32.totalorder %v7803_v52, %v11331_v45 }
 0x8d0   :  { %vm7824_vm8 = vcmp.eq.s32.totalorder %v7804_v39, %v11331_v45  ;;  %vm7822_vm10 = vcmp.eq.s32.totalorder %v7802_v38, %v11331_v45  ;;  %v7800_v27 = vshra.s32 %v11488_v1, 4  ;;  %v7798_v58 = vadd.s32 144, %v11488_v1 }
 0x8d1   :  { %v7819_v56 = vshra.s32 %v7799_v2, 4  ;;  %v7797_v47 = vadd.s32 136, %v11488_v1  ;;  %v7796_v6 = vadd.s32 128, %v11488_v1  ;;  %v7728_v3 = vadd.s32 128, %v11331_v45 }
 0x8d2   :  { %v7818_v46 = vshra.s32 %v7798_v58, 4  ;;  %v7729_v57 = vand.u32 15, %v11488_v1  ;;  %v7733_v14 = vand.u32 15, %v11331_v45  ;;  %v7730_v19 = vand.u32 15, %v7723_v30  ;;  %v8037_v58 = vld [vmem:[%s11438_s6] ss:$0 sm:$0xff] }
 0x8d3   :  { %7572 = vxpose.xlu1.b32.cont [6/7] (short) (narrow) %v7559_v42, 16  ;;  %v7817_v61 = vshra.s32 %v7797_v47, 4  ;;  %v7816_v12 = vshra.s32 %v7796_v6, 4  ;;  %v7734_v0 = vand.u32 15, %v7728_v3 }
 0x8d7   :  { %7573 = vxpose.xlu1.b32.end [7/7] (short) (narrow) %v7517_v13, 16 }
 0x90d   :  { %v7306_v11 = vpop.trf.xlu0 }
 0x90e   :  { %8013 = vmatmul.mubr.msk.f32.vlgmr.msra.gmra.mxu1 %vm7613_vm0, %v7306_v11 }
 0x90f   :  { %7702 = vmatprep.mubr.f32.mxu1 %v11449_v60  ;;  %8038 = vmatpush1.msk.msra.mxu1 %vm7835_vm11, %v8161_v48  ;;  %vm7820_vm11 = vcmp.eq.s32.totalorder %v7800_v27, %v11331_v45 }
 0x910   :  { %7898 = vmatprep.subr.mxu1 %v11449_v60 }
 0x911   :  { %v7307_v28 = vpop.trf.xlu0  ;;  %8039 = vmatpush1.msk.msra.mxu1 %vm7834_vm13, %v8161_v48  ;;  %vm7839_vm13 = vcmp.eq.s32.totalorder %v7819_v56, %v11331_v45 }
 0x912   :  { %8014 = vmatmul.mubr.msk.f32.gmra.mxu1 %vm7613_vm0, %v7307_v28  ;;  %7900 = vmatprep.subr.mxu1 %v11449_v60  ;;  %v7731_v28 = vand.u32 15, %v11372_v50 }
 0x913   :  { %7708 = vmatprep.mubr.f32.mxu1 %v11449_v60  ;;  %8040 = vmatpush1.msk.msra.mxu1 %vm7833_vm1, %v8161_v48  ;;  %vm7838_vm1 = vcmp.eq.s32.totalorder %v7818_v46, %v11331_v45 }
 0x914   :  { %7902 = vmatprep.subr.mxu1 %v11449_v60 }
 0x915   :  { %8041 = vmatpush1.msk.msra.mxu1 %vm7832_vm2, %v8161_v48  ;;  %vm7837_vm2 = vcmp.eq.s32.totalorder %v7817_v61, %v11331_v45 }
 0x916   :  { %7904 = vmatprep.subr.mxu1 %v11449_v60 }
 0x917   :  { %8042 = vmatpush1.msk.msra.mxu1 %vm7831_vm3, %v8161_v48  ;;  %vm7836_vm3 = vcmp.eq.s32.totalorder %v7816_v12, %v11331_v45 }
 0x918   :  { %7906 = vmatprep.subr.mxu1 %v11449_v60 }
 0x919   :  { %8043 = vmatpush1.msk.msra.mxu1 %vm7830_vm7, %v8161_v48  ;;  %vm7735_vm7 = vcmp.eq.s32.totalorder %v7729_v57, %v7733_v14 }
 0x91a   :  { %7908 = vmatprep.subr.mxu1 %v11449_v60 }
 0x91b   :  { %8044 = vmatpush1.msk.msra.mxu1 %vm7829_vm15, %v8161_v48  ;;  %vm7736_vm15 = vcmp.eq.s32.totalorder %v7729_v57, %v7734_v0 }
 0x91c   :  { %7910 = vmatprep.subr.mxu1 %v11449_v60 }
 0x91d   :  { %8045 = vmatpush1.msk.msra.mxu1 %vm7828_vm4, %v8161_v48  ;;  %vm7737_vm4 = vcmp.eq.s32.totalorder %v7730_v19, %v7733_v14 }
 0x91e   :  { %7912 = vmatprep.subr.mxu1 %v11449_v60 }
 0x91f   :  { %8046 = vmatpush1.msk.msra.mxu1 %vm7827_vm14, %v8161_v48  ;;  %vm7738_vm14 = vcmp.eq.s32.totalorder %v7730_v19, %v7734_v0 }
 0x920   :  { %7914 = vmatprep.subr.mxu1 %v11449_v60 }
 0x921   :  { %8047 = vmatpush1.msk.msra.mxu1 %vm7826_vm5, %v8161_v48  ;;  %vm7758_vm5 = vcmask 261120  }
 0x922   :  { %7916 = vmatprep.subr.mxu1 %v11449_v60 }
 0x923   :  { %8048 = vmatpush1.msk.msra.mxu1 %vm7825_vm6, %v8161_v48  ;;  %vm7739_vm6 = vcmp.eq.s32.totalorder %v7731_v28, %v7733_v14 }
 0x924   :  { %7918 = vmatprep.subr.mxu1 %v11449_v60 }
 0x925   :  { %8049 = vmatpush1.msk.msra.mxu1 %vm7824_vm8, %v8161_v48  ;;  %vm7740_vm8 = vcmp.eq.s32.totalorder %v7731_v28, %v7734_v0 }
 0x926   :  { %7920 = vmatprep.subr.mxu1 %v11449_v60 }
 0x927   :  { %8050 = vmatpush1.msk.msra.mxu1 %vm7823_vm9, %v8161_v48 }
 0x928   :  { %7922 = vmatprep.subr.mxu1 %v11449_v60 }
 0x929   :  { %8051 = vmatpush1.msk.msra.mxu1 %vm7822_vm10, %v8161_v48 }
 0x92a   :  { %7924 = vmatprep.subr.mxu1 %v11449_v60 }
 0x93b   :  { %v7583_v37 = vpop.trf.xlu1 }
 0x93c   :  { %8015 = vmatmul.mubr.msk.f32.gmra.mxu1 %vm7613_vm0, %v7583_v37  ;;  %v7732_v37 = vand.u32 15, %v11367_v43 }
 0x93d   :  { %7714 = vmatprep.mubr.f32.mxu1 %v11449_v60 }
 0x93e   :  { %vm7741_vm9 = vcmp.eq.s32.totalorder %v7732_v37, %v7733_v14  ;;  %vm7742_vm10 = vcmp.eq.s32.totalorder %v7732_v37, %v7734_v0 }
 0x93f   :  { %v7584_v59 = vpop.trf.xlu1 }
 0x940   :  { %8016 = vmatmul.mubr.msk.f32.gmra.mxu1 %vm7613_vm0, %v7584_v59  ;;  %vm7821_vm0 = vcmp.eq.s32.totalorder %v7801_v18, %v11331_v45 }
 0x941   :  { %8052 = vmatpush1.msk.msra.mxu1 %vm7821_vm0, %v8161_v48  ;;  %vm7966_vm0 = vcmask 74752  }
 0x942   :  { %7926 = vmatprep.subr.mxu1 %v11449_v60 }
 0x943   :  { %8053 = vmatpush1.msk.msra.mxu1 %vm7820_vm11, %v8161_v48 }
 0x944   :  { %7952 = vmatprep.subr.mxu1 %v11449_v60 }
 0x945   :  { %8054 = vmatpush2.msk.msra.mxu1 %vm7839_vm13, %v8161_v48 }
 0x946   :  { %7954 = vmatprep.subr.mxu1 %v11449_v60 }
 0x947   :  { %8055 = vmatpush2.msk.msra.mxu1 %vm7838_vm1, %v8161_v48 }
 0x948   :  { %7956 = vmatprep.subr.mxu1 %v11449_v60 }
 0x949   :  { %8056 = vmatpush2.msk.msra.mxu1 %vm7837_vm2, %v8161_v48 }
 0x94a   :  { %7958 = vmatprep.subr.mxu1 %v11449_v60 }
 0x94b   :  { %8057 = vmatpush2.msk.msra.mxu1 %vm7836_vm3, %v8161_v48 }
 0x9ce   :  { %v7698_v54 = vpop.f32.mrf.mxu1 }
 0x9cf   :  { %v7743_v60 = vsel %vm7735_vm7, %v7698_v54, 0.0 }
 0x9d0   :  { %v7700_v22 = vpop.f32.mrf.mxu1 }
 0x9d1   :  { %v7744_v17 = vsel %vm7736_vm15, %v7700_v22, 0.0 }
 0x9d2   :  { %v7704_v33 = vpop.f32.mrf.mxu1  ;;  %v7759_v41 = vsel %vm7758_vm5, %v7744_v17, 0.0 }
 0x9d3   :  { %v7745_v5 = vsel %vm7737_vm4, %v7704_v33, 0.0 }
 0x9d4   :  { %v7706_v7 = vpop.f32.mrf.mxu1  ;;  %v7751_v26 = vadd.f32 %v7745_v5, %v7743_v60 }
 0x9d5   :  { %v7746_v34 = vsel %vm7738_vm14, %v7706_v7, 0.0 }
 0x9d6   :  { %v7760_v42 = vsel %vm7758_vm5, %v7746_v34, 0.0  ;;  %v7752_v11 = vrot.slane %v7751_v26, 4 }
 0x9d7   :  { %v7761_v13 = vadd.f32 %v7760_v42, %v7759_v41 }
 0x9d8   :  { %v7753_v29 = vadd.f32 %v7752_v11, %v7751_v26 }
 0x9d9   :  { %v7762_v1 = vrot.slane %v7761_v13, 4 }
 0x9da   :  { %v7754_v55 = vrot.slane %v7753_v29, 2 }
 0x9db   :  { %v7763_v20 = vadd.f32 %v7762_v1, %v7761_v13 }
 0x9dc   :  { %v7755_v53 = vadd.f32 %v7754_v55, %v7753_v29 }
 0x9dd   :  { %v7764_v44 = vrot.slane %v7763_v20, 2 }
 0x9de   :  { %v7756_v43 = vrot.slane %v7755_v53, 1 }
 0x9df   :  { %v7765_v25 = vadd.f32 %v7764_v44, %v7763_v20 }
 0x9e0   :  { %v7757_v9 = vadd.f32 %v7756_v43, %v7755_v53 }
 0x9e1   :  { %v7766_v50 = vrot.slane %v7765_v25, 1 }
 0x9e3   :  { %v7767_v18 = vadd.f32 %v7766_v50, %v7765_v25 }
 0x9fc   :  { %v7710_v59 = vpop.f32.mrf.mxu1 }
 0x9fd   :  { %v7747_v8 = vsel %vm7739_vm6, %v7710_v59, 0.0 }
 0x9fe   :  { %v7712_v4 = vpop.f32.mrf.mxu1 }
 0x9ff   :  { %v7748_v45 = vsel %vm7740_vm8, %v7712_v4, 0.0 }
 0xa00   :  { %v7716_v21 = vpop.f32.mrf.mxu1  ;;  %v7775_v40 = vsel %vm7758_vm5, %v7748_v45, 0.0 }
 0xa01   :  { %v7749_v62 = vsel %vm7741_vm9, %v7716_v21, 0.0 }
 0xa02   :  { %v7768_v23 = vadd.f32 %v7749_v62, %v7747_v8  ;;  %v7718_v16 = vpop.f32.mrf.mxu1 }
 0xa03   :  { %v7750_v35 = vsel %vm7742_vm10, %v7718_v16, 0.0 }
 0xa04   :  { %v7769_v48 = vrot.slane %v7768_v23, 4  ;;  %v7776_v15 = vsel %vm7758_vm5, %v7750_v35, 0.0 }
 0xa05   :  { %v7777_v63 = vadd.f32 %v7776_v15, %v7775_v40 }
 0xa06   :  { %v7770_v10 = vadd.f32 %v7769_v48, %v7768_v23 }
 0xa07   :  { %v7778_v32 = vrot.slane %v7777_v63, 4 }
 0xa08   :  { %v7771_v31 = vrot.slane %v7770_v10, 2 }
 0xa09   :  { %v7779_v36 = vadd.f32 %v7778_v32, %v7777_v63 }
 0xa0a   :  { %v7772_v24 = vadd.f32 %v7771_v31, %v7770_v10 }
 0xa0b   :  { %v7780_v49 = vrot.slane %v7779_v36, 2 }
 0xa0c   :  { %v7773_v51 = vrot.slane %v7772_v24, 1 }
 0xa0d   :  { %v7781_v52 = vadd.f32 %v7780_v49, %v7779_v36 }
 0xa0e   :  { %v7774_v39 = vadd.f32 %v7773_v51, %v7772_v24 }
 0xa0f   :  { %v7782_v30 = vrot.slane %v7781_v52, 1 }
 0xa10   :  { %v7891_v38 = vsel %vm5322_vm12, %v7774_v39, %v7757_v9 }
 0xa11   :  { %v7783_v2 = vadd.f32 %v7782_v30, %v7781_v52 }
 0xa13   :  { %v7892_v27 = vsel %vm5322_vm12, %v7783_v2, %v7767_v18 }
 0xa14   :  { %8058 = vmatprep.mubr.msk.f32.mxu1 %vm7758_vm5, %v7892_v27 }
 0xa15   :  { %7961 = vmatmul.mubr.f32.vlgmr.msra.gmra.mxu1 %v7891_v38 }
 0xad5   :  { %v7962_v56 = vpop.f32.mrf.mxu1 }
 0xad6   :  { %v7963_v47 = vadd.f32 %v8037_v58, %v7962_v56 }
 0xad7   :  { %v7964_v46 = vpop.f32.mrf.mxu1 }
 0xad8   :  { %7967 = vst.msk [vmem:[#allocation2] sm:$0x3] %vm7966_vm0, %v7963_v47 }
 0xad9   :  { %8133 = shalt.err (!%p8130_p4)
}
 0xada   :  { %7977 = dma.vmem_to_hbm [thread:$0]  %s7975_s27, 32, %s11439_s7, [#allocation3]  }
 0xadb   :  { %8142 = dma.done.wait [#allocation3], 32  }
 0xadc   :  { %8143 = vsyncadd [#allocation3], 4294967264 }
 0xadd   :  { %7981 = vsyncpa [#allocation3], 1 }

</bundles_post_ra>
